<compile_context>
chip_gen: v5e
topology: v5e:2x2
jax: 0.10.0
libtpu: 0.0.40
codegen_flags: <defaults>
</compile_context>

<pallas_src>
import jax
import jax.numpy as jnp
from jax.experimental import pallas as pl
from jax.experimental.pallas import tpu as pltpu


def _bprnn_kernel(pre_ref, hcol_ref, hebb_ref,
                  alpha_ref, wh2mod_ref, bh2mod_ref, wmf_ref, bmf_ref,
                  hnext_ref, hebbnext_ref):
    pre = pre_ref[...]                              # (TB, H)  = x@Wi2h + b_i2h + h_cur@W  (hoisted)
    h_col = hcol_ref[...]                           # (TB, H, 1) pre-synaptic activations as columns
    hebb = hebb_ref[...].astype(jnp.float32)        # (TB, H, H)  storage may be bf16; compute in f32
    alpha = alpha_ref[...]                          # (H, H)

    # Plastic part of the recurrence without materializing W + alpha*hebb:
    #   rec[b, j] = sum_i h_cur[b, i] * alpha[i, j] * hebb[b, i, j]
    rec_plastic = jnp.sum(h_col * (hebb * alpha), axis=1)            # (TB, H)

    h_next = jnp.tanh(pre + rec_plastic)                             # (TB, H)
    hnext_ref[...] = h_next

    # Neuromodulator: eta = tanh(h2mod(h_next)); myeta = modfanout(eta)
    # bh2mod is a single scalar read from SMEM.
    eta = jnp.tanh(jnp.sum(h_next * wh2mod_ref[...], axis=-1, keepdims=True)
                   + bh2mod_ref[0, 0])                               # (TB, 1)
    myeta = eta * wmf_ref[...] + bmf_ref[...]                        # (TB, H)

    # hebb_next[b,i,j] = clip(hebb[b,i,j] + myeta[b,j]*h_cur[b,i]*h_next[b,j], -2, 2)
    scaled_post = (myeta * h_next)[:, None, :]                       # (TB, 1, H)
    hebb_new = jnp.clip(hebb + h_col * scaled_post, -2.0, 2.0)
    hebbnext_ref[...] = hebb_new.astype(hebbnext_ref.dtype)


def _vmem_capacity_bytes():
    """Per-core physical VMEM.  Falls back to v7x's 64 MiB (most restrictive)."""
    try:
        return int(pltpu.get_tpu_info().vmem_capacity_bytes)
    except Exception:
        return 64 * 2**20


def _vmem_model(H, hebb_itemsize):
    """Bytes of VMEM residency per unit of tb, and tb-independent bytes."""
    lane = 128
    Hl = -(-H // lane) * lane                       # lane-padded H
    per_tb = (4 * H * H * hebb_itemsize             # hebb in + hebb_next out, double-buffered
              + 2 * H * lane * 4                    # (tb,H,1) h_col block, f32, lane-padded, dbl-buffered
              + 4 * Hl * 4)                         # pre (in) + h_next (out) rows, f32, dbl-buffered
    fixed = (2 * H * Hl * 4                         # alpha (H,H) f32, double-buffered (constant index)
             + 6 * 8 * Hl * 4                       # wh2mod / wmf / bmf (1,H) blocks, sublane-padded
             + (2 << 20))                           # compiler-internal scratch headroom
    return per_tb, fixed


def _choose_tb(B, H, hebb_itemsize, vmem_budget):
    """Largest 8-aligned divisor of B whose blocks fit the VMEM budget,
    preferring a grid extent >= 4 (then >= 2) for v7x megacore balance."""
    per_tb, fixed = _vmem_model(H, hebb_itemsize)
    cap = max(0, vmem_budget - fixed) // per_tb
    # second-to-last block dim of the (tb, H) specs must be a multiple of 8 or B
    cands = [d for d in range(1, B + 1) if B % d == 0 and (d % 8 == 0 or d == B)]
    for min_grid in (4, 2, 1):
        ok = [d for d in cands if d <= cap and B // d >= min_grid]
        if ok:
            return max(ok)
    return min(cands)        # smallest legal tile; may exceed budget for huge H


def backpropamine_forward(params, x, h_cur, hebb, *, tb=None):
    B, H = h_cur.shape
    hebb_itemsize = jnp.dtype(hebb.dtype).itemsize

    phys_vmem = _vmem_capacity_bytes()
    budget = int(0.70 * phys_vmem)
    per_tb, fixed = _vmem_model(H, hebb_itemsize)
    if tb is None:
        tb = _choose_tb(B, H, hebb_itemsize, budget)
    assert B % tb == 0, f"batch {B} must be divisible by batch tile {tb}"

    # Request exactly what the chosen blocks need, never above ~85% of the
    # per-core physical VMEM (64 MiB on v7x, 128 MiB on v5e/v6e).
    need = fixed + per_tb * tb
    vmem_limit = int(min(max(need, 16 * 2**20), int(0.85 * phys_vmem)))

    # ---- hoisted batch-shared MXU work (full-batch XLA matmuls) ----
    pre = x @ params["wi2h"] + params["bi2h"] + h_cur @ params["w"]   # (B, H)
    h_col = h_cur[:, :, None]                                          # (B, H, 1)

    const2 = lambda b: (0, 0)
    in_specs = [
        pl.BlockSpec((tb, H), lambda b: (b, 0)),            # pre
        pl.BlockSpec((tb, H, 1), lambda b: (b, 0, 0)),      # h_cur as columns
        pl.BlockSpec((tb, H, H), lambda b: (b, 0, 0)),      # hebb (f32 or bf16)
        # Constant-index weights: only DMA'd once (block index never changes).
        pl.BlockSpec((H, H), const2),                       # alpha
        pl.BlockSpec((1, H), const2),                       # wh2mod
        pl.BlockSpec(memory_space=pltpu.MemorySpace.SMEM),  # bh2mod scalar -> SMEM
        pl.BlockSpec((1, H), const2),                       # wmf
        pl.BlockSpec((1, H), const2),                       # bmf
    ]
    out_specs = [
        pl.BlockSpec((tb, H), lambda b: (b, 0)),            # h_next
        pl.BlockSpec((tb, H, H), lambda b: (b, 0, 0)),      # hebb_next (aliased onto hebb)
    ]

    cost = pl.CostEstimate(
        flops=8 * B * H * H,
        transcendentals=B * (H + 1),
        bytes_accessed=2 * B * H * H * hebb_itemsize + 4 * (3 * B * H + H * H + 4 * H + B),
    )

    h_next, hebb_next = pl.pallas_call(
        _bprnn_kernel,
        grid_spec=pltpu.PrefetchScalarGridSpec(
            num_scalar_prefetch=0,
            grid=(B // tb,),
            in_specs=in_specs,
            out_specs=out_specs,
        ),
        out_shape=(
            jax.ShapeDtypeStruct((B, H), jnp.float32),
            jax.ShapeDtypeStruct((B, H, H), hebb.dtype),
        ),
        # hebb (input 2) is updated in place into hebb_next (output 1).
        # NOTE: callers that also donate hebb must not reuse their buffer.
        input_output_aliases={2: 1},
        cost_estimate=cost,
        compiler_params=pltpu.CompilerParams(
            dimension_semantics=("parallel",),
            vmem_limit_bytes=vmem_limit,
        ),
    )(pre, h_col, hebb,
      params["alpha"], params["wh2mod"], params["bh2mod"],
      params["wmf"], params["bmf"])

    # Output head hoisted out of the kernel: full-batch, lane-dense XLA matmul.
    out = h_next @ params["wh2o"] + params["bh2o"]
    return out, h_next, hebb_next


def ref_forward(params, x, h_cur, hebb):
    """Pure-JAX reference matching the PyTorch semantics (f32 throughout)."""
    pre = x @ params["wi2h"] + params["bi2h"]
    w_plastic = params["w"][None] + params["alpha"][None] * hebb
    rec = jnp.einsum("bi,bij->bj", h_cur, w_plastic)
    h_next = jnp.tanh(pre + rec)
    out = h_next @ params["wh2o"] + params["bh2o"]
    eta = jnp.tanh(jnp.sum(h_next * params["wh2mod"], axis=-1, keepdims=True)
                   + params["bh2mod"])                              # (B, 1)
    myeta = eta * params["wmf"] + params["bmf"]                     # (B, H)
    delta = h_cur[:, :, None] * (myeta * h_next)[:, None, :]
    hebb_next = jnp.clip(hebb + delta, -2.0, 2.0)
    return out, h_next, hebb_next


def init_params(key, isize, hsize, osize):
    ks = jax.random.split(key, 10)
    u = lambda k, shape, bound: jax.random.uniform(k, shape, jnp.float32, -bound, bound)
    return {
        # i2h: Linear(isize, hsize) -> stored transposed (isize, hsize)
        "wi2h": u(ks[0], (isize, hsize), 1.0 / jnp.sqrt(isize)),
        "bi2h": u(ks[1], (1, hsize), 1.0 / jnp.sqrt(isize)),
        # fixed + plastic recurrent weights: 0.001 * rand(hsize, hsize)
        "w": 0.001 * jax.random.uniform(ks[2], (hsize, hsize), jnp.float32),
        "alpha": 0.001 * jax.random.uniform(ks[3], (hsize, hsize), jnp.float32),
        # h2mod: Linear(hsize, 1) -> stored as row (1, hsize) + scalar bias (1, 1)
        "wh2mod": u(ks[4], (1, hsize), 1.0 / jnp.sqrt(hsize)),
        "bh2mod": u(ks[5], (1, 1), 1.0 / jnp.sqrt(hsize)),
        # modfanout: Linear(1, hsize) -> (1, hsize) weight + (1, hsize) bias
        "wmf": u(ks[6], (1, hsize), 1.0),
        "bmf": u(ks[7], (1, hsize), 1.0),
        # h2o: Linear(hsize, osize) -> stored transposed (hsize, osize)
        "wh2o": u(ks[8], (hsize, osize), 1.0 / jnp.sqrt(hsize)),
        "bh2o": u(ks[9], (1, osize), 1.0 / jnp.sqrt(hsize)),
    }


if __name__ == "__main__":
    # Full-f32 matmul precision so the XLA-hoisted matmuls compare tightly
    # against the pure-JAX reference.
    jax.config.update("jax_default_matmul_precision", "highest")

    # H is a multiple of 128 so the (tb, H, H) hebb blocks are lane-dense
    # (unmasked stores, no VMEM padding).  tb is auto-derived from VMEM.
    B, ISIZE, HSIZE, OSIZE = 32, 16, 128, 8

    key = jax.random.PRNGKey(0)
    kp, kx, kh, khebb = jax.random.split(key, 4)
    params = init_params(kp, ISIZE, HSIZE, OSIZE)

    x = jax.random.normal(kx, (B, ISIZE), jnp.float32)
    h_cur = jax.random.normal(kh, (B, HSIZE), jnp.float32)
    hebb = 0.1 * jax.random.normal(khebb, (B, HSIZE, HSIZE), jnp.float32)

    # Build the bf16 state and the reference BEFORE the kernel calls: hebb is
    # donated (in-place update) and invalid afterwards.
    hebb_bf16 = hebb.astype(jnp.bfloat16)
    out_r, h_next_r, hebb_next_r = ref_forward(params, x, h_cur, hebb)

    fwd = jax.jit(backpropamine_forward, static_argnames=("tb",),
                  donate_argnums=(3,))

    # --- exact f32 plastic state (matches the PyTorch module bit-for-bit path)
    out, h_next, hebb_next = jax.block_until_ready(fwd(params, x, h_cur, hebb))
    assert jnp.allclose(out, out_r, atol=1e-5, rtol=1e-5)
    assert jnp.allclose(h_next, h_next_r, atol=1e-5, rtol=1e-5)
    assert jnp.allclose(hebb_next, hebb_next_r, atol=1e-5, rtol=1e-5)

    # --- bf16 plastic state (halves dominant HBM traffic & VMEM; compute stays f32)
    out_b, h_next_b, hebb_next_b = jax.block_until_ready(
        fwd(params, x, h_cur, hebb_bf16))
    assert hebb_next_b.dtype == jnp.bfloat16
    assert jnp.allclose(out_b, out_r, atol=1e-3, rtol=1e-3)
    assert jnp.allclose(h_next_b, h_next_r, atol=1e-3, rtol=1e-3)
    assert jnp.allclose(hebb_next_b.astype(jnp.float32), hebb_next_r,
                        atol=1e-2, rtol=0)

    print("KERNEL_OK")
</pallas_src>

<mosaic_0001>
module attributes {stable_mosaic.version = 11 : i64} {
  func.func @_bprnn_kernel(%arg0: i32, %arg1: memref<8x128xf32, #tpu.memory_space<vmem>>, %arg2: memref<8x128x1xf32, #tpu.memory_space<vmem>>, %arg3: memref<8x128x128xf32, #tpu.memory_space<vmem>>, %arg4: memref<128x128xf32, #tpu.memory_space<vmem>>, %arg5: memref<1x128xf32, #tpu.memory_space<vmem>>, %arg6: memref<1x1xf32, #tpu.memory_space<smem>>, %arg7: memref<1x128xf32, #tpu.memory_space<vmem>>, %arg8: memref<1x128xf32, #tpu.memory_space<vmem>>, %arg9: memref<8x128xf32, #tpu.memory_space<vmem>>, %arg10: memref<8x128x128xf32, #tpu.memory_space<vmem>>) attributes {dimension_semantics = [#tpu.dimension_semantics<parallel>], iteration_bounds = array<i64: 4>, scalar_prefetch = 0 : i64, scratch_operands = 0 : i64, tpu.core_type = #tpu.core_type<tc>, window_params = [{transform_indices = @transform_0, window_bounds = array<i64: 8, 128>}, {transform_indices = @transform_1, window_bounds = array<i64: 8, 128, 1>}, {transform_indices = @transform_2, window_bounds = array<i64: 8, 128, 128>}, {pipeline_mode = #tpu.pipeline_mode<synchronous>, transform_indices = @transform_3, window_bounds = array<i64: 128, 128>}, {pipeline_mode = #tpu.pipeline_mode<synchronous>, transform_indices = @transform_4, window_bounds = array<i64: 1, 128>}, {transform_indices = @transform_5, window_bounds = array<i64: 1, 1>}, {pipeline_mode = #tpu.pipeline_mode<synchronous>, transform_indices = @transform_6, window_bounds = array<i64: 1, 128>}, {pipeline_mode = #tpu.pipeline_mode<synchronous>, transform_indices = @transform_7, window_bounds = array<i64: 1, 128>}, {transform_indices = @transform_8, window_bounds = array<i64: 8, 128>}, {transform_indices = @transform_9, window_bounds = array<i64: 8, 128, 128>}]} {
    %c0 = arith.constant 0 : index
    %c0_0 = arith.constant 0 : index
    %0 = vector.load %arg1[%c0, %c0_0] : memref<8x128xf32, #tpu.memory_space<vmem>>, vector<8x128xf32>
    %c0_1 = arith.constant 0 : index
    %c0_2 = arith.constant 0 : index
    %c0_3 = arith.constant 0 : index
    %1 = vector.load %arg2[%c0_1, %c0_2, %c0_3] : memref<8x128x1xf32, #tpu.memory_space<vmem>>, vector<8x128x1xf32>
    %c0_4 = arith.constant 0 : index
    %c0_5 = arith.constant 0 : index
    %c0_6 = arith.constant 0 : index
    %2 = vector.load %arg3[%c0_4, %c0_5, %c0_6] : memref<8x128x128xf32, #tpu.memory_space<vmem>>, vector<8x128x128xf32>
    %c0_7 = arith.constant 0 : index
    %c0_8 = arith.constant 0 : index
    %3 = vector.load %arg4[%c0_7, %c0_8] : memref<128x128xf32, #tpu.memory_space<vmem>>, vector<128x128xf32>
    %4 = vector.shape_cast %3 : vector<128x128xf32> to vector<1x128x128xf32>
    %5 = vector.broadcast %4 : vector<1x128x128xf32> to vector<8x128x128xf32>
    %6 = arith.mulf %2, %5 : vector<8x128x128xf32>
    %7 = vector.broadcast %1 : vector<8x128x1xf32> to vector<8x128x128xf32>
    %8 = arith.mulf %7, %6 : vector<8x128x128xf32>
    %cst = arith.constant dense<0.000000e+00> : vector<8x128xf32>
    %9 = vector.multi_reduction <add>, %8, %cst [1] : vector<8x128x128xf32> to vector<8x128xf32>
    %10 = arith.addf %0, %9 : vector<8x128xf32>
    %11 = math.tanh %10 : vector<8x128xf32>
    %c0_9 = arith.constant 0 : index
    %c0_10 = arith.constant 0 : index
    %12 = vector.load %arg9[%c0_9, %c0_10] : memref<8x128xf32, #tpu.memory_space<vmem>>, vector<8x128xf32>
    tpu.vector_store %arg9[%c0_9, %c0_10], %11 {strides = array<i32>} : memref<8x128xf32, #tpu.memory_space<vmem>>, vector<8x128xf32>,
    %c0_11 = arith.constant 0 : index
    %c0_12 = arith.constant 0 : index
    %13 = vector.load %arg5[%c0_11, %c0_12] : memref<1x128xf32, #tpu.memory_space<vmem>>, vector<1x128xf32>
    %14 = vector.broadcast %13 : vector<1x128xf32> to vector<8x128xf32>
    %15 = arith.mulf %11, %14 : vector<8x128xf32>
    %cst_13 = arith.constant dense<0.000000e+00> : vector<8xf32>
    %16 = vector.multi_reduction <add>, %15, %cst_13 [1] : vector<8x128xf32> to vector<8xf32>
    %17 = vector.shape_cast %16 : vector<8xf32> to vector<8x1xf32>
    %c0_14 = arith.constant 0 : index
    %c0_15 = arith.constant 0 : index
    %18 = memref.load %arg6[%c0_14, %c0_15] : memref<1x1xf32, #tpu.memory_space<smem>>
    %19 = vector.broadcast %18 : f32 to vector<8x1xf32>
    %20 = arith.addf %17, %19 : vector<8x1xf32>
    %21 = math.tanh %20 : vector<8x1xf32>
    %c0_16 = arith.constant 0 : index
    %c0_17 = arith.constant 0 : index
    %22 = vector.load %arg7[%c0_16, %c0_17] : memref<1x128xf32, #tpu.memory_space<vmem>>, vector<1x128xf32>
    %23 = vector.broadcast %21 : vector<8x1xf32> to vector<8x128xf32>
    %24 = vector.broadcast %22 : vector<1x128xf32> to vector<8x128xf32>
    %25 = arith.mulf %23, %24 : vector<8x128xf32>
    %c0_18 = arith.constant 0 : index
    %c0_19 = arith.constant 0 : index
    %26 = vector.load %arg8[%c0_18, %c0_19] : memref<1x128xf32, #tpu.memory_space<vmem>>, vector<1x128xf32>
    %27 = vector.broadcast %26 : vector<1x128xf32> to vector<8x128xf32>
    %28 = arith.addf %25, %27 : vector<8x128xf32>
    %29 = arith.mulf %28, %11 : vector<8x128xf32>
    %30 = vector.shape_cast %29 : vector<8x128xf32> to vector<8x1x128xf32>
    %31 = vector.broadcast %1 : vector<8x128x1xf32> to vector<8x128x128xf32>
    %32 = vector.broadcast %30 : vector<8x1x128xf32> to vector<8x128x128xf32>
    %33 = arith.mulf %31, %32 : vector<8x128x128xf32>
    %34 = arith.addf %2, %33 : vector<8x128x128xf32>
    %cst_20 = arith.constant -2.000000e+00 : f32
    %cst_21 = arith.constant 2.000000e+00 : f32
    %35 = vector.broadcast %cst_20 : f32 to vector<8x128x128xf32>
    %36 = arith.maximumf %35, %34 : vector<8x128x128xf32>
    %37 = vector.broadcast %cst_21 : f32 to vector<8x128x128xf32>
    %38 = arith.minimumf %37, %36 : vector<8x128x128xf32>
    %c0_22 = arith.constant 0 : index
    %c0_23 = arith.constant 0 : index
    %c0_24 = arith.constant 0 : index
    %39 = vector.load %arg10[%c0_22, %c0_23, %c0_24] : memref<8x128x128xf32, #tpu.memory_space<vmem>>, vector<8x128x128xf32>
    tpu.vector_store %arg10[%c0_22, %c0_23, %c0_24], %38 {strides = array<i32>} : memref<8x128x128xf32, #tpu.memory_space<vmem>>, vector<8x128x128xf32>,
    return
  }
  func.func @transform_0(%arg0: i32) -> (i32, i32) {
    %c0_i32 = arith.constant 0 : i32
    %c0_i32_0 = arith.constant 0 : i32
    return %arg0, %c0_i32 : i32, i32
  }
  func.func @transform_1(%arg0: i32) -> (i32, i32, i32) {
    %c0_i32 = arith.constant 0 : i32
    %c0_i32_0 = arith.constant 0 : i32
    %c0_i32_1 = arith.constant 0 : i32
    return %arg0, %c0_i32, %c0_i32_0 : i32, i32, i32
  }
  func.func @transform_2(%arg0: i32) -> (i32, i32, i32) {
    %c0_i32 = arith.constant 0 : i32
    %c0_i32_0 = arith.constant 0 : i32
    %c0_i32_1 = arith.constant 0 : i32
    return %arg0, %c0_i32, %c0_i32_0 : i32, i32, i32
  }
  func.func @transform_3(%arg0: i32) -> (i32, i32) {
    %c0_i32 = arith.constant 0 : i32
    %c0_i32_0 = arith.constant 0 : i32
    %c0_i32_1 = arith.constant 0 : i32
    return %c0_i32, %c0_i32_0 : i32, i32
  }
  func.func @transform_4(%arg0: i32) -> (i32, i32) {
    %c0_i32 = arith.constant 0 : i32
    %c0_i32_0 = arith.constant 0 : i32
    %c0_i32_1 = arith.constant 0 : i32
    return %c0_i32, %c0_i32_0 : i32, i32
  }
  func.func @transform_5(%arg0: i32) -> (i32, i32) {
    %c0_i32 = arith.constant 0 : i32
    %c0_i32_0 = arith.constant 0 : i32
    %c0_i32_1 = arith.constant 0 : i32
    return %c0_i32, %c0_i32_0 : i32, i32
  }
  func.func @transform_6(%arg0: i32) -> (i32, i32) {
    %c0_i32 = arith.constant 0 : i32
    %c0_i32_0 = arith.constant 0 : i32
    %c0_i32_1 = arith.constant 0 : i32
    return %c0_i32, %c0_i32_0 : i32, i32
  }
  func.func @transform_7(%arg0: i32) -> (i32, i32) {
    %c0_i32 = arith.constant 0 : i32
    %c0_i32_0 = arith.constant 0 : i32
    %c0_i32_1 = arith.constant 0 : i32
    return %c0_i32, %c0_i32_0 : i32, i32
  }
  func.func @transform_8(%arg0: i32) -> (i32, i32) {
    %c0_i32 = arith.constant 0 : i32
    %c0_i32_0 = arith.constant 0 : i32
    return %arg0, %c0_i32 : i32, i32
  }
  func.func @transform_9(%arg0: i32) -> (i32, i32, i32) {
    %c0_i32 = arith.constant 0 : i32
    %c0_i32_0 = arith.constant 0 : i32
    %c0_i32_1 = arith.constant 0 : i32
    return %arg0, %c0_i32, %c0_i32_0 : i32, i32, i32
  }
}

</mosaic_0001>

<bundles_post_ra>
// kernel: backpropamine_forward.1
= control target key start
LH: loop header
LB: loop body
LE: loop exit
PB: predicated region body
PF: predicated region fallthrough
CT: control target
= control target key end

     0   :  { %s2796_s11 = smov 0   ;;  %s4601_s0 = inlined_call_operand.vmem [shape: f32[32,128], index: 0, kind: input, shape index: {}]   ;;  %s4602_s1 = inlined_call_operand.vmem [shape: f32[32,128,1], index: 1, kind: input, shape index: {}]   ;;  %s4603_s2 = inlined_call_operand.vmem [shape: f32[32,128,128], index: 2, kind: input, shape index: {}, may-alias: {2,9}]   ;;  %s4604_s3 = inlined_call_operand.vmem [shape: f32[128,128], index: 3, kind: input, shape index: {}]   ;;  %s4605_s4 = inlined_call_operand.vmem [shape: f32[1,128], index: 4, kind: input, shape index: {}]   ;;  %s4606_s5 = inlined_call_operand.<no memory space> [shape: f32[1,1], index: 5, kind: input, shape index: {}]   ;;  %s4607_s6 = inlined_call_operand.vmem [shape: f32[1,128], index: 6, kind: input, shape index: {}]   ;;  %s4608_s7 = inlined_call_operand.vmem [shape: f32[1,128], index: 7, kind: input, shape index: {}]   ;;  %s4609_s8 = inlined_call_operand.vmem [shape: f32[32,128], index: 8, kind: output, shape index: {0}]   ;;  %s4610_s9 = inlined_call_operand.vmem [shape: f32[32,128,128], index: 9, kind: output, shape index: {1}, may-alias: {2,9}]  }
   0x1   :  { %15 = sst [smem:[#allocation2]] %s4606_s5 }
   0x2 LB: > { %s2802_s12 = sadd.s32 4294967295, %s2740_s11   ;;  %p2561_p0 = scmp.ge.s32.totalorder %s2740_s11, 1  ;;  %s2740_s11 = sphi %s2796_s11, %s21_s11  }
   0x3   : > { %p314_p1 = scmp.lt.s32.totalorder %s2740_s11, 5 }
   0x5   : > { %p315_p2 = pnand %p2561_p0, %p314_p1 }
   0x7   : > { %318 = sbr.rel (%p315_p2) target bundleno = 794 (0x31a), region = 52 }
   0xc   : > { %s2563_s13 = sshll.u32 %s2802_s12, 3  ;;  %v2742_v0 = vmov 0   ;;  %p366_p4 = scmp.lt.s32.totalorder %s2802_s12, 3  ;;  %vm1740_vm0 = vcmask 1041409   ;;  %vm1742_vm1 = vcmask 1042434   ;;  %vm1744_vm2 = vcmask 1043459  }
   0xd   : > { %2717 = vset.pattern.permute.xlu2 %v2742_v0  ;;  %2716 = vset.pattern.permute.xlu1 %v2742_v0  ;;  %p371_p3 = scmp.lt.s32.totalorder %s2563_s13, 31  ;;  %vm1746_vm3 = vcmask 1044484   ;;  %vm1748_vm4 = vcmask 1045509   ;;  %vm1750_vm5 = vcmask 1046534   ;;  %vm1752_vm6 = vcmask 1047559   ;;  %s1765_s24 = sld [smem:[#allocation2]] }
   0xe   : > { %2715 = vset.pattern.permute.xlu0 %v2742_v0  ;;  %s5345_s12 = smov (!%p366_p4, %s2802_s12), 3 }
   0xf   : > { %s5343_s13 = smov (!%p371_p3, %s2563_s13), 31  ;;  %s2562_s15 = sshll.u32 %s5345_s12, 3 }
  0x10   : > { %s2807_s5 = sshll.u32 %s5343_s13, 7  ;;  %s369_s18 = scalar_lea.vmem %s4601_s0, %s2562_s15 }
  0x11   : > { %s2813_s16 = scalar_lea.vmem %s4602_s1, %s2807_s5  ;;  %s3103_s19 = scalar_lea.vmem %s4603_s2, %s2807_s5 }
  0x12   : > { %v400_v1 = vld [vmem:[%s2813_s16 + $0x20] sm:$0xff]  ;;  %v398_v2 = vld [vmem:[%s2813_s16 + $0x10] sm:$0xff]  ;;  %v401_v4 = vld [vmem:[%s2813_s16 + $0x28] sm:$0xff]  ;;  %s387_s23 = scalar_lea.vmem %s4609_s8, %s2562_s15  ;;  %s4094_s10 = scalar_lea.vmem %s4610_s9, %s2807_s5 }
  0x13   : > { %v396_v3 = vld [vmem:[%s2813_s16] sm:$0xff]  ;;  %818 = vperm.xlu2 %2717, %v400_v1   ;;  %808 = vperm.xlu1 %2716, %v398_v2   ;;  %v399_v5 = vld [vmem:[%s2813_s16 + $0x18] sm:$0xff]  ;;  %v397_v6 = vld [vmem:[%s2813_s16 + $0x8] sm:$0xff] }
  0x14   : > { %798 = vperm.xlu0 %2715, %v396_v3   ;;  %v404_v7 = vld [vmem:[%s2813_s16 + $0x40] sm:$0xff]  ;;  %v403_v8 = vld [vmem:[%s2813_s16 + $0x38] sm:$0xff]  ;;  %v402_v9 = vld [vmem:[%s2813_s16 + $0x30] sm:$0xff] }
  0x15   : > { %v407_v10 = vld [vmem:[%s2813_s16 + $0x58] sm:$0xff]  ;;  %v406_v11 = vld [vmem:[%s2813_s16 + $0x50] sm:$0xff]  ;;  %v405_v12 = vld [vmem:[%s2813_s16 + $0x48] sm:$0xff] }
  0x16   : > { %v410_v13 = vld [vmem:[%s2813_s16 + $0x70] sm:$0xff]  ;;  %v409_v14 = vld [vmem:[%s2813_s16 + $0x68] sm:$0xff]  ;;  %v408_v15 = vld [vmem:[%s2813_s16 + $0x60] sm:$0xff] }
  0x17   : > { %v413_v16 = vld [vmem:[%s2813_s16 + $0x88] sm:$0xff]  ;;  %v412_v17 = vld [vmem:[%s2813_s16 + $0x80] sm:$0xff]  ;;  %v411_v18 = vld [vmem:[%s2813_s16 + $0x78] sm:$0xff] }
  0x18   : > { %v416_v19 = vld [vmem:[%s2813_s16 + $0xa0] sm:$0xff]  ;;  %v415_v20 = vld [vmem:[%s2813_s16 + $0x98] sm:$0xff]  ;;  %v414_v21 = vld [vmem:[%s2813_s16 + $0x90] sm:$0xff] }
  0x19   : > { %v419_v22 = vld [vmem:[%s2813_s16 + $0xb8] sm:$0xff]  ;;  %v418_v23 = vld [vmem:[%s2813_s16 + $0xb0] sm:$0xff]  ;;  %v417_v24 = vld [vmem:[%s2813_s16 + $0xa8] sm:$0xff] }
  0x1a   : > { %v422_v25 = vld [vmem:[%s2813_s16 + $0xd0] sm:$0xff]  ;;  %v421_v26 = vld [vmem:[%s2813_s16 + $0xc8] sm:$0xff]  ;;  %v420_v27 = vld [vmem:[%s2813_s16 + $0xc0] sm:$0xff] }
  0x1b   : > { %823 = vperm.xlu2 %2717, %v401_v4   ;;  %813 = vperm.xlu1 %2716, %v399_v5   ;;  %v425_v28 = vld [vmem:[%s2813_s16 + $0xe8] sm:$0xff]  ;;  %v424_v29 = vld [vmem:[%s2813_s16 + $0xe0] sm:$0xff]  ;;  %v423_v30 = vld [vmem:[%s2813_s16 + $0xd8] sm:$0xff] }
  0x1c   : > { %803 = vperm.xlu0 %2715, %v397_v6   ;;  %v428_v31 = vld [vmem:[%s2813_s16 + $0x100] sm:$0xff]  ;;  %v427_v32 = vld [vmem:[%s2813_s16 + $0xf8] sm:$0xff]  ;;  %v426_v33 = vld [vmem:[%s2813_s16 + $0xf0] sm:$0xff] }
  0x1d   : > { %v431_v34 = vld [vmem:[%s2813_s16 + $0x118] sm:$0xff]  ;;  %v430_v35 = vld [vmem:[%s2813_s16 + $0x110] sm:$0xff]  ;;  %v429_v36 = vld [vmem:[%s2813_s16 + $0x108] sm:$0xff] }
  0x1e   : > { %v434_v38 = vld [vmem:[%s2813_s16 + $0x130] sm:$0xff]  ;;  %v433_v39 = vld [vmem:[%s2813_s16 + $0x128] sm:$0xff]  ;;  %v432_v40 = vld [vmem:[%s2813_s16 + $0x120] sm:$0xff] }
  0x1f   : > { %v437_v42 = vld [vmem:[%s2813_s16 + $0x148] sm:$0xff]  ;;  %v436_v43 = vld [vmem:[%s2813_s16 + $0x140] sm:$0xff]  ;;  %v435_v44 = vld [vmem:[%s2813_s16 + $0x138] sm:$0xff] }
  0x20   : > { %v440_v46 = vld [vmem:[%s2813_s16 + $0x160] sm:$0xff]  ;;  %v439_v47 = vld [vmem:[%s2813_s16 + $0x158] sm:$0xff]  ;;  %v438_v48 = vld [vmem:[%s2813_s16 + $0x150] sm:$0xff] }
  0x21   : > { %v443_v52 = vld [vmem:[%s2813_s16 + $0x178] sm:$0xff]  ;;  %v442_v53 = vld [vmem:[%s2813_s16 + $0x170] sm:$0xff]  ;;  %v441_v54 = vld [vmem:[%s2813_s16 + $0x168] sm:$0xff] }
  0x22   : > { %v446_v58 = vld [vmem:[%s2813_s16 + $0x190] sm:$0xff]  ;;  %v445_v59 = vld [vmem:[%s2813_s16 + $0x188] sm:$0xff]  ;;  %v444_v60 = vld [vmem:[%s2813_s16 + $0x180] sm:$0xff] }
  0x23   : > { %838 = vperm.xlu2 %2717, %v404_v7   ;;  %833 = vperm.xlu1 %2716, %v403_v8   ;;  %v449_v0 = vld [vmem:[%s2813_s16 + $0x1a8] sm:$0xff]  ;;  %v448_v1 = vld [vmem:[%s2813_s16 + $0x1a0] sm:$0xff]  ;;  %v447_v2 = vld [vmem:[%s2813_s16 + $0x198] sm:$0xff] }
  0x24   : > { %828 = vperm.xlu0 %2715, %v402_v9   ;;  %v452_v6 = vld [vmem:[%s2813_s16 + $0x1c0] sm:$0xff]  ;;  %v451_v7 = vld [vmem:[%s2813_s16 + $0x1b8] sm:$0xff]  ;;  %v450_v8 = vld [vmem:[%s2813_s16 + $0x1b0] sm:$0xff] }
  0x2b   : > { %853 = vperm.xlu2 %2717, %v407_v10   ;;  %848 = vperm.xlu1 %2716, %v406_v11  }
  0x2c   : > { %843 = vperm.xlu0 %2715, %v405_v12   ;;  %v455_v12 = vld [vmem:[%s2813_s16 + $0x1d8] sm:$0xff] }
  0x33   : > { %868 = vperm.xlu2 %2717, %v410_v13   ;;  %863 = vperm.xlu1 %2716, %v409_v14   ;;  %v454_v13 = vld [vmem:[%s2813_s16 + $0x1d0] sm:$0xff]  ;;  %v453_v14 = vld [vmem:[%s2813_s16 + $0x1c8] sm:$0xff] }
  0x34   : > { %858 = vperm.xlu0 %2715, %v408_v15  }
  0x3b   : > { %883 = vperm.xlu2 %2717, %v413_v16   ;;  %878 = vperm.xlu1 %2716, %v412_v17  }
  0x3c   : > { %873 = vperm.xlu0 %2715, %v411_v18   ;;  %v458_v18 = vld [vmem:[%s2813_s16 + $0x1f0] sm:$0xff] }
  0x43   : > { %898 = vperm.xlu2 %2717, %v416_v19   ;;  %893 = vperm.xlu1 %2716, %v415_v20   ;;  %v457_v19 = vld [vmem:[%s2813_s16 + $0x1e8] sm:$0xff]  ;;  %v456_v20 = vld [vmem:[%s2813_s16 + $0x1e0] sm:$0xff] }
  0x44   : > { %888 = vperm.xlu0 %2715, %v414_v21  }
  0x4b   : > { %913 = vperm.xlu2 %2717, %v419_v22   ;;  %908 = vperm.xlu1 %2716, %v418_v23  }
  0x4c   : > { %903 = vperm.xlu0 %2715, %v417_v24   ;;  %v461_v24 = vld [vmem:[%s2813_s16 + $0x208] sm:$0xff] }
  0x53   : > { %928 = vperm.xlu2 %2717, %v422_v25   ;;  %923 = vperm.xlu1 %2716, %v421_v26   ;;  %v460_v25 = vld [vmem:[%s2813_s16 + $0x200] sm:$0xff]  ;;  %v459_v26 = vld [vmem:[%s2813_s16 + $0x1f8] sm:$0xff] }
  0x54   : > { %918 = vperm.xlu0 %2715, %v420_v27  }
  0x5b   : > { %943 = vperm.xlu2 %2717, %v425_v28   ;;  %938 = vperm.xlu1 %2716, %v424_v29  }
  0x5c   : > { %933 = vperm.xlu0 %2715, %v423_v30   ;;  %v464_v30 = vld [vmem:[%s2813_s16 + $0x220] sm:$0xff] }
  0x63   : > { %958 = vperm.xlu2 %2717, %v428_v31   ;;  %953 = vperm.xlu1 %2716, %v427_v32   ;;  %v463_v31 = vld [vmem:[%s2813_s16 + $0x218] sm:$0xff]  ;;  %v462_v32 = vld [vmem:[%s2813_s16 + $0x210] sm:$0xff] }
  0x64   : > { %948 = vperm.xlu0 %2715, %v426_v33  }
  0x6b   : > { %973 = vperm.xlu2 %2717, %v431_v34   ;;  %968 = vperm.xlu1 %2716, %v430_v35  }
  0x6c   : > { %963 = vperm.xlu0 %2715, %v429_v36   ;;  %v467_v36 = vld [vmem:[%s2813_s16 + $0x238] sm:$0xff] }
  0x6d   : > { %v2851_v37 = vpop.permute.xlu2 %818 }
  0x6e   : > { %4842 = vst [vmem:[#allocation3_spill] sm:$0xff] %v2851_v37 }
  0x73   : > { %988 = vperm.xlu2 %2717, %v434_v38   ;;  %983 = vperm.xlu1 %2716, %v433_v39   ;;  %v466_v38 = vld [vmem:[%s2813_s16 + $0x230] sm:$0xff]  ;;  %v465_v39 = vld [vmem:[%s2813_s16 + $0x228] sm:$0xff] }
  0x74   : > { %978 = vperm.xlu0 %2715, %v432_v40  }
  0x75   : > { %v2856_v41 = vpop.permute.xlu2 %823 }
  0x76   : > { %4843 = vst [vmem:[#allocation4_spill] sm:$0xff] %v2856_v41 }
  0x7b   : > { %1003 = vperm.xlu2 %2717, %v437_v42   ;;  %998 = vperm.xlu1 %2716, %v436_v43  }
  0x7c   : > { %993 = vperm.xlu0 %2715, %v435_v44   ;;  %v470_v44 = vld [vmem:[%s2813_s16 + $0x250] sm:$0xff] }
  0x7d   : > { %v2861_v45 = vpop.permute.xlu2 %838 }
  0x7e   : > { %4844 = vst [vmem:[#allocation5_spill] sm:$0xff] %v2861_v45 }
  0x83   : > { %1018 = vperm.xlu2 %2717, %v440_v46   ;;  %1013 = vperm.xlu1 %2716, %v439_v47   ;;  %v469_v46 = vld [vmem:[%s2813_s16 + $0x248] sm:$0xff]  ;;  %v468_v47 = vld [vmem:[%s2813_s16 + $0x240] sm:$0xff] }
  0x84   : > { %1008 = vperm.xlu0 %2715, %v438_v48  }
  0x85   : > { %v2866_v49 = vpop.permute.xlu2 %853  ;;  %v2868_v50 = vpop.permute.xlu1 %808 }
  0x86   : > { %4845 = vst [vmem:[#allocation6_spill] sm:$0xff] %v2866_v49  ;;  %v2870_v51 = vpop.permute.xlu0 %798 }
  0x87   : > { %4846 = vst [vmem:[#allocation7_spill] sm:$0xff] %v2868_v50 }
  0x88   : > { %4847 = vst [vmem:[#allocation8_spill] sm:$0xff] %v2870_v51 }
  0x8b   : > { %1033 = vperm.xlu2 %2717, %v443_v52   ;;  %1028 = vperm.xlu1 %2716, %v442_v53  }
  0x8c   : > { %1023 = vperm.xlu0 %2715, %v441_v54   ;;  %v473_v54 = vld [vmem:[%s2813_s16 + $0x268] sm:$0xff] }
  0x8d   : > { %v2875_v55 = vpop.permute.xlu2 %868  ;;  %v2877_v56 = vpop.permute.xlu1 %813 }
  0x8e   : > { %4848 = vst [vmem:[#allocation9_spill] sm:$0xff] %v2875_v55  ;;  %v2879_v57 = vpop.permute.xlu0 %803 }
  0x8f   : > { %4849 = vst [vmem:[#allocation10_spill] sm:$0xff] %v2877_v56 }
  0x90   : > { %4850 = vst [vmem:[#allocation11_spill] sm:$0xff] %v2879_v57 }
  0x93   : > { %1048 = vperm.xlu2 %2717, %v446_v58   ;;  %1043 = vperm.xlu1 %2716, %v445_v59   ;;  %v472_v58 = vld [vmem:[%s2813_s16 + $0x260] sm:$0xff]  ;;  %v471_v59 = vld [vmem:[%s2813_s16 + $0x258] sm:$0xff] }
  0x94   : > { %1038 = vperm.xlu0 %2715, %v444_v60  }
  0x95   : > { %v2884_v61 = vpop.permute.xlu2 %883  ;;  %v2886_v62 = vpop.permute.xlu1 %833 }
  0x96   : > { %4851 = vst [vmem:[#allocation12_spill] sm:$0xff] %v2884_v61  ;;  %v2888_v63 = vpop.permute.xlu0 %828 }
  0x97   : > { %4852 = vst [vmem:[#allocation13_spill] sm:$0xff] %v2886_v62 }
  0x98   : > { %4853 = vst [vmem:[#allocation14_spill] sm:$0xff] %v2888_v63 }
  0x9b   : > { %1063 = vperm.xlu2 %2717, %v449_v0   ;;  %1058 = vperm.xlu1 %2716, %v448_v1  }
  0x9c   : > { %1053 = vperm.xlu0 %2715, %v447_v2   ;;  %v476_v2 = vld [vmem:[%s2813_s16 + $0x280] sm:$0xff] }
  0x9d   : > { %v2893_v3 = vpop.permute.xlu2 %898  ;;  %v2895_v4 = vpop.permute.xlu1 %848 }
  0x9e   : > { %4854 = vst [vmem:[#allocation15_spill] sm:$0xff] %v2893_v3  ;;  %v2897_v5 = vpop.permute.xlu0 %843 }
  0x9f   : > { %4855 = vst [vmem:[#allocation16_spill] sm:$0xff] %v2895_v4 }
  0xa0   : > { %4856 = vst [vmem:[#allocation17_spill] sm:$0xff] %v2897_v5 }
  0xa3   : > { %1078 = vperm.xlu2 %2717, %v452_v6   ;;  %1073 = vperm.xlu1 %2716, %v451_v7   ;;  %v475_v6 = vld [vmem:[%s2813_s16 + $0x278] sm:$0xff]  ;;  %v474_v7 = vld [vmem:[%s2813_s16 + $0x270] sm:$0xff] }
  0xa4   : > { %1068 = vperm.xlu0 %2715, %v450_v8  }
  0xa5   : > { %v2902_v9 = vpop.permute.xlu2 %913  ;;  %v2904_v10 = vpop.permute.xlu1 %863 }
  0xa6   : > { %4857 = vst [vmem:[#allocation18_spill] sm:$0xff] %v2902_v9  ;;  %v2906_v11 = vpop.permute.xlu0 %858 }
  0xa7   : > { %4858 = vst [vmem:[#allocation19_spill] sm:$0xff] %v2904_v10 }
  0xa8   : > { %4859 = vst [vmem:[#allocation20_spill] sm:$0xff] %v2906_v11 }
  0xab   : > { %1093 = vperm.xlu2 %2717, %v455_v12   ;;  %1088 = vperm.xlu1 %2716, %v454_v13  }
  0xac   : > { %1083 = vperm.xlu0 %2715, %v453_v14   ;;  %v479_v14 = vld [vmem:[%s2813_s16 + $0x298] sm:$0xff] }
  0xad   : > { %v2911_v15 = vpop.permute.xlu2 %928  ;;  %v2913_v16 = vpop.permute.xlu1 %878 }
  0xae   : > { %4860 = vst [vmem:[#allocation21_spill] sm:$0xff] %v2911_v15  ;;  %v2915_v17 = vpop.permute.xlu0 %873 }
  0xaf   : > { %4861 = vst [vmem:[#allocation22_spill] sm:$0xff] %v2913_v16 }
  0xb0   : > { %4862 = vst [vmem:[#allocation23_spill] sm:$0xff] %v2915_v17 }
  0xb3   : > { %1108 = vperm.xlu2 %2717, %v458_v18   ;;  %1103 = vperm.xlu1 %2716, %v457_v19   ;;  %v478_v18 = vld [vmem:[%s2813_s16 + $0x290] sm:$0xff]  ;;  %v477_v19 = vld [vmem:[%s2813_s16 + $0x288] sm:$0xff] }
  0xb4   : > { %1098 = vperm.xlu0 %2715, %v456_v20  }
  0xb5   : > { %v2920_v21 = vpop.permute.xlu2 %943  ;;  %v2922_v22 = vpop.permute.xlu1 %893 }
  0xb6   : > { %4863 = vst [vmem:[#allocation24_spill] sm:$0xff] %v2920_v21  ;;  %v2924_v23 = vpop.permute.xlu0 %888 }
  0xb7   : > { %4864 = vst [vmem:[#allocation25_spill] sm:$0xff] %v2922_v22 }
  0xb8   : > { %4865 = vst [vmem:[#allocation26_spill] sm:$0xff] %v2924_v23 }
  0xbb   : > { %1123 = vperm.xlu2 %2717, %v461_v24   ;;  %1118 = vperm.xlu1 %2716, %v460_v25  }
  0xbc   : > { %1113 = vperm.xlu0 %2715, %v459_v26   ;;  %v482_v26 = vld [vmem:[%s2813_s16 + $0x2b0] sm:$0xff] }
  0xbd   : > { %v2929_v27 = vpop.permute.xlu2 %958  ;;  %v2931_v28 = vpop.permute.xlu1 %908 }
  0xbe   : > { %4866 = vst [vmem:[#allocation27_spill] sm:$0xff] %v2929_v27  ;;  %v2933_v29 = vpop.permute.xlu0 %903 }
  0xbf   : > { %4867 = vst [vmem:[#allocation28_spill] sm:$0xff] %v2931_v28 }
  0xc0   : > { %4868 = vst [vmem:[#allocation29_spill] sm:$0xff] %v2933_v29 }
  0xc3   : > { %1138 = vperm.xlu2 %2717, %v464_v30   ;;  %1133 = vperm.xlu1 %2716, %v463_v31   ;;  %v481_v30 = vld [vmem:[%s2813_s16 + $0x2a8] sm:$0xff]  ;;  %v480_v31 = vld [vmem:[%s2813_s16 + $0x2a0] sm:$0xff] }
  0xc4   : > { %1128 = vperm.xlu0 %2715, %v462_v32  }
  0xc5   : > { %v2938_v33 = vpop.permute.xlu2 %973  ;;  %v2940_v34 = vpop.permute.xlu1 %923 }
  0xc6   : > { %4869 = vst [vmem:[#allocation30_spill] sm:$0xff] %v2938_v33  ;;  %v2942_v35 = vpop.permute.xlu0 %918 }
  0xc7   : > { %4870 = vst [vmem:[#allocation31_spill] sm:$0xff] %v2940_v34 }
  0xc8   : > { %4871 = vst [vmem:[#allocation32_spill] sm:$0xff] %v2942_v35 }
  0xcb   : > { %1153 = vperm.xlu2 %2717, %v467_v36   ;;  %1148 = vperm.xlu1 %2716, %v466_v38  }
  0xcc   : > { %1143 = vperm.xlu0 %2715, %v465_v39   ;;  %v485_v39 = vld [vmem:[%s2813_s16 + $0x2c8] sm:$0xff] }
  0xcd   : > { %v2947_v40 = vpop.permute.xlu2 %988  ;;  %v2949_v42 = vpop.permute.xlu1 %938 }
  0xce   : > { %4872 = vst [vmem:[#allocation33_spill] sm:$0xff] %v2947_v40  ;;  %v2951_v43 = vpop.permute.xlu0 %933 }
  0xcf   : > { %4873 = vst [vmem:[#allocation34_spill] sm:$0xff] %v2949_v42 }
  0xd0   : > { %4874 = vst [vmem:[#allocation35_spill] sm:$0xff] %v2951_v43 }
  0xd3   : > { %1168 = vperm.xlu2 %2717, %v470_v44   ;;  %1163 = vperm.xlu1 %2716, %v469_v46   ;;  %v484_v44 = vld [vmem:[%s2813_s16 + $0x2c0] sm:$0xff]  ;;  %v483_v46 = vld [vmem:[%s2813_s16 + $0x2b8] sm:$0xff] }
  0xd4   : > { %1158 = vperm.xlu0 %2715, %v468_v47  }
  0xd5   : > { %v2956_v48 = vpop.permute.xlu2 %1003  ;;  %v2958_v52 = vpop.permute.xlu1 %953 }
  0xd6   : > { %4875 = vst [vmem:[#allocation36_spill] sm:$0xff] %v2956_v48  ;;  %v2960_v53 = vpop.permute.xlu0 %948 }
  0xd7   : > { %4876 = vst [vmem:[#allocation37_spill] sm:$0xff] %v2958_v52  ;;  %v513_v52 = vld [vmem:[%s2813_s16 + $0x3a8] sm:$0xff] }
  0xd8   : > { %4877 = vst [vmem:[#allocation38_spill] sm:$0xff] %v2960_v53  ;;  %v506_v53 = vld [vmem:[%s2813_s16 + $0x370] sm:$0xff] }
  0xdb   : > { %1183 = vperm.xlu2 %2717, %v473_v54   ;;  %1178 = vperm.xlu1 %2716, %v472_v58  }
  0xdc   : > { %1173 = vperm.xlu0 %2715, %v471_v59   ;;  %v488_v59 = vld [vmem:[%s2813_s16 + $0x2e0] sm:$0xff] }
  0xdd   : > { %v2965_v60 = vpop.permute.xlu2 %1018  ;;  %v2967_v0 = vpop.permute.xlu1 %968 }
  0xde   : > { %4878 = vst [vmem:[#allocation39_spill] sm:$0xff] %v2965_v60  ;;  %v2969_v1 = vpop.permute.xlu0 %963  ;;  %v511_v60 = vld [vmem:[%s2813_s16 + $0x398] sm:$0xff] }
  0xdf   : > { %4879 = vst [vmem:[#allocation40_spill] sm:$0xff] %v2967_v0 }
  0xe0   : > { %4880 = vst [vmem:[#allocation41_spill] sm:$0xff] %v2969_v1 }
  0xe3   : > { %1198 = vperm.xlu2 %2717, %v476_v2   ;;  %1193 = vperm.xlu1 %2716, %v475_v6   ;;  %v487_v2 = vld [vmem:[%s2813_s16 + $0x2d8] sm:$0xff]  ;;  %v486_v6 = vld [vmem:[%s2813_s16 + $0x2d0] sm:$0xff] }
  0xe4   : > { %1188 = vperm.xlu0 %2715, %v474_v7  }
  0xe5   : > { %v2974_v8 = vpop.permute.xlu2 %1033  ;;  %v2976_v12 = vpop.permute.xlu1 %983 }
  0xe6   : > { %4881 = vst [vmem:[#allocation42_spill] sm:$0xff] %v2974_v8  ;;  %v2978_v13 = vpop.permute.xlu0 %978  ;;  %v498_v8 = vld [vmem:[%s2813_s16 + $0x330] sm:$0xff] }
  0xe7   : > { %4882 = vst [vmem:[#allocation43_spill] sm:$0xff] %v2976_v12 }
  0xe8   : > { %4883 = vst [vmem:[#allocation44_spill] sm:$0xff] %v2978_v13 }
  0xeb   : > { %1213 = vperm.xlu2 %2717, %v479_v14   ;;  %1208 = vperm.xlu1 %2716, %v478_v18  }
  0xec   : > { %1203 = vperm.xlu0 %2715, %v477_v19   ;;  %v491_v19 = vld [vmem:[%s2813_s16 + $0x2f8] sm:$0xff] }
  0xed   : > { %v2983_v20 = vpop.permute.xlu2 %1048  ;;  %v2985_v24 = vpop.permute.xlu1 %998 }
  0xee   : > { %4884 = vst [vmem:[#allocation45_spill] sm:$0xff] %v2983_v20  ;;  %v2987_v25 = vpop.permute.xlu0 %993 }
  0xef   : > { %4885 = vst [vmem:[#allocation46_spill] sm:$0xff] %v2985_v24  ;;  %v507_v24 = vld [vmem:[%s2813_s16 + $0x378] sm:$0xff] }
  0xf0   : > { %4886 = vst [vmem:[#allocation47_spill] sm:$0xff] %v2987_v25 }
  0xf3   : > { %1228 = vperm.xlu2 %2717, %v482_v26   ;;  %1223 = vperm.xlu1 %2716, %v481_v30   ;;  %v490_v26 = vld [vmem:[%s2813_s16 + $0x2f0] sm:$0xff]  ;;  %v489_v30 = vld [vmem:[%s2813_s16 + $0x2e8] sm:$0xff] }
  0xf4   : > { %1218 = vperm.xlu0 %2715, %v480_v31  }
  0xf5   : > { %v2992_v32 = vpop.permute.xlu2 %1063  ;;  %v2994_v36 = vpop.permute.xlu1 %1013 }
  0xf6   : > { %4887 = vst [vmem:[#allocation48_spill] sm:$0xff] %v2992_v32  ;;  %v2996_v38 = vpop.permute.xlu0 %1008 }
  0xf7   : > { %4888 = vst [vmem:[#allocation49_spill] sm:$0xff] %v2994_v36  ;;  %v510_v36 = vld [vmem:[%s2813_s16 + $0x390] sm:$0xff] }
  0xf8   : > { %4889 = vst [vmem:[#allocation50_spill] sm:$0xff] %v2996_v38 }
  0xfb   : > { %1243 = vperm.xlu2 %2717, %v485_v39   ;;  %1238 = vperm.xlu1 %2716, %v484_v44  }
  0xfc   : > { %1233 = vperm.xlu0 %2715, %v483_v46   ;;  %v494_v46 = vld [vmem:[%s2813_s16 + $0x310] sm:$0xff] }
  0xfd   : > { %v3001_v47 = vpop.permute.xlu2 %1078  ;;  %v3003_v54 = vpop.permute.xlu1 %1028 }
  0xfe   : > { %4890 = vst [vmem:[#allocation51_spill] sm:$0xff] %v3001_v47  ;;  %v3005_v58 = vpop.permute.xlu0 %1023  ;;  %v519_v47 = vld [vmem:[%s2813_s16 + $0x3d8] sm:$0xff] }
  0xff   : > { %4891 = vst [vmem:[#allocation52_spill] sm:$0xff] %v3003_v54  ;;  %v495_v54 = vld [vmem:[%s2813_s16 + $0x318] sm:$0xff] }
 0x100   : > { %4892 = vst [vmem:[#allocation53_spill] sm:$0xff] %v3005_v58  ;;  %v508_v58 = vld [vmem:[%s2813_s16 + $0x380] sm:$0xff] }
 0x103   : > { %1258 = vperm.xlu2 %2717, %v488_v59   ;;  %1253 = vperm.xlu1 %2716, %v487_v2   ;;  %v493_v59 = vld [vmem:[%s2813_s16 + $0x308] sm:$0xff]  ;;  %v492_v2 = vld [vmem:[%s2813_s16 + $0x300] sm:$0xff] }
 0x104   : > { %1248 = vperm.xlu0 %2715, %v486_v6  }
 0x105   : > { %v3010_v7 = vpop.permute.xlu2 %1093  ;;  %v3012_v14 = vpop.permute.xlu1 %1043 }
 0x106   : > { %4893 = vst [vmem:[#allocation54_spill] sm:$0xff] %v3010_v7  ;;  %v3014_v18 = vpop.permute.xlu0 %1038  ;;  %v499_v7 = vld [vmem:[%s2813_s16 + $0x338] sm:$0xff] }
 0x107   : > { %4894 = vst [vmem:[#allocation55_spill] sm:$0xff] %v3012_v14 }
 0x108   : > { %4895 = vst [vmem:[#allocation56_spill] sm:$0xff] %v3014_v18 }
 0x10b   : > { %1273 = vperm.xlu2 %2717, %v491_v19   ;;  %1268 = vperm.xlu1 %2716, %v490_v26  }
 0x10c   : > { %1263 = vperm.xlu0 %2715, %v489_v30   ;;  %v497_v30 = vld [vmem:[%s2813_s16 + $0x328] sm:$0xff] }
 0x10d   : > { %v3019_v31 = vpop.permute.xlu2 %1108  ;;  %v3021_v39 = vpop.permute.xlu1 %1058 }
 0x10e   : > { %4896 = vst [vmem:[#allocation57_spill] sm:$0xff] %v3019_v31  ;;  %v3023_v44 = vpop.permute.xlu0 %1053  ;;  %v496_v31 = vld [vmem:[%s2813_s16 + $0x320] sm:$0xff] }
 0x10f   : > { %4897 = vst [vmem:[#allocation58_spill] sm:$0xff] %v3021_v39 }
 0x110   : > { %4898 = vst [vmem:[#allocation59_spill] sm:$0xff] %v3023_v44 }
 0x113   : > { %1288 = vperm.xlu2 %2717, %v494_v46   ;;  %1283 = vperm.xlu1 %2716, %v493_v59  }
 0x114   : > { %1278 = vperm.xlu0 %2715, %v492_v2  }
 0x115   : > { %v3028_v6 = vpop.permute.xlu2 %1123  ;;  %v3030_v19 = vpop.permute.xlu1 %1073 }
 0x116   : > { %4899 = vst [vmem:[#allocation60_spill] sm:$0xff] %v3028_v6  ;;  %v3032_v26 = vpop.permute.xlu0 %1068  ;;  %v3323_v6 = vld [vmem:[%s3103_s19 + $0x188] sm:$0xff] }
 0x117   : > { %4900 = vst [vmem:[#allocation61_spill] sm:$0xff] %v3030_v19  ;;  %v520_v19 = vld [vmem:[%s2813_s16 + $0x3e0] sm:$0xff] }
 0x118   : > { %4901 = vst [vmem:[#allocation62_spill] sm:$0xff] %v3032_v26  ;;  %v3206_v26 = vld [vmem:[%s4604_s3 + $0x38] sm:$0xff] }
 0x119   : > { %4955 = vst [vmem:[#allocation116_spill] sm:$0xff] %v3323_v6 }
 0x11b   : > { %1303 = vperm.xlu2 %2717, %v497_v30   ;;  %1298 = vperm.xlu1 %2716, %v496_v31  }
 0x11c   : > { %1293 = vperm.xlu0 %2715, %v495_v54  }
 0x11d   : > { %v3037_v46 = vpop.permute.xlu2 %1138  ;;  %v3039_v59 = vpop.permute.xlu1 %1088 }
 0x11e   : > { %4902 = vst [vmem:[#allocation63_spill] sm:$0xff] %v3037_v46  ;;  %v3041_v2 = vpop.permute.xlu0 %1083  ;;  %v501_v46 = vld [vmem:[%s2813_s16 + $0x348] sm:$0xff] }
 0x11f   : > { %4903 = vst [vmem:[#allocation64_spill] sm:$0xff] %v3039_v59  ;;  %v509_v59 = vld [vmem:[%s2813_s16 + $0x388] sm:$0xff] }
 0x120   : > { %4904 = vst [vmem:[#allocation65_spill] sm:$0xff] %v3041_v2  ;;  %v515_v2 = vld [vmem:[%s2813_s16 + $0x3b8] sm:$0xff] }
 0x123   : > { %1358 = vperm.xlu2 %2717, %v508_v58   ;;  %1313 = vperm.xlu1 %2716, %v499_v7  }
 0x124   : > { %1308 = vperm.xlu0 %2715, %v498_v8  }
 0x125   : > { %v3046_v30 = vpop.permute.xlu2 %1153  ;;  %v3048_v31 = vpop.permute.xlu1 %1103 }
 0x126   : > { %4905 = vst [vmem:[#allocation66_spill] sm:$0xff] %v3046_v30  ;;  %v3050_v54 = vpop.permute.xlu0 %1098  ;;  %v514_v30 = vld [vmem:[%s2813_s16 + $0x3b0] sm:$0xff] }
 0x127   : > { %4906 = vst [vmem:[#allocation67_spill] sm:$0xff] %v3048_v31  ;;  %v512_v31 = vld [vmem:[%s2813_s16 + $0x3a0] sm:$0xff] }
 0x128   : > { %4907 = vst [vmem:[#allocation68_spill] sm:$0xff] %v3050_v54  ;;  %v500_v54 = vld [vmem:[%s2813_s16 + $0x340] sm:$0xff] }
 0x12b   : > { %1373 = vperm.xlu2 %2717, %v511_v60   ;;  %1368 = vperm.xlu1 %2716, %v510_v36  }
 0x12c   : > { %1363 = vperm.xlu0 %2715, %v509_v59  }
 0x12d   : > { %v3055_v58 = vpop.permute.xlu2 %1168  ;;  %v3057_v7 = vpop.permute.xlu1 %1118 }
 0x12e   : > { %4908 = vst [vmem:[#allocation69_spill] sm:$0xff] %v3055_v58  ;;  %v3059_v8 = vpop.permute.xlu0 %1113  ;;  %v516_v58 = vld [vmem:[%s2813_s16 + $0x3c0] sm:$0xff] }
 0x12f   : > { %4909 = vst [vmem:[#allocation70_spill] sm:$0xff] %v3057_v7 }
 0x130   : > { %4910 = vst [vmem:[#allocation71_spill] sm:$0xff] %v3059_v8  ;;  %v502_v8 = vld [vmem:[%s2813_s16 + $0x350] sm:$0xff] }
 0x133   : > { %1388 = vperm.xlu2 %2717, %v514_v30   ;;  %1383 = vperm.xlu1 %2716, %v513_v52  }
 0x134   : > { %1378 = vperm.xlu0 %2715, %v512_v31  }
 0x135   : > { %v3064_v60 = vpop.permute.xlu2 %1183  ;;  %v3066_v36 = vpop.permute.xlu1 %1133 }
 0x136   : > { %4911 = vst [vmem:[#allocation72_spill] sm:$0xff] %v3064_v60  ;;  %v3068_v59 = vpop.permute.xlu0 %1128  ;;  %v517_v60 = vld [vmem:[%s2813_s16 + $0x3c8] sm:$0xff] }
 0x137   : > { %4912 = vst [vmem:[#allocation73_spill] sm:$0xff] %v3066_v36  ;;  %v518_v36 = vld [vmem:[%s2813_s16 + $0x3d0] sm:$0xff] }
 0x138   : > { %4913 = vst [vmem:[#allocation74_spill] sm:$0xff] %v3068_v59 }
 0x13b   : > { %1398 = vperm.xlu2 %2717, %v516_v58   ;;  %1318 = vperm.xlu1 %2716, %v500_v54  }
 0x13c   : > { %1393 = vperm.xlu0 %2715, %v515_v2  }
 0x13d   : > { %v3073_v30 = vpop.permute.xlu2 %1198  ;;  %v3075_v52 = vpop.permute.xlu1 %1148 }
 0x13e   : > { %4914 = vst [vmem:[#allocation75_spill] sm:$0xff] %v3073_v30  ;;  %v3077_v31 = vpop.permute.xlu0 %1143  ;;  %v3142_v30 = vld [vmem:[%s4604_s3 + $0x18] sm:$0xff] }
 0x13f   : > { %4915 = vst [vmem:[#allocation76_spill] sm:$0xff] %v3075_v52  ;;  %v503_v52 = vld [vmem:[%s2813_s16 + $0x358] sm:$0xff] }
 0x140   : > { %4916 = vst [vmem:[#allocation77_spill] sm:$0xff] %v3077_v31 }
 0x143   : > { %1328 = vperm.xlu2 %2717, %v502_v8   ;;  %1403 = vperm.xlu1 %2716, %v517_v60  }
 0x144   : > { %1323 = vperm.xlu0 %2715, %v501_v46   ;;  %v505_v46 = vld [vmem:[%s2813_s16 + $0x368] sm:$0xff] }
 0x145   : > { %v3082_v58 = vpop.permute.xlu2 %1213  ;;  %v3084_v54 = vpop.permute.xlu1 %1163 }
 0x146   : > { %4917 = vst [vmem:[#allocation78_spill] sm:$0xff] %v3082_v58  ;;  %v3086_v2 = vpop.permute.xlu0 %1158  ;;  %v526_v58 = vld [vmem:[%s3103_s19 + $0x10] sm:$0xff] }
 0x147   : > { %4918 = vst [vmem:[#allocation79_spill] sm:$0xff] %v3084_v54 }
 0x148   : > { %4919 = vst [vmem:[#allocation80_spill] sm:$0xff] %v3086_v2 }
 0x14b   : > { %1413 = vperm.xlu2 %2717, %v519_v47   ;;  %1333 = vperm.xlu1 %2716, %v503_v52   ;;  %v504_v47 = vld [vmem:[%s2813_s16 + $0x360] sm:$0xff]  ;;  %v3110_v52 = vld [vmem:[%s4604_s3 + $0x8] sm:$0xff] }
 0x14c   : > { %1408 = vperm.xlu0 %2715, %v518_v36   ;;  %v525_v36 = vld [vmem:[%s3103_s19 + $0x8] sm:$0xff] }
 0x14d   : > { %v3091_v31 = vpop.permute.xlu1 %1178  ;;  %v3095_v60 = vpop.permute.xlu2 %1228  ;;  %v669_v54 = vmul.f32 %v3110_v52, %v525_v36  ;;  %v521_v36 = vld [vmem:[%s2813_s16 + $0x3e8] sm:$0xff] }
 0x14e   : > { %4920 = vst [vmem:[#allocation81_spill] sm:$0xff] %v3091_v31  ;;  %v3093_v8 = vpop.permute.xlu0 %1173  ;;  %v524_v31 = vld [vmem:[%s3103_s19] sm:$0xff] }
 0x14f   : > { %4921 = vst [vmem:[#allocation82_spill] sm:$0xff] %v3093_v8  ;;  %v3116_v8 = vld [vmem:[%s4604_s3] sm:$0xff] }
 0x150   : > { %4922 = vst [vmem:[#allocation83_spill] sm:$0xff] %v3095_v60  ;;  %v668_v38 = vmul.f32 %v3116_v8, %v524_v31  ;;  %v527_v31 = vld [vmem:[%s3103_s19 + $0x18] sm:$0xff] }
 0x153   : > { %1343 = vperm.xlu2 %2717, %v505_v46   ;;  %1418 = vperm.xlu1 %2716, %v520_v19   ;;  %v3128_v19 = vld [vmem:[%s4604_s3 + $0x10] sm:$0xff] }
 0x154   : > { %1338 = vperm.xlu0 %2715, %v504_v47   ;;  %v522_v46 = vld [vmem:[%s2813_s16 + $0x3f0] sm:$0xff]  ;;  %v1437_v47 = vmul.f32 %v2879_v57, %v669_v54 }
 0x155   : > { %v3119_v60 = vpop.permute.xlu1 %1193  ;;  %v3133_v48 = vpop.permute.xlu2 %1243 }
 0x156   : > { %4923 = vst [vmem:[#allocation84_spill] sm:$0xff] %v3119_v60  ;;  %v3121_v2 = vpop.permute.xlu0 %1188  ;;  %v670_v60 = vmul.f32 %v3128_v19, %v526_v58 }
 0x157   : > { %4924 = vst [vmem:[#allocation85_spill] sm:$0xff] %v3121_v2  ;;  %v1436_v2 = vmul.f32 %v2870_v51, %v668_v38  ;;  %v671_v38 = vmul.f32 %v3142_v30, %v527_v31  ;;  %v523_v51 = vld [vmem:[%s2813_s16 + $0x3f8] sm:$0xff]  ;;  %v529_v31 = vld [vmem:[%s3103_s19 + $0x28] sm:$0xff] }
 0x158   : > { %4925 = vst [vmem:[#allocation86_spill] sm:$0xff] %v3133_v48  ;;  %v1438_v58 = vmul.f32 %v2868_v50, %v670_v60  ;;  %v3169_v50 = vld [vmem:[%s4604_s3 + $0x28] sm:$0xff] }
 0x159   : > { %v1564_v54 = vadd.f32 %v1437_v47, %v1436_v2  ;;  %v1439_v47 = vmul.f32 %v2877_v56, %v671_v38 }
 0x15b   : > { %1428 = vperm.xlu2 %2717, %v522_v46   ;;  %1348 = vperm.xlu1 %2716, %v506_v53   ;;  %v528_v53 = vld [vmem:[%s3103_s19 + $0x20] sm:$0xff] }
 0x15c   : > { %1423 = vperm.xlu0 %2715, %v521_v36   ;;  %v3154_v46 = vld [vmem:[%s4604_s3 + $0x20] sm:$0xff]  ;;  %v1565_v36 = vadd.f32 %v1564_v54, %v1438_v58  ;;  %v3172_v54 = vld [vmem:[%s3103_s19 + $0x88] sm:$0xff]  ;;  %v3175_v58 = vld [vmem:[%s3103_s19 + $0x90] sm:$0xff] }
 0x15d   : > { %v3144_v57 = vpop.permute.xlu1 %1208  ;;  %v672_v2 = vmul.f32 %v3154_v46, %v528_v53  ;;  %v3163_v60 = vpop.permute.xlu2 %1258  ;;  %4930 = vst [vmem:[#allocation91_spill] sm:$0xff] %v3172_v54 }
 0x15e   : > { %4926 = vst [vmem:[#allocation87_spill] sm:$0xff] %v3144_v57  ;;  %v3146_v48 = vpop.permute.xlu0 %1203  ;;  %v3161_v57 = vld [vmem:[%s3103_s19 + $0x80] sm:$0xff] }
 0x15f   : > { %4927 = vst [vmem:[#allocation88_spill] sm:$0xff] %v3146_v48  ;;  %v1566_v48 = vadd.f32 %v1565_v36, %v1439_v47  ;;  %v684_v53 = vmul.f32 %v3116_v8, %v3161_v57  ;;  %v1440_v56 = vmul.f32 %v2851_v37, %v672_v2  ;;  %v530_v36 = vld [vmem:[%s3103_s19 + $0x30] sm:$0xff] }
 0x160   : > { %4928 = vst [vmem:[#allocation89_spill] sm:$0xff] %v3161_v57  ;;  %v3191_v47 = vld [vmem:[%s4604_s3 + $0x30] sm:$0xff] }
 0x161   : > { %4929 = vst [vmem:[#allocation90_spill] sm:$0xff] %v3163_v60  ;;  %v673_v60 = vmul.f32 %v3169_v50, %v529_v31  ;;  %v1567_v59 = vadd.f32 %v1566_v48, %v1440_v56  ;;  %v1452_v57 = vmul.f32 %v2913_v16, %v684_v53  ;;  %v674_v31 = vmul.f32 %v3191_v47, %v530_v36 }
 0x162   : > { %4931 = vst [vmem:[#allocation92_spill] sm:$0xff] %v3175_v58 }
 0x163   : > { %1433 = vperm.xlu1 %2716, %v523_v51   ;;  %v1441_v2 = vmul.f32 %v2856_v41, %v673_v60  ;;  %v3220_v41 = vld [vmem:[%s3103_s19 + $0xa0] sm:$0xff] }
 0x164   : > { %1353 = vperm.xlu0 %2715, %v507_v24   ;;  %v685_v24 = vmul.f32 %v3110_v52, %v3172_v54  ;;  %v3199_v54 = vld [vmem:[%s3103_s19 + $0x98] sm:$0xff]  ;;  %4938 = vst [vmem:[#allocation99_spill] sm:$0xff] %v3220_v41 }
 0x165   : > { %v3177_v38 = vpop.permute.xlu1 %1223  ;;  %4934 = vst [vmem:[#allocation95_spill] sm:$0xff] %v3199_v54  ;;  %v1568_v48 = vadd.f32 %v1567_v59, %v1441_v2  ;;  %v3209_v53 = vpop.permute.xlu2 %1273  ;;  %v532_v59 = vld [vmem:[%s3103_s19 + $0x40] sm:$0xff] }
 0x166   : > { %4932 = vst [vmem:[#allocation93_spill] sm:$0xff] %v3177_v38  ;;  %v3181_v51 = vpop.permute.xlu0 %1218  ;;  %v686_v38 = vmul.f32 %v3128_v19, %v3175_v58  ;;  %v1453_v37 = vmul.f32 %v2884_v61, %v685_v24  ;;  %v687_v58 = vmul.f32 %v3142_v30, %v3199_v54  ;;  %v1442_v61 = vmul.f32 %v2888_v63, %v674_v31  ;;  %v3239_v31 = vld [vmem:[%s4604_s3 + $0x48] sm:$0xff] }
 0x167   : > { %4933 = vst [vmem:[#allocation94_spill] sm:$0xff] %v3181_v51  ;;  %v531_v51 = vld [vmem:[%s3103_s19 + $0x38] sm:$0xff]  ;;  %v688_v54 = vmul.f32 %v3154_v46, %v3220_v41 }
 0x168   : > { %v1454_v56 = vmul.f32 %v2924_v23, %v686_v38  ;;  %4935 = vst [vmem:[#allocation96_spill] sm:$0xff] %v3209_v53  ;;  %v1585_v36 = vadd.f32 %v1453_v37, %v1452_v57  ;;  %v675_v24 = vmul.f32 %v3206_v26, %v531_v51  ;;  %v3223_v38 = vld [vmem:[%s3103_s19 + $0xa8] sm:$0xff]  ;;  %v3229_v37 = vld [vmem:[%s4604_s3 + $0x40] sm:$0xff]  ;;  %v1569_v2 = vadd.f32 %v1568_v48, %v1442_v61  ;;  %v3249_v53 = vld [vmem:[%s3103_s19 + $0xb0] sm:$0xff] }
 0x169   : > { %4939 = vst [vmem:[#allocation100_spill] sm:$0xff] %v3223_v38  ;;  %v3234_v51 = vld [vmem:[%s3103_s19 + $0x48] sm:$0xff]  ;;  %v1455_v23 = vmul.f32 %v2922_v22, %v687_v58  ;;  %v689_v63 = vmul.f32 %v3169_v50, %v3223_v38  ;;  %v1456_v22 = vmul.f32 %v2893_v3, %v688_v54 }
 0x16a   : > { %v1586_v57 = vadd.f32 %v1585_v36, %v1454_v56  ;;  %4940 = vst [vmem:[#allocation101_spill] sm:$0xff] %v3234_v51  ;;  %v676_v56 = vmul.f32 %v3229_v37, %v532_v59  ;;  %v1443_v61 = vmul.f32 %v2886_v62, %v675_v24  ;;  %v677_v41 = vmul.f32 %v3239_v31, %v3234_v51  ;;  %v3262_v24 = vld [vmem:[%s3103_s19 + $0x100] sm:$0xff]  ;;  %v3280_v51 = vld [vmem:[%s3103_s19 + $0xb8] sm:$0xff] }
 0x16b   : > { %4941 = vst [vmem:[#allocation102_spill] sm:$0xff] %v3249_v53  ;;  %v1457_v38 = vmul.f32 %v2933_v29, %v689_v63  ;;  %v690_v63 = vmul.f32 %v3191_v47, %v3249_v53  ;;  %v700_v62 = vmul.f32 %v3116_v8, %v3262_v24 }
 0x16c   : > { %v1587_v48 = vadd.f32 %v1586_v57, %v1455_v23  ;;  %v1570_v36 = vadd.f32 %v1569_v2, %v1443_v61  ;;  %v1444_v23 = vmul.f32 %v2861_v45, %v676_v56  ;;  %4945 = vst [vmem:[#allocation106_spill] sm:$0xff] %v3262_v24  ;;  %v3267_v2 = vld [vmem:[%s3103_s19 + $0x50] sm:$0xff]  ;;  %v1445_v3 = vmul.f32 %v2897_v5, %v677_v41  ;;  %v3283_v45 = vld [vmem:[%s3103_s19 + $0xc0] sm:$0xff]  ;;  %v3298_v41 = vld [vmem:[%s4604_s3 + $0x58] sm:$0xff] }
 0x16d   : > { %v3211_v60 = vpop.permute.xlu1 %1238  ;;  %v3264_v57 = vpop.permute.xlu2 %1288  ;;  %4947 = vst [vmem:[#allocation108_spill] sm:$0xff] %v3267_v2  ;;  %v3272_v61 = vld [vmem:[%s4604_s3 + $0x50] sm:$0xff] }
 0x16e   : > { %4936 = vst [vmem:[#allocation97_spill] sm:$0xff] %v3211_v60  ;;  %v3215_v16 = vpop.permute.xlu0 %1233  ;;  %v3252_v60 = vld [vmem:[%s3103_s19 + $0x108] sm:$0xff]  ;;  %v1588_v54 = vadd.f32 %v1587_v48, %v1456_v22  ;;  %v1571_v29 = vadd.f32 %v1570_v36, %v1444_v23  ;;  %v678_v22 = vmul.f32 %v3272_v61, %v3267_v2  ;;  %v3293_v48 = vld [vmem:[%s3103_s19 + $0x110] sm:$0xff]  ;;  %v691_v36 = vmul.f32 %v3206_v26, %v3280_v51  ;;  %v3303_v23 = vld [vmem:[%s3103_s19 + $0x60] sm:$0xff] }
 0x16f   : > { %4937 = vst [vmem:[#allocation98_spill] sm:$0xff] %v3215_v16  ;;  %v701_v56 = vmul.f32 %v3110_v52, %v3252_v60  ;;  %v702_v16 = vmul.f32 %v3128_v19, %v3293_v48 }
 0x170   : > { %4942 = vst [vmem:[#allocation103_spill] sm:$0xff] %v3252_v60  ;;  %v692_v60 = vmul.f32 %v3229_v37, %v3283_v45  ;;  %v1572_v53 = vadd.f32 %v1571_v29, %v1445_v3  ;;  %v1446_v29 = vmul.f32 %v2895_v4, %v678_v22  ;;  %v3349_v22 = vld [vmem:[%s4604_s3 + $0x68] sm:$0xff] }
 0x171   : > { %4946 = vst [vmem:[#allocation107_spill] sm:$0xff] %v3264_v57  ;;  %v1469_v24 = vmul.f32 %v2969_v1, %v701_v56  ;;  %v3318_v57 = vld [vmem:[%s3103_s19 + $0x118] sm:$0xff]  ;;  %v3339_v56 = vld [vmem:[%s3103_s19 + $0x120] sm:$0xff] }
 0x172   : > { %4948 = vst [vmem:[#allocation109_spill] sm:$0xff] %v3280_v51  ;;  %v1468_v51 = vmul.f32 %v2929_v27, %v700_v62  ;;  %v1573_v27 = vadd.f32 %v1572_v53, %v1446_v29  ;;  %v3360_v53 = vld [vmem:[%s3103_s19 + $0xd0] sm:$0xff] }
 0x173   : > { %4949 = vst [vmem:[#allocation110_spill] sm:$0xff] %v3283_v45  ;;  %v3344_v45 = vld [vmem:[%s3103_s19 + $0x68] sm:$0xff] }
 0x174   : > { %4951 = vst [vmem:[#allocation112_spill] sm:$0xff] %v3293_v48  ;;  %v1460_v48 = vmul.f32 %v2942_v35, %v692_v60  ;;  %v1606_v1 = vadd.f32 %v1469_v24, %v1468_v51  ;;  %v1470_v35 = vmul.f32 %v2967_v0, %v702_v16 }
 0x175   : > { %v3254_v58 = vpop.permute.xlu1 %1253  ;;  %4952 = vst [vmem:[#allocation113_spill] sm:$0xff] %v3303_v23  ;;  %v3357_v51 = vpop.permute.xlu2 %1303 }
 0x176   : > { %4943 = vst [vmem:[#allocation104_spill] sm:$0xff] %v3254_v58  ;;  %v3258_v59 = vpop.permute.xlu0 %1248  ;;  %v1589_v58 = vadd.f32 %v1588_v54, %v1457_v38  ;;  %v3308_v38 = vld [vmem:[%s4604_s3 + $0x60] sm:$0xff]  ;;  %v1458_v54 = vmul.f32 %v2931_v28, %v690_v63 }
 0x177   : > { %4944 = vst [vmem:[#allocation105_spill] sm:$0xff] %v3258_v59  ;;  %v3288_v59 = vld [vmem:[%s3103_s19 + $0x58] sm:$0xff]  ;;  %v3326_v63 = vld [vmem:[%s3103_s19 + $0x180] sm:$0xff]  ;;  %v680_v62 = vmul.f32 %v3308_v38, %v3303_v23  ;;  %v703_v23 = vmul.f32 %v3142_v30, %v3318_v57 }
 0x178   : > { %4950 = vst [vmem:[#allocation111_spill] sm:$0xff] %v3288_v59  ;;  %v1590_v5 = vadd.f32 %v1589_v58, %v1458_v54  ;;  %v679_v3 = vmul.f32 %v3298_v41, %v3288_v59  ;;  %v3336_v58 = vld [vmem:[%s3103_s19 + $0xc8] sm:$0xff]  ;;  %v1459_v54 = vmul.f32 %v2902_v9, %v691_v36  ;;  %v717_v36 = vmul.f32 %v3110_v52, %v3323_v6 }
 0x179   : > { %4954 = vst [vmem:[#allocation115_spill] sm:$0xff] %v3318_v57  ;;  %v716_v60 = vmul.f32 %v3116_v8, %v3326_v63  ;;  %v693_v24 = vmul.f32 %v3239_v31, %v3336_v58  ;;  %v704_v57 = vmul.f32 %v3154_v46, %v3339_v56  ;;  %v1448_v9 = vmul.f32 %v2906_v11, %v680_v62  ;;  %v3724_v11 = vld [vmem:[%s3103_s19 + $0x250] sm:$0xff] }
 0x17a   : > { %4956 = vst [vmem:[#allocation117_spill] sm:$0xff] %v3326_v63  ;;  %v1591_v29 = vadd.f32 %v1590_v5, %v1459_v54  ;;  %v1447_v6 = vmul.f32 %v2866_v49, %v679_v3  ;;  %v3370_v63 = vld [vmem:[%s3103_s19 + $0xd8] sm:$0xff]  ;;  %v681_v59 = vmul.f32 %v3349_v22, %v3344_v45  ;;  %v694_v54 = vmul.f32 %v3272_v61, %v3360_v53  ;;  %v3727_v49 = vld [vmem:[%s3103_s19 + $0x248] sm:$0xff] }
 0x17b   : > { %4958 = vst [vmem:[#allocation119_spill] sm:$0xff] %v3336_v58  ;;  %v3378_v5 = vld [vmem:[%s3103_s19 + $0x198] sm:$0xff]  ;;  %v1485_v3 = vmul.f32 %v3012_v14, %v717_v36  ;;  %v1484_v62 = vmul.f32 %v3014_v18, %v716_v60  ;;  %v1472_v36 = vmul.f32 %v2978_v13, %v704_v57  ;;  %v3417_v57 = vld [vmem:[%s3103_s19 + $0x130] sm:$0xff] }
 0x17c   : > { %4959 = vst [vmem:[#allocation120_spill] sm:$0xff] %v3339_v56  ;;  %v1592_v4 = vadd.f32 %v1591_v29, %v1460_v48  ;;  %v1574_v16 = vadd.f32 %v1573_v27, %v1447_v6  ;;  %v3383_v56 = vld [vmem:[%s3103_s19 + $0x128] sm:$0xff]  ;;  %v3390_v48 = vld [vmem:[%s3103_s19 + $0x70] sm:$0xff]  ;;  %v1471_v27 = vmul.f32 %v2938_v33, %v703_v23  ;;  %v695_v6 = vmul.f32 %v3298_v41, %v3370_v63  ;;  %v3405_v14 = vld [vmem:[%s3103_s19 + $0x78] sm:$0xff] }
 0x17d   : > { %v3314_v2 = vpop.permute.xlu1 %1268  ;;  %4960 = vst [vmem:[#allocation121_spill] sm:$0xff] %v3344_v45  ;;  %v3410_v18 = vld [vmem:[%s4604_s3 + $0x78] sm:$0xff] }
 0x17e   : > { %4953 = vst [vmem:[#allocation114_spill] sm:$0xff] %v3314_v2  ;;  %v3328_v28 = vpop.permute.xlu0 %1263  ;;  %v1607_v2 = vadd.f32 %v1606_v1, %v1470_v35  ;;  %v3395_v35 = vld [vmem:[%s4604_s3 + $0x70] sm:$0xff]  ;;  %v1461_v1 = vmul.f32 %v2940_v34, %v693_v24  ;;  %v1575_v29 = vadd.f32 %v1574_v16, %v1448_v9  ;;  %v719_v24 = vmul.f32 %v3142_v30, %v3378_v5  ;;  %v3428_v58 = vld [vmem:[%s3103_s19 + $0x138] sm:$0xff]  ;;  %v3438_v34 = vld [vmem:[%s3103_s19 + $0xe8] sm:$0xff] }
 0x17f   : > { %4957 = vst [vmem:[#allocation118_spill] sm:$0xff] %v3328_v28  ;;  %v3375_v28 = vld [vmem:[%s3103_s19 + $0x190] sm:$0xff]  ;;  %v705_v9 = vmul.f32 %v3169_v50, %v3383_v56  ;;  %v682_v13 = vmul.f32 %v3395_v35, %v3390_v48 }
 0x180   : > { %4961 = vst [vmem:[#allocation122_spill] sm:$0xff] %v3357_v51  ;;  %v718_v23 = vmul.f32 %v3128_v19, %v3375_v28  ;;  %v1593_v33 = vadd.f32 %v1592_v4, %v1461_v1  ;;  %v1608_v16 = vadd.f32 %v1607_v2, %v1471_v27  ;;  %v683_v4 = vmul.f32 %v3410_v18, %v3405_v14  ;;  %v3435_v27 = vld [vmem:[%s3103_s19 + $0x1a0] sm:$0xff] }
 0x181   : > { %4962 = vst [vmem:[#allocation123_spill] sm:$0xff] %v3360_v53  ;;  %v3425_v53 = vld [vmem:[%s3103_s19 + $0xe0] sm:$0xff]  ;;  %v1463_v1 = vmul.f32 %v2951_v43, %v695_v6  ;;  %v3491_v43 = vld [vmem:[%s3103_s19 + $0x148] sm:$0xff] }
 0x182   : > { %4963 = vst [vmem:[#allocation124_spill] sm:$0xff] %v3370_v63  ;;  %v1449_v63 = vmul.f32 %v2904_v10, %v681_v59  ;;  %v1609_v2 = vadd.f32 %v1608_v16, %v1472_v36  ;;  %v706_v59 = vmul.f32 %v3191_v47, %v3417_v57  ;;  %v696_v6 = vmul.f32 %v3308_v38, %v3425_v53  ;;  %v3452_v16 = vld [vmem:[%s3103_s19 + $0x200] sm:$0xff] }
 0x183   : > { %4964 = vst [vmem:[#allocation125_spill] sm:$0xff] %v3375_v28  ;;  %v1627_v28 = vadd.f32 %v1485_v3, %v1484_v62  ;;  %v1486_v3 = vmul.f32 %v2983_v20, %v718_v23  ;;  %v3444_v62 = vpop.permute.xlu2 %1358  ;;  %v1450_v23 = vmul.f32 %v2875_v55, %v682_v13  ;;  %v3456_v20 = vld [vmem:[%s3103_s19 + $0x1a8] sm:$0xff]  ;;  %v3468_v13 = vld [vmem:[%s3103_s19 + $0x1b0] sm:$0xff] }
 0x184   : > { %4965 = vst [vmem:[#allocation126_spill] sm:$0xff] %v3378_v5  ;;  %v1462_v5 = vmul.f32 %v2911_v15, %v694_v54  ;;  %v1487_v54 = vmul.f32 %v3023_v44, %v719_v24  ;;  %v720_v24 = vmul.f32 %v3154_v46, %v3435_v27  ;;  %v4999_v15 = vld [vmem:[#allocation46_spill] sm:$0xff] }
 0x185   : > { %4966 = vst [vmem:[#allocation127_spill] sm:$0xff] %v3383_v56  ;;  %v3387_v0 = vpop.permute.xlu1 %1283  ;;  %v1576_v56 = vadd.f32 %v1575_v29, %v1449_v63  ;;  %v1473_v63 = vmul.f32 %v2976_v12, %v705_v9  ;;  %v707_v29 = vmul.f32 %v3206_v26, %v3428_v58  ;;  %v1628_v44 = vadd.f32 %v1627_v28, %v1486_v3  ;;  %v3471_v12 = vld [vmem:[%s3103_s19 + $0x210] sm:$0xff]  ;;  %v3481_v3 = vld [vmem:[%s3103_s19 + $0x140] sm:$0xff] }
 0x186   : > { %4967 = vst [vmem:[#allocation128_spill] sm:$0xff] %v3387_v0  ;;  %v3402_v60 = vpop.permute.xlu0 %1278  ;;  %v1594_v36 = vadd.f32 %v1593_v33, %v1462_v5  ;;  %v697_v33 = vmul.f32 %v3349_v22, %v3438_v34  ;;  %v3478_v28 = vmul.f32 %v2915_v17, %v683_v4  ;;  %v5012_v17 = vld [vmem:[#allocation50_spill] sm:$0xff] }
 0x187   : > { %4968 = vst [vmem:[#allocation129_spill] sm:$0xff] %v3390_v48  ;;  %v1610_v9 = vadd.f32 %v1609_v2, %v1473_v63  ;;  %v3486_v2 = vld [vmem:[%s3103_s19 + $0x288] sm:$0xff]  ;;  %v1464_v63 = vmul.f32 %v2949_v42, %v696_v6  ;;  %v1475_v4 = vmul.f32 %v2987_v25, %v707_v29  ;;  %v734_v6 = vmul.f32 %v3128_v19, %v3471_v12 }
 0x188   : > { %4969 = vst [vmem:[#allocation130_spill] sm:$0xff] %v3402_v60  ;;  %v1595_v5 = vadd.f32 %v1594_v36, %v1463_v1  ;;  %v732_v1 = vmul.f32 %v3116_v8, %v3452_v16  ;;  %v1474_v36 = vmul.f32 %v2947_v40, %v706_v59  ;;  %v722_v59 = vmul.f32 %v3191_v47, %v3468_v13  ;;  %v3510_v40 = vld [vmem:[%s3103_s19 + $0x280] sm:$0xff]  ;;  %v3574_v48 = vld [vmem:[%s3103_s19 + $0x228] sm:$0xff] }
 0x189   : > { %4970 = vst [vmem:[#allocation131_spill] sm:$0xff] %v3405_v14  ;;  %v5000_v14 = vld [vmem:[#allocation88_spill] sm:$0xff] }
 0x18a   : > { %4971 = vst [vmem:[#allocation132_spill] sm:$0xff] %v3417_v57  ;;  %v1596_v29 = vadd.f32 %v1595_v5, %v1464_v63  ;;  %v1611_v25 = vadd.f32 %v1610_v9, %v1474_v36  ;;  %v1500_v5 = vmul.f32 %v3057_v7, %v732_v1  ;;  %v1465_v63 = vmul.f32 %v2920_v21, %v697_v33  ;;  %v4994_v1 = vld [vmem:[#allocation60_spill] sm:$0xff]  ;;  %v4995_v33 = vld [vmem:[#allocation62_spill] sm:$0xff] }
 0x18b   : > { %4972 = vst [vmem:[#allocation133_spill] sm:$0xff] %v3425_v53  ;;  %v1490_v7 = vmul.f32 %v4995_v33, %v722_v59  ;;  %v4996_v21 = vld [vmem:[#allocation74_spill] sm:$0xff]  ;;  %v3558_v59 = vld [vmem:[%s3103_s19 + $0x1c0] sm:$0xff] }
 0x18c   : > { %4973 = vst [vmem:[#allocation134_spill] sm:$0xff] %v3428_v58  ;;  %v3465_v58 = vld [vmem:[%s3103_s19 + $0x208] sm:$0xff]  ;;  %v1612_v36 = vadd.f32 %v1611_v25, %v1475_v4  ;;  %v3545_v25 = vld [vmem:[%s3103_s19 + $0x290] sm:$0xff]  ;;  %v3547_v4 = vpop.permute.xlu2 %1373  ;;  %v3563_v33 = vld [vmem:[%s3103_s19 + $0x220] sm:$0xff] }
 0x18d   : > { %4974 = vst [vmem:[#allocation135_spill] sm:$0xff] %v3435_v27  ;;  %v3460_v57 = vpop.permute.xlu1 %1298  ;;  %v3475_v27 = vadd.f32 %v1576_v56, %v1450_v23  ;;  %v3494_v56 = vld [vmem:[%s3103_s19 + $0xf8] sm:$0xff]  ;;  %v721_v23 = vmul.f32 %v3169_v50, %v3456_v20 }
 0x18e   : > { %4975 = vst [vmem:[#allocation136_spill] sm:$0xff] %v3438_v34  ;;  %v3473_v53 = vpop.permute.xlu0 %1293  ;;  %v1629_v34 = vadd.f32 %v1628_v44, %v1487_v54  ;;  %v3500_v44 = vld [vmem:[%s3103_s19 + $0xf0] sm:$0xff]  ;;  %v1488_v54 = vmul.f32 %v3021_v39, %v720_v24  ;;  %v749_v24 = vmul.f32 %v3110_v52, %v3486_v2 }
 0x18f   : > { %4976 = vst [vmem:[#allocation137_spill] sm:$0xff] %v3444_v62  ;;  %v698_v9 = vmul.f32 %v3395_v35, %v3500_v44 }
 0x190   : > { %4977 = vst [vmem:[#allocation138_spill] sm:$0xff] %v3452_v16  ;;  %v733_v16 = vmul.f32 %v3110_v52, %v3465_v58  ;;  %v1630_v39 = vadd.f32 %v1629_v34, %v1488_v54  ;;  %v3539_v34 = vld [vmem:[%s3103_s19 + $0x158] sm:$0xff] }
 0x191   : > { %4978 = vst [vmem:[#allocation139_spill] sm:$0xff] %v3456_v20  ;;  %v708_v20 = vmul.f32 %v3229_v37, %v3481_v3 }
 0x192   : > { %4979 = vst [vmem:[#allocation140_spill] sm:$0xff] %v3460_v57  ;;  %v1501_v54 = vmul.f32 %v4994_v1, %v733_v16  ;;  %v1517_v16 = vmul.f32 %v5000_v14, %v749_v24  ;;  %v711_v24 = vmul.f32 %v3298_v41, %v3539_v34  ;;  %v3570_v14 = vld [vmem:[%s3103_s19 + $0x1c8] sm:$0xff] }
 0x193   : > { %4980 = vst [vmem:[#allocation141_spill] sm:$0xff] %v3465_v58  ;;  %v709_v58 = vmul.f32 %v3239_v31, %v3491_v43 }
 0x194   : > { %4981 = vst [vmem:[#allocation142_spill] sm:$0xff] %v3468_v13  ;;  %v3520_v13 = vmul.f32 %v3410_v18, %v3494_v56 }
 0x195   : > { %4982 = vst [vmem:[#allocation143_spill] sm:$0xff] %v3471_v12  ;;  %v3523_v12 = vld [vmem:[%s3103_s19 + $0x150] sm:$0xff]  ;;  %v3549_v42 = vpop.permute.xlu1 %1313 }
 0x196   : > { %4983 = vst [vmem:[#allocation144_spill] sm:$0xff] %v3473_v53  ;;  %v3555_v1 = vpop.permute.xlu0 %1308 }
 0x197   : > { %4984 = vst [vmem:[#allocation145_spill] sm:$0xff] %v3481_v3  ;;  %v748_v3 = vmul.f32 %v3116_v8, %v3510_v40 }
 0x198   : > { %4985 = vst [vmem:[#allocation146_spill] sm:$0xff] %v3486_v2  ;;  %v3530_v2 = vld [vmem:[%s3103_s19 + $0x1b8] sm:$0xff] }
 0x199   : > { %4986 = vst [vmem:[#allocation147_spill] sm:$0xff] %v3491_v43  ;;  %v3533_v43 = vld [vmem:[%s3103_s19 + $0x218] sm:$0xff] }
 0x19a   : > { %4987 = vst [vmem:[#allocation148_spill] sm:$0xff] %v3494_v56  ;;  %v1489_v56 = vmul.f32 %v2992_v32, %v721_v23  ;;  %v1476_v23 = vmul.f32 %v4999_v15, %v708_v20  ;;  %v710_v32 = vmul.f32 %v3272_v61, %v3523_v12  ;;  %v735_v20 = vmul.f32 %v3142_v30, %v3533_v43 }
 0x19b   : > { %4988 = vst [vmem:[#allocation149_spill] sm:$0xff] %v3500_v44  ;;  %v1502_v44 = vmul.f32 %v4996_v21, %v734_v6  ;;  %v723_v6 = vmul.f32 %v3206_v26, %v3530_v2 }
 0x19c   : > { %4989 = vst [vmem:[#allocation150_spill] sm:$0xff] %v3510_v40  ;;  %v1597_v40 = vadd.f32 %v1596_v29, %v1465_v63  ;;  %v1631_v21 = vadd.f32 %v1630_v39, %v1489_v56  ;;  %v1648_v29 = vadd.f32 %v1501_v54, %v1500_v5  ;;  %v1613_v63 = vadd.f32 %v1612_v36, %v1476_v23  ;;  %v5007_v56 = vld [vmem:[#allocation36_spill] sm:$0xff]  ;;  %v5008_v5 = vld [vmem:[#allocation38_spill] sm:$0xff]  ;;  %v3584_v23 = vld [vmem:[%s3103_s19 + $0x2a0] sm:$0xff] }
 0x19d   : > { %4990 = vst [vmem:[#allocation151_spill] sm:$0xff] %v3523_v12  ;;  %v5005_v12 = vld [vmem:[#allocation75_spill] sm:$0xff]  ;;  %v750_v39 = vmul.f32 %v3128_v19, %v3545_v25  ;;  %v1466_v54 = vmul.f32 %v5008_v5, %v698_v9  ;;  %v3581_v36 = vld [vmem:[%s3103_s19 + $0x298] sm:$0xff]  ;;  %v1478_v55 = vmul.f32 %v5012_v17, %v710_v32  ;;  %v5014_v9 = vld [vmem:[#allocation61_spill] sm:$0xff]  ;;  %v737_v32 = vmul.f32 %v3169_v50, %v3574_v48 }
 0x19e   : > { %4991 = vst [vmem:[#allocation152_spill] sm:$0xff] %v3530_v2  ;;  %v1516_v15 = vmul.f32 %v5005_v12, %v748_v3  ;;  %v1477_v2 = vmul.f32 %v5007_v56, %v709_v58  ;;  %v1632_v45 = vadd.f32 %v1631_v21, %v1490_v7  ;;  %v724_v3 = vmul.f32 %v3229_v37, %v3558_v59  ;;  %v3595_v58 = vld [vmem:[%s3103_s19 + $0x178] sm:$0xff] }
 0x19f   : > { %4992 = vst [vmem:[#allocation153_spill] sm:$0xff] %v3533_v43  ;;  %v1649_v43 = vadd.f32 %v1648_v29, %v1502_v44  ;;  %v1491_v21 = vmul.f32 %v5014_v9, %v723_v6  ;;  %v725_v7 = vmul.f32 %v3239_v31, %v3570_v14  ;;  %v5015_v44 = vld [vmem:[#allocation73_spill] sm:$0xff]  ;;  %v3610_v6 = vadd.f32 %v3475_v27, %v3478_v28  ;;  %v3624_v28 = vpop.permute.xlu0 %1363 }
 0x1a0   : > { %4993 = vst [vmem:[#allocation154_spill] sm:$0xff] %v3539_v34  ;;  %v3587_v34 = vld [vmem:[%s3103_s19 + $0x160] sm:$0xff]  ;;  %v1669_v12 = vadd.f32 %v1517_v16, %v1516_v15  ;;  %v1503_v29 = vmul.f32 %v5015_v44, %v735_v20  ;;  %v1614_v17 = vadd.f32 %v1613_v63, %v1477_v2  ;;  %v752_v16 = vmul.f32 %v3154_v46, %v3584_v23  ;;  %v3614_v2 = vpop.permute.xlu1 %1368 }
 0x1a1   : > { %4997 = vst [vmem:[#allocation155_spill] sm:$0xff] %v3545_v25  ;;  %v736_v25 = vmul.f32 %v3154_v46, %v3563_v33  ;;  %v712_v20 = vmul.f32 %v3308_v38, %v3587_v34  ;;  %v1633_v44 = vadd.f32 %v1632_v45, %v1491_v21  ;;  %v1598_v63 = vadd.f32 %v1597_v40, %v1466_v54  ;;  %v3628_v45 = vld [vmem:[%s3103_s19 + $0x170] sm:$0xff] }
 0x1a2   : > { %4998 = vst [vmem:[#allocation156_spill] sm:$0xff] %v3547_v4  ;;  %v5025_v40 = vld [vmem:[#allocation65_spill] sm:$0xff] }
 0x1a3   : > { %5001 = vst [vmem:[#allocation157_spill] sm:$0xff] %v3555_v1  ;;  %v1493_v54 = vmul.f32 %v5025_v40, %v725_v7  ;;  %v3647_v7 = vld [vmem:[%s3103_s19 + $0x1d8] sm:$0xff] }
 0x1a4   : > { %5002 = vst [vmem:[#allocation158_spill] sm:$0xff] %v3558_v59  ;;  %v751_v59 = vmul.f32 %v3142_v30, %v3581_v36 }
 0x1a5   : > { %5003 = vst [vmem:[#allocation159_spill] sm:$0xff] %v3563_v33  ;;  %v5016_v33 = vld [vmem:[#allocation87_spill] sm:$0xff] }
 0x1a6   : > { %5004 = vst [vmem:[#allocation160_spill] sm:$0xff] %v3570_v14  ;;  %v1518_v15 = vmul.f32 %v5016_v33, %v750_v39  ;;  %v715_v39 = vmul.f32 %v3410_v18, %v3595_v58  ;;  %v3619_v33 = vld [vmem:[%s3103_s19 + $0x1d0] sm:$0xff]  ;;  %v5022_v14 = vld [vmem:[#allocation51_spill] sm:$0xff] }
 0x1a7   : > { %5006 = vst [vmem:[#allocation161_spill] sm:$0xff] %v3574_v48  ;;  %v1650_v48 = vadd.f32 %v1649_v43, %v1503_v29  ;;  %v1492_v9 = vmul.f32 %v5022_v14, %v724_v3  ;;  %v5024_v43 = vld [vmem:[#allocation63_spill] sm:$0xff]  ;;  %v5026_v29 = vld [vmem:[#allocation77_spill] sm:$0xff]  ;;  %v3642_v3 = vld [vmem:[%s3103_s19 + $0x168] sm:$0xff] }
 0x1a8   : > { %5009 = vst [vmem:[#allocation162_spill] sm:$0xff] %v3581_v36  ;;  %v1615_v36 = vadd.f32 %v1614_v17, %v1478_v55  ;;  %v1670_v27 = vadd.f32 %v1669_v12, %v1518_v15  ;;  %v1504_v21 = vmul.f32 %v5024_v43, %v736_v25  ;;  %v3634_v55 = vld [vmem:[%s3103_s19 + $0x2a8] sm:$0xff]  ;;  %v3636_v17 = vpop.permute.xlu2 %1388  ;;  %v5029_v12 = vld [vmem:[#allocation37_spill] sm:$0xff]  ;;  %v5032_v14 = vld [vmem:[#allocation78_spill] sm:$0xff] }
 0x1a9   : > { %5010 = vst [vmem:[#allocation163_spill] sm:$0xff] %v3584_v23  ;;  %v3622_v23 = vld [vmem:[%s3103_s19 + $0x230] sm:$0xff]  ;;  %v1467_v15 = vmul.f32 %v5029_v12, %v3520_v13  ;;  %v1519_v5 = vmul.f32 %v5032_v14, %v751_v59  ;;  %v5033_v25 = vld [vmem:[#allocation94_spill] sm:$0xff]  ;;  %v3657_v59 = vmul.f32 %v3395_v35, %v3628_v45  ;;  %v753_v14 = vmul.f32 %v3169_v50, %v3634_v55 }
 0x1aa   : > { %5011 = vst [vmem:[#allocation164_spill] sm:$0xff] %v3587_v34  ;;  %v5030_v34 = vld [vmem:[#allocation49_spill] sm:$0xff]  ;;  %v1520_v43 = vmul.f32 %v5033_v25, %v752_v16  ;;  %v738_v13 = vmul.f32 %v3191_v47, %v3622_v23  ;;  %v1651_v40 = vadd.f32 %v1650_v48, %v1504_v21  ;;  %v3660_v16 = vld [vmem:[%s3103_s19 + $0x238] sm:$0xff]  ;;  %v3663_v25 = vld [vmem:[%s3103_s19 + $0x240] sm:$0xff]  ;;  %v713_v48 = vmul.f32 %v3349_v22, %v3642_v3 }
 0x1ab   : > { %5013 = vst [vmem:[#allocation165_spill] sm:$0xff] %v3595_v58  ;;  %v1505_v58 = vmul.f32 %v5026_v29, %v737_v32  ;;  %v1479_v56 = vmul.f32 %v5030_v34, %v711_v24  ;;  %v726_v32 = vmul.f32 %v3272_v61, %v3619_v33  ;;  %v1634_v29 = vadd.f32 %v1633_v44, %v1492_v9  ;;  %v5042_v12 = vld [vmem:[#allocation42_spill] sm:$0xff] }
 0x1ac   : > { %5017 = vst [vmem:[#allocation166_spill] sm:$0xff] %v3610_v6  ;;  %v3653_v24 = vadd.f32 %v1598_v63, %v1467_v15  ;;  %v1671_v9 = vadd.f32 %v1670_v27, %v1519_v5  ;;  %v3670_v15 = vld [vmem:[%s3103_s19 + $0x2b0] sm:$0xff] }
 0x1ad   : > { %5018 = vst [vmem:[#allocation167_spill] sm:$0xff] %v3614_v2  ;;  %v1616_v44 = vadd.f32 %v1615_v36, %v1479_v56  ;;  %v1635_v63 = vadd.f32 %v1634_v29, %v1493_v54  ;;  %v1652_v21 = vadd.f32 %v1651_v40, %v1505_v58  ;;  %v727_v56 = vmul.f32 %v3298_v41, %v3647_v7  ;;  %v3685_v5 = vld [vmem:[%s3103_s19 + $0x1f0] sm:$0xff]  ;;  %v5044_v58 = vld [vmem:[#allocation64_spill] sm:$0xff]  ;;  %v3691_v54 = vld [vmem:[%s3103_s19 + $0x1e0] sm:$0xff] }
 0x1ae   : > { %5019 = vst [vmem:[#allocation168_spill] sm:$0xff] %v3619_v33  ;;  %v3676_v33 = vld [vmem:[%s3103_s19 + $0x388] sm:$0xff]  ;;  %v1672_v36 = vadd.f32 %v1671_v9, %v1520_v43  ;;  %v1494_v27 = vmul.f32 %v5044_v58, %v726_v32  ;;  %v739_v40 = vmul.f32 %v3206_v26, %v3660_v16  ;;  %v754_v43 = vmul.f32 %v3191_v47, %v3670_v15  ;;  %v5049_v32 = vld [vmem:[#allocation93_spill] sm:$0xff] }
 0x1af   : > { %5020 = vst [vmem:[#allocation169_spill] sm:$0xff] %v3622_v23  ;;  %v3673_v23 = vld [vmem:[%s3103_s19 + $0x2b8] sm:$0xff]  ;;  %v5046_v29 = vld [vmem:[#allocation76_spill] sm:$0xff]  ;;  %v1521_v9 = vmul.f32 %v5049_v32, %v753_v14  ;;  %v728_v10 = vmul.f32 %v3308_v38, %v3691_v54 }
 0x1b0   : > { %5021 = vst [vmem:[#allocation170_spill] sm:$0xff] %v3624_v28  ;;  %v3707_v58 = vld [vmem:[%s3103_s19 + $0x308] sm:$0xff]  ;;  %v1636_v14 = vadd.f32 %v1635_v63, %v1494_v27  ;;  %v3743_v27 = vld [vmem:[%s3103_s19 + $0x390] sm:$0xff] }
 0x1b1   : > { %5023 = vst [vmem:[#allocation171_spill] sm:$0xff] %v3628_v45  ;;  %v5041_v45 = vld [vmem:[#allocation39_spill] sm:$0xff] }
 0x1b2   : > { %5027 = vst [vmem:[#allocation172_spill] sm:$0xff] %v3634_v55  ;;  %v1480_v34 = vmul.f32 %v5041_v45, %v712_v20  ;;  %v3680_v55 = vmul.f32 %v5042_v12, %v715_v39  ;;  %v740_v20 = vmul.f32 %v3229_v37, %v3663_v25  ;;  %v3697_v39 = vld [vmem:[%s3103_s19 + $0x380] sm:$0xff]  ;;  %v5053_v45 = vld [vmem:[#allocation54_spill] sm:$0xff] }
 0x1b3   : > { %5028 = vst [vmem:[#allocation173_spill] sm:$0xff] %v3636_v17 }
 0x1b4   : > { %5031 = vst [vmem:[#allocation174_spill] sm:$0xff] %v3642_v3  ;;  %v1506_v3 = vmul.f32 %v5046_v29, %v738_v13  ;;  %v3710_v13 = vld [vmem:[%s3103_s19 + $0x300] sm:$0xff]  ;;  %v3714_v29 = vpop.permute.xlu0 %1378  ;;  %v1617_v12 = vadd.f32 %v1616_v44, %v1480_v34  ;;  %v780_v34 = vmul.f32 %v3116_v8, %v3697_v39  ;;  %v5056_v44 = vld [vmem:[#allocation66_spill] sm:$0xff] }
 0x1b5   : > { %5034 = vst [vmem:[#allocation175_spill] sm:$0xff] %v3647_v7  ;;  %v3699_v7 = vpop.permute.xlu1 %1383  ;;  %v1507_v6 = vmul.f32 %v5056_v44, %v739_v40 }
 0x1b6   : > { %5035 = vst [vmem:[#allocation176_spill] sm:$0xff] %v3653_v24  ;;  %v1653_v32 = vadd.f32 %v1652_v21, %v1506_v3  ;;  %v3734_v3 = vld [vmem:[%s3103_s19 + $0x2c0] sm:$0xff]  ;;  %v765_v21 = vmul.f32 %v3110_v52, %v3707_v58 }
 0x1b7   : > { %5036 = vst [vmem:[#allocation177_spill] sm:$0xff] %v3660_v16  ;;  %v755_v16 = vmul.f32 %v3206_v26, %v3673_v23 }
 0x1b8   : > { %5037 = vst [vmem:[#allocation178_spill] sm:$0xff] %v3663_v25  ;;  %v781_v25 = vmul.f32 %v3110_v52, %v3676_v33  ;;  %v742_v52 = vmul.f32 %v3272_v61, %v3724_v11 }
 0x1b9   : > { %5038 = vst [vmem:[#allocation179_spill] sm:$0xff] %v3670_v15  ;;  %v3718_v15 = vmul.f32 %v3395_v35, %v3685_v5 }
 0x1ba   : > { %5039 = vst [vmem:[#allocation180_spill] sm:$0xff] %v3673_v23  ;;  %v1495_v23 = vmul.f32 %v5053_v45, %v727_v56  ;;  %v764_v56 = vmul.f32 %v3116_v8, %v3710_v13  ;;  %v741_v8 = vmul.f32 %v3239_v31, %v3727_v49 }
 0x1bb   : > { %5040 = vst [vmem:[#allocation181_spill] sm:$0xff] %v3676_v33  ;;  %v1673_v33 = vadd.f32 %v1672_v36, %v1521_v9  ;;  %v3740_v36 = vpop.permute.xlu2 %1398  ;;  %v5061_v9 = vld [vmem:[#allocation53_spill] sm:$0xff] }
 0x1bc   : > { %5043 = vst [vmem:[#allocation182_spill] sm:$0xff] %v3685_v5  ;;  %v5057_v5 = vld [vmem:[#allocation80_spill] sm:$0xff]  ;;  %v1481_v40 = vmul.f32 %v5061_v9, %v713_v48  ;;  %v1637_v45 = vadd.f32 %v1636_v14, %v1495_v23  ;;  %v3765_v23 = vld [vmem:[%s3103_s19 + $0x2d0] sm:$0xff]  ;;  %v1548_v14 = vmul.f32 %v3444_v62, %v780_v34  ;;  %v1532_v9 = vmul.f32 %v3402_v60, %v764_v56  ;;  %v5074_v62 = vld [vmem:[#allocation79_spill] sm:$0xff] }
 0x1bd   : > { %5045 = vst [vmem:[#allocation183_spill] sm:$0xff] %v3691_v54  ;;  %v1508_v63 = vmul.f32 %v5057_v5, %v740_v20  ;;  %v5063_v20 = vld [vmem:[#allocation98_spill] sm:$0xff]  ;;  %v1549_v54 = vmul.f32 %v3624_v28, %v781_v25  ;;  %v3757_v48 = vld [vmem:[%s3103_s19 + $0x2c8] sm:$0xff]  ;;  %v756_v25 = vmul.f32 %v3229_v37, %v3734_v3 }
 0x1be   : > { %5047 = vst [vmem:[#allocation184_spill] sm:$0xff] %v3697_v39  ;;  %v5062_v39 = vld [vmem:[#allocation83_spill] sm:$0xff]  ;;  %v1523_v5 = vmul.f32 %v5063_v20, %v755_v16  ;;  %v3769_v28 = vld [vmem:[%s3103_s19 + $0x318] sm:$0xff] }
 0x1bf   : > { %5048 = vst [vmem:[#allocation185_spill] sm:$0xff] %v3699_v7  ;;  %v1522_v44 = vmul.f32 %v5062_v39, %v754_v43  ;;  %v3760_v43 = vld [vmem:[%s3103_s19 + $0x310] sm:$0xff]  ;;  %v767_v60 = vmul.f32 %v3142_v30, %v3769_v28 }
 0x1c0   : > { %5050 = vst [vmem:[#allocation186_spill] sm:$0xff] %v3707_v58  ;;  %v1654_v58 = vadd.f32 %v1653_v32, %v1507_v6  ;;  %v782_v6 = vmul.f32 %v3128_v19, %v3743_v27  ;;  %v5069_v32 = vld [vmem:[#allocation68_spill] sm:$0xff]  ;;  %v766_v56 = vmul.f32 %v3128_v19, %v3760_v43 }
 0x1c1   : > { %5051 = vst [vmem:[#allocation187_spill] sm:$0xff] %v3710_v13  ;;  %v3754_v13 = vld [vmem:[%s3103_s19 + $0x258] sm:$0xff]  ;;  %v1674_v16 = vadd.f32 %v1673_v33, %v1522_v44  ;;  %v1496_v20 = vmul.f32 %v5069_v32, %v728_v10  ;;  %v3782_v33 = vpop.permute.xlu1 %1318  ;;  %v3785_v44 = vld [vmem:[%s3103_s19 + $0x1e8] sm:$0xff] }
 0x1c2   : > { %5052 = vst [vmem:[#allocation188_spill] sm:$0xff] %v3714_v29  ;;  %v1655_v39 = vadd.f32 %v1654_v58, %v1508_v63  ;;  %v743_v34 = vmul.f32 %v3298_v41, %v3754_v13  ;;  %v1711_v58 = vadd.f32 %v1549_v54, %v1548_v14  ;;  %v3791_v63 = vpop.permute.xlu0 %1393  ;;  %v1550_v54 = vmul.f32 %v3614_v2, %v782_v6  ;;  %v5078_v6 = vld [vmem:[#allocation69_spill] sm:$0xff] }
 0x1c3   : > { %5054 = vst [vmem:[#allocation189_spill] sm:$0xff] %v3724_v11  ;;  %v3775_v11 = vld [vmem:[%s3103_s19 + $0x398] sm:$0xff]  ;;  %v1675_v10 = vadd.f32 %v1674_v16, %v1523_v5  ;;  %v5076_v16 = vld [vmem:[#allocation52_spill] sm:$0xff]  ;;  %v729_v14 = vmul.f32 %v3349_v22, %v3785_v44 }
 0x1c4   : > { %5055 = vst [vmem:[#allocation190_spill] sm:$0xff] %v3727_v49  ;;  %v1533_v49 = vmul.f32 %v3387_v0, %v765_v21  ;;  %v1509_v21 = vmul.f32 %v5074_v62, %v741_v8  ;;  %v758_v0 = vmul.f32 %v3272_v61, %v3765_v23  ;;  %v783_v5 = vmul.f32 %v3142_v30, %v3775_v11  ;;  %v5080_v62 = vld [vmem:[#allocation107_spill] sm:$0xff] }
 0x1c5   : > { %5058 = vst [vmem:[#allocation191_spill] sm:$0xff] %v3734_v3  ;;  %v3780_v3 = vld [vmem:[%s3103_s19 + $0x3a0] sm:$0xff]  ;;  %v1482_v19 = vmul.f32 %v5076_v16, %v3657_v59  ;;  %v1712_v30 = vadd.f32 %v1711_v58, %v1550_v54  ;;  %v1534_v24 = vmul.f32 %v5080_v62, %v766_v56  ;;  %v3817_v59 = vld [vmem:[%s3103_s19 + $0x2d8] sm:$0xff] }
 0x1c6   : > { %5059 = vst [vmem:[#allocation192_spill] sm:$0xff] %v3740_v36  ;;  %v784_v8 = vmul.f32 %v3154_v46, %v3780_v3 }
 0x1c7   : > { %5060 = vst [vmem:[#allocation193_spill] sm:$0xff] %v3743_v27  ;;  %v757_v27 = vmul.f32 %v3239_v31, %v3757_v48 }
 0x1c8   : > { %5064 = vst [vmem:[#allocation194_spill] sm:$0xff] %v3754_v13  ;;  %v5075_v13 = vld [vmem:[#allocation97_spill] sm:$0xff] }
 0x1c9   : > { %5065 = vst [vmem:[#allocation195_spill] sm:$0xff] %v3757_v48  ;;  %v1524_v32 = vmul.f32 %v5075_v13, %v756_v25  ;;  %v1618_v25 = vadd.f32 %v1617_v12, %v1481_v40  ;;  %v3811_v13 = vld [vmem:[%s3103_s19 + $0x320] sm:$0xff]  ;;  %v5083_v12 = vld [vmem:[#allocation86_spill] sm:$0xff]  ;;  %v5084_v40 = vld [vmem:[#allocation105_spill] sm:$0xff]  ;;  %v3838_v54 = vpop.permute.xlu1 %1403 }
 0x1ca   : > { %5066 = vst [vmem:[#allocation196_spill] sm:$0xff] %v3760_v43  ;;  %v1690_v43 = vadd.f32 %v1533_v49, %v1532_v9  ;;  %v3823_v49 = vld [vmem:[%s3103_s19 + $0x3a8] sm:$0xff]  ;;  %v1525_v9 = vmul.f32 %v5083_v12, %v757_v27 }
 0x1cb   : > { %5067 = vst [vmem:[#allocation197_spill] sm:$0xff] %v3765_v23  ;;  %v1638_v23 = vadd.f32 %v1637_v45, %v1496_v20  ;;  %v1676_v48 = vadd.f32 %v1675_v10, %v1524_v32  ;;  %v3826_v45 = vld [vmem:[%s3103_s19 + $0x260] sm:$0xff]  ;;  %v1526_v20 = vmul.f32 %v5084_v40, %v758_v0  ;;  %v1552_v32 = vmul.f32 %v3714_v29, %v784_v8  ;;  %v3841_v27 = vld [vmem:[%s3103_s19 + $0x328] sm:$0xff] }
 0x1cc   : > { %5068 = vst [vmem:[#allocation198_spill] sm:$0xff] %v3769_v28  ;;  %v1656_v28 = vadd.f32 %v1655_v39, %v1509_v21  ;;  %v3820_v39 = vpop.permute.xlu2 %1328  ;;  %v768_v21 = vmul.f32 %v3154_v46, %v3811_v13  ;;  %v1691_v56 = vadd.f32 %v1690_v43, %v1534_v24  ;;  %v759_v0 = vmul.f32 %v3298_v41, %v3817_v59  ;;  %v3846_v8 = vld [vmem:[%s3103_s19 + $0x2e8] sm:$0xff]  ;;  %v5091_v24 = vld [vmem:[#allocation57_spill] sm:$0xff] }
 0x1cd   : > { %5070 = vst [vmem:[#allocation199_spill] sm:$0xff] %v3775_v11  ;;  %v1510_v11 = vmul.f32 %v5078_v6, %v742_v52  ;;  %v1551_v52 = vmul.f32 %v3547_v4, %v783_v5  ;;  %v1677_v5 = vadd.f32 %v1676_v48, %v1525_v9  ;;  %v1498_v43 = vmul.f32 %v5091_v24, %v3718_v15  ;;  %v3860_v48 = vld [vmem:[%s3103_s19 + $0x3b0] sm:$0xff] }
 0x1ce   : > { %5071 = vst [vmem:[#allocation200_spill] sm:$0xff] %v3780_v3  ;;  %v5079_v3 = vld [vmem:[#allocation82_spill] sm:$0xff]  ;;  %v744_v4 = vmul.f32 %v3308_v38, %v3826_v45  ;;  %v769_v15 = vmul.f32 %v3169_v50, %v3841_v27 }
 0x1cf   : > { %5072 = vst [vmem:[#allocation201_spill] sm:$0xff] %v3785_v44  ;;  %v1511_v2 = vmul.f32 %v5079_v3, %v743_v34  ;;  %v1535_v44 = vmul.f32 %v3473_v53, %v767_v60  ;;  %v5085_v34 = vld [vmem:[#allocation67_spill] sm:$0xff]  ;;  %v1657_v58 = vadd.f32 %v1656_v28, %v1510_v11  ;;  %v3849_v11 = vld [vmem:[%s3103_s19 + $0x330] sm:$0xff]  ;;  %v785_v28 = vmul.f32 %v3169_v50, %v3823_v49  ;;  %v3866_v53 = vld [vmem:[%s3103_s19 + $0x1f8] sm:$0xff] }
 0x1d0   : > { %5073 = vst [vmem:[#allocation202_spill] sm:$0xff] %v3791_v63  ;;  %v1497_v10 = vmul.f32 %v5085_v34, %v729_v14  ;;  %v3834_v60 = vld [vmem:[%s3103_s19 + $0x2e0] sm:$0xff]  ;;  %v1713_v46 = vadd.f32 %v1712_v30, %v1551_v52  ;;  %v3853_v14 = vpop.permute.xlu0 %1323  ;;  %v1678_v52 = vadd.f32 %v1677_v5, %v1526_v20  ;;  %v5094_v20 = vld [vmem:[#allocation104_spill] sm:$0xff]  ;;  %v1619_v5 = vadd.f32 %v1618_v25, %v1482_v19 }
 0x1d1   : > { %5077 = vst [vmem:[#allocation52_spill] sm:$0xff] %v3811_v13  ;;  %v1692_v9 = vadd.f32 %v1691_v56, %v1535_v44  ;;  %v3863_v13 = vld [vmem:[%s3103_s19 + $0x3b8] sm:$0xff]  ;;  %v1658_v62 = vadd.f32 %v1657_v58, %v1511_v2  ;;  %v760_v30 = vmul.f32 %v3308_v38, %v3834_v60  ;;  %v1536_v44 = vmul.f32 %v3460_v57, %v768_v21 }
 0x1d2   : > { %5081 = vst [vmem:[#allocation69_spill] sm:$0xff] %v3817_v59  ;;  %v1639_v29 = vadd.f32 %v1638_v23, %v1497_v10  ;;  %v3871_v59 = vld [vmem:[%s3103_s19 + $0x268] sm:$0xff]  ;;  %v761_v23 = vmul.f32 %v3349_v22, %v3846_v8  ;;  %v770_v2 = vmul.f32 %v3191_v47, %v3849_v11  ;;  %v3881_v10 = vld [vmem:[%s3103_s19 + $0x270] sm:$0xff]  ;;  %v786_v58 = vmul.f32 %v3191_v47, %v3860_v48 }
 0x1d3   : > { %5082 = vst [vmem:[#allocation82_spill] sm:$0xff] %v3823_v49  ;;  %v1714_v49 = vadd.f32 %v1713_v46, %v1552_v32  ;;  %v1527_v32 = vmul.f32 %v5094_v20, %v759_v0  ;;  %v1553_v50 = vmul.f32 %v3699_v7, %v785_v28  ;;  %v787_v56 = vmul.f32 %v3206_v26, %v3863_v13  ;;  %v5095_v46 = vld [vmem:[#allocation81_spill] sm:$0xff]  ;;  %v3898_v28 = vld [vmem:[%s3103_s19 + $0x338] sm:$0xff]  ;;  %v3922_v7 = vld [vmem:[%s3103_s19 + $0x348] sm:$0xff] }
 0x1d4   : > { %5086 = vst [vmem:[#allocation86_spill] sm:$0xff] %v3834_v60  ;;  %v731_v21 = vmul.f32 %v3410_v18, %v3866_v53  ;;  %v1640_v57 = vadd.f32 %v1639_v29, %v1498_v43  ;;  %v745_v0 = vmul.f32 %v3349_v22, %v3871_v59  ;;  %v3895_v47 = vld [vmem:[%s3103_s19 + $0x2f0] sm:$0xff]  ;;  %v746_v25 = vmul.f32 %v3395_v35, %v3881_v10  ;;  %v3907_v29 = vld [vmem:[%s3103_s19 + $0x3c0] sm:$0xff] }
 0x1d5   : > { %5087 = vst [vmem:[#allocation105_spill] sm:$0xff] %v3838_v54  ;;  %v1538_v43 = vmul.f32 %v3555_v1, %v770_v2  ;;  %v762_v2 = vmul.f32 %v3395_v35, %v3895_v47  ;;  %v771_v1 = vmul.f32 %v3206_v26, %v3898_v28  ;;  %v5108_v20 = vld [vmem:[#allocation85_spill] sm:$0xff] }
 0x1d6   : > { %5088 = vst [vmem:[#allocation67_spill] sm:$0xff] %v3841_v27  ;;  %v1693_v27 = vadd.f32 %v1692_v9, %v1536_v44  ;;  %v3910_v9 = vpop.permute.xlu2 %1413  ;;  %v3915_v44 = vpop.permute.xlu1 %1333  ;;  %v1514_v26 = vmul.f32 %v5108_v20, %v746_v25 }
 0x1d7   : > { %5089 = vst [vmem:[#allocation203_spill] sm:$0xff] %v3846_v8  ;;  %v1679_v8 = vadd.f32 %v1678_v52, %v1527_v32  ;;  %v3913_v52 = vld [vmem:[%s3103_s19 + $0x3c8] sm:$0xff] }
 0x1d8   : > { %5090 = vst [vmem:[#allocation204_spill] sm:$0xff] %v3849_v11  ;;  %v1512_v11 = vmul.f32 %v5095_v46, %v744_v4  ;;  %v1537_v4 = vmul.f32 %v3357_v51, %v769_v15  ;;  %v1555_v15 = vmul.f32 %v3791_v63, %v787_v56  ;;  %v3924_v51 = vpop.permute.xlu0 %1408  ;;  %v788_v56 = vmul.f32 %v3229_v37, %v3907_v29 }
 0x1d9   : > { %5092 = vst [vmem:[#allocation57_spill] sm:$0xff] %v3860_v48  ;;  %v1715_v48 = vadd.f32 %v1714_v49, %v1553_v50  ;;  %v5102_v49 = vld [vmem:[#allocation90_spill] sm:$0xff]  ;;  %v1554_v50 = vmul.f32 %v3636_v17, %v786_v58 }
 0x1da   : > { %5093 = vst [vmem:[#allocation205_spill] sm:$0xff] %v3863_v13  ;;  %v3901_v13 = vld [vmem:[%s3103_s19 + $0x340] sm:$0xff]  ;;  %v1659_v19 = vadd.f32 %v1658_v62, %v1512_v11  ;;  %v1528_v32 = vmul.f32 %v5102_v49, %v760_v30  ;;  %v5103_v62 = vld [vmem:[#allocation118_spill] sm:$0xff]  ;;  %v1694_v60 = vadd.f32 %v1693_v27, %v1537_v4 }
 0x1db   : > { %5096 = vst [vmem:[#allocation81_spill] sm:$0xff] %v3895_v47  ;;  %v1529_v11 = vmul.f32 %v5103_v62, %v761_v23  ;;  %v772_v30 = vmul.f32 %v3229_v37, %v3901_v13  ;;  %v3933_v23 = vld [vmem:[%s3103_s19 + $0x3d0] sm:$0xff]  ;;  %v3936_v58 = vld [vmem:[%s3103_s19 + $0x278] sm:$0xff]  ;;  %v1716_v63 = vadd.f32 %v1715_v48, %v1554_v50  ;;  %v789_v62 = vmul.f32 %v3239_v31, %v3913_v52  ;;  %v5107_v47 = vld [vmem:[#allocation72_spill] sm:$0xff] }
 0x1dc   : > { %5097 = vst [vmem:[#allocation206_spill] sm:$0xff] %v3898_v28  ;;  %v1680_v17 = vadd.f32 %v1679_v8, %v1528_v32  ;;  %v1513_v49 = vmul.f32 %v5107_v47, %v745_v0  ;;  %v3945_v27 = vld [vmem:[%s3103_s19 + $0x2f8] sm:$0xff]  ;;  %v1695_v4 = vadd.f32 %v1694_v60, %v1538_v43  ;;  %v5109_v8 = vld [vmem:[#allocation71_spill] sm:$0xff]  ;;  %v790_v50 = vmul.f32 %v3272_v61, %v3933_v23 }
 0x1dd   : > { %5098 = vst [vmem:[#allocation207_spill] sm:$0xff] %v3901_v13  ;;  %v773_v13 = vmul.f32 %v3239_v31, %v3922_v7  ;;  %v1499_v32 = vmul.f32 %v5109_v8, %v731_v21  ;;  %v1717_v48 = vadd.f32 %v1716_v63, %v1555_v15  ;;  %v747_v0 = vmul.f32 %v3410_v18, %v3936_v58  ;;  %v5110_v43 = vld [vmem:[#allocation114_spill] sm:$0xff]  ;;  %v3961_v63 = vld [vmem:[%s3103_s19 + $0x350] sm:$0xff] }
 0x1de   : > { %5099 = vst [vmem:[#allocation208_spill] sm:$0xff] %v3907_v29  ;;  %v1681_v37 = vadd.f32 %v1680_v17, %v1529_v11  ;;  %v1660_v25 = vadd.f32 %v1659_v19, %v1513_v49  ;;  %v1540_v60 = vmul.f32 %v3782_v33, %v772_v30  ;;  %v763_v31 = vmul.f32 %v3410_v18, %v3945_v27  ;;  %v3965_v15 = vld [vmem:[%s3103_s19 + $0x358] sm:$0xff]  ;;  %v3973_v29 = vld [vmem:[%s3103_s19 + $0x3e0] sm:$0xff] }
 0x1df   : > { %5100 = vst [vmem:[#allocation209_spill] sm:$0xff] %v3910_v9  ;;  %v1530_v21 = vmul.f32 %v5110_v43, %v762_v2  ;;  %v1556_v17 = vmul.f32 %v3740_v36, %v788_v56  ;;  %v1557_v11 = vmul.f32 %v3838_v54, %v789_v62  ;;  %v1620_v19 = vadd.f32 %v1619_v5, %v3680_v55  ;;  %v3975_v2 = vpop.permute.xlu1 %1418  ;;  %v3979_v54 = vld [vmem:[%s3103_s19 + $0x360] sm:$0xff]  ;;  %v5117_v55 = vld [vmem:[#allocation84_spill] sm:$0xff] }
 0x1e0   : > { %5101 = vst [vmem:[#allocation210_spill] sm:$0xff] %v3913_v52  ;;  %v1539_v52 = vmul.f32 %v3549_v42, %v771_v1  ;;  %v1661_v49 = vadd.f32 %v1660_v25, %v1514_v26  ;;  %v3969_v1 = vld [vmem:[%s3103_s19 + $0x3d8] sm:$0xff]  ;;  %v1641_v56 = vadd.f32 %v1640_v57, %v1499_v32  ;;  %v1558_v62 = vmul.f32 %v3924_v51, %v790_v50  ;;  %v3981_v28 = vpop.permute.xlu0 %1338  ;;  %v5118_v57 = vld [vmem:[#allocation96_spill] sm:$0xff] }
 0x1e1   : > { %5104 = vst [vmem:[#allocation211_spill] sm:$0xff] %v3922_v7  ;;  %v1682_v36 = vadd.f32 %v1681_v37, %v1530_v21  ;;  %v1718_v7 = vadd.f32 %v1717_v48, %v1556_v17  ;;  %v1515_v5 = vmul.f32 %v5117_v55, %v747_v0  ;;  %v1531_v32 = vmul.f32 %v5118_v57, %v763_v31  ;;  %v3996_v0 = vld [vmem:[%s3103_s19 + $0x3e8] sm:$0xff] }
 0x1e2   : > { %5105 = vst [vmem:[#allocation212_spill] sm:$0xff] %v3924_v51  ;;  %v1696_v30 = vadd.f32 %v1695_v4, %v1539_v52  ;;  %v774_v52 = vmul.f32 %v3272_v61, %v3961_v63  ;;  %v775_v4 = vmul.f32 %v3298_v41, %v3965_v15  ;;  %v791_v37 = vmul.f32 %v3298_v41, %v3969_v1  ;;  %v5120_v21 = vld [vmem:[#allocation176_spill] sm:$0xff] }
 0x1e3   : > { %5106 = vst [vmem:[#allocation213_spill] sm:$0xff] %v3933_v23  ;;  %v1541_v23 = vmul.f32 %v3853_v14, %v773_v13  ;;  %v3986_v13 = vpop.permute.xlu2 %1343  ;;  %v1719_v48 = vadd.f32 %v1718_v7, %v1557_v11  ;;  %v792_v50 = vmul.f32 %v3308_v38, %v3973_v29  ;;  %v1662_v61 = vadd.f32 %v1661_v49, %v1515_v5  ;;  %v4008_v5 = vld [vmem:[%s3103_s19 + $0x368] sm:$0xff] }
 0x1e4   : > { %5111 = vst [vmem:[#allocation72_spill] sm:$0xff] %v3961_v63  ;;  %v1697_v26 = vadd.f32 %v1696_v30, %v1540_v60  ;;  %v776_v60 = vmul.f32 %v3308_v38, %v3979_v54  ;;  %v1600_v17 = vrot.slane %v5120_v21, 4  ;;  %v1621_v31 = vrot.slane %v1620_v19, 4 }
 0x1e5   : > { %5112 = vst [vmem:[#allocation85_spill] sm:$0xff] %v3965_v15  ;;  %v1683_v30 = vadd.f32 %v1682_v36, %v1531_v32  ;;  %v1720_v51 = vadd.f32 %v1719_v48, %v1558_v62  ;;  %v1542_v41 = vmul.f32 %v3820_v39, %v774_v52  ;;  %v1543_v7 = vmul.f32 %v3915_v44, %v775_v4  ;;  %v4015_v62 = vld [vmem:[%s3103_s19 + $0x3f0] sm:$0xff] }
 0x1e6   : > { %5113 = vst [vmem:[#allocation71_spill] sm:$0xff] %v3969_v1  ;;  %v1698_v25 = vadd.f32 %v1697_v26, %v1541_v23  ;;  %v793_v11 = vmul.f32 %v3349_v22, %v3996_v0  ;;  %v1642_v49 = vrot.slane %v1641_v56, 4  ;;  %v1559_v23 = vmul.f32 %v3910_v9, %v791_v37  ;;  %v4012_v26 = vld [vmem:[%s3103_s19 + $0x370] sm:$0xff] }
 0x1e7   : > { %5114 = vst [vmem:[#allocation114_spill] sm:$0xff] %v3973_v29  ;;  %v5121_v29 = vld [vmem:[#allocation166_spill] sm:$0xff]  ;;  %v1560_v38 = vmul.f32 %v3975_v2, %v792_v50  ;;  %v1663_v36 = vrot.slane %v1662_v61, 4  ;;  %v1544_v4 = vmul.f32 %v3981_v28, %v776_v60  ;;  %v4018_v32 = vpop.permute.xlu1 %1348  ;;  %v1601_v48 = vadd.f32 %v1600_v17, %v5120_v21 }
 0x1e8   : > { %5115 = vst [vmem:[#allocation214_spill] sm:$0xff] %v3975_v2  ;;  %v1579_v1 = vrot.slane %v5121_v29, 4  ;;  %v1699_v52 = vadd.f32 %v1698_v25, %v1542_v41  ;;  %v1684_v37 = vrot.slane %v1683_v30, 4  ;;  %v1721_v9 = vadd.f32 %v1720_v51, %v1559_v23  ;;  %v4029_v60 = vld [vmem:[%s3103_s19 + $0x3f8] sm:$0xff] }
 0x1e9   : > { %5116 = vst [vmem:[#allocation215_spill] sm:$0xff] %v3979_v54  ;;  %v4021_v54 = vpop.permute.xlu0 %1423  ;;  %v777_v50 = vmul.f32 %v3349_v22, %v4008_v5  ;;  %v778_v15 = vmul.f32 %v3395_v35, %v4012_v26  ;;  %v1643_v63 = vadd.f32 %v1642_v49, %v1641_v56  ;;  %v4035_v21 = vld [vmem:[%s3103_s19 + $0x378] sm:$0xff]  ;;  %v1664_v17 = vadd.f32 %v1663_v36, %v1662_v61 }
 0x1ea   : > { %5119 = vst [vmem:[#allocation84_spill] sm:$0xff] %v3996_v0  ;;  %v1622_v0 = vadd.f32 %v1621_v31, %v1620_v19  ;;  %v1700_v2 = vadd.f32 %v1699_v52, %v1543_v7  ;;  %v1561_v25 = vmul.f32 %v4021_v54, %v793_v11  ;;  %v1580_v41 = vadd.f32 %v1579_v1, %v5121_v29 }
 0x1eb   : > { %5122 = vst [vmem:[#allocation96_spill] sm:$0xff] %v4015_v62  ;;  %v794_v19 = vmul.f32 %v3395_v35, %v4015_v62  ;;  %v1722_v51 = vadd.f32 %v1721_v9, %v1560_v38  ;;  %v4037_v31 = vpop.permute.xlu2 %1428  ;;  %v1602_v7 = vrot.slane %v1601_v48, 2  ;;  %v1685_v23 = vadd.f32 %v1684_v37, %v1683_v30 }
 0x1ec   : > { %5123 = vst [vmem:[#allocation176_spill] sm:$0xff] %v4021_v54  ;;  %v1701_v22 = vadd.f32 %v1700_v2, %v1544_v4  ;;  %v795_v11 = vmul.f32 %v3410_v18, %v4029_v60  ;;  %v1623_v54 = vrot.slane %v1622_v0, 2  ;;  %v1545_v29 = vmul.f32 %v3986_v13, %v777_v50 }
 0x1ed   : > { %5124 = vst [vmem:[#allocation166_spill] sm:$0xff] %v4029_v60  ;;  %v1723_v52 = vadd.f32 %v1722_v51, %v1561_v25  ;;  %v1546_v1 = vmul.f32 %v4018_v32, %v778_v15  ;;  %v779_v35 = vmul.f32 %v3410_v18, %v4035_v21  ;;  %v1581_v9 = vrot.slane %v1580_v41, 2 }
 0x1ee   : > { %5125 = vst [vmem:[#allocation216_spill] sm:$0xff] %v4035_v21  ;;  %v1644_v56 = vrot.slane %v1643_v63, 2  ;;  %v1562_v61 = vmul.f32 %v4037_v31, %v794_v19  ;;  %v1665_v2 = vrot.slane %v1664_v17, 2  ;;  %v1702_v49 = vadd.f32 %v1701_v22, %v1545_v29 }
 0x1ef   : > { %5126 = vst [vmem:[#allocation217_spill] sm:$0xff] %v4037_v31  ;;  %v4046_v30 = vpop.permute.xlu1 %1433  ;;  %v1603_v38 = vadd.f32 %v1602_v7, %v1601_v48  ;;  %v1686_v36 = vrot.slane %v1685_v23, 2  ;;  %v1624_v15 = vadd.f32 %v1623_v54, %v1622_v0  ;;  %v1582_v51 = vadd.f32 %v1581_v9, %v1580_v41 }
 0x1f0   : > { %v1563_v4 = vmul.f32 %v4046_v30, %v795_v11  ;;  %v1724_v37 = vadd.f32 %v1723_v52, %v1562_v61  ;;  %v1703_v25 = vadd.f32 %v1702_v49, %v1546_v1  ;;  %v1645_v60 = vadd.f32 %v1644_v56, %v1643_v63 }
 0x1f1   : > { %v4049_v50 = vpop.permute.xlu0 %1353  ;;  %v1666_v19 = vadd.f32 %v1665_v2, %v1664_v17  ;;  %v1604_v29 = vrot.slane %v1603_v38, 1  ;;  %v1687_v31 = vadd.f32 %v1686_v36, %v1685_v23  ;;  %v1625_v7 = vrot.slane %v1624_v15, 1 }
 0x1f2   : > { %v1547_v18 = vmul.f32 %v4049_v50, %v779_v35  ;;  %v1725_v62 = vadd.f32 %v1724_v37, %v1563_v4  ;;  %v1583_v11 = vrot.slane %v1582_v51, 1  ;;  %v1646_v52 = vrot.slane %v1645_v60, 1 }
 0x1f3   : > { %v1667_v54 = vrot.slane %v1666_v19, 1  ;;  %v1605_v1 = vadd.f32 %v1604_v29, %v1603_v38  ;;  %v1688_v41 = vrot.slane %v1687_v31, 1  ;;  %v1626_v35 = vadd.f32 %v1625_v7, %v1624_v15 }
 0x1f4   : > { %v1704_v22 = vadd.f32 %v1703_v25, %v1547_v18  ;;  %v1726_v48 = vrot.slane %v1725_v62, 4  ;;  %v1584_v9 = vadd.f32 %v1583_v11, %v1582_v51  ;;  %v1647_v23 = vadd.f32 %v1646_v52, %v1645_v60  ;;  %v395_v51 = vld [vmem:[%s369_s18] sm:$0xff] }
 0x1f5   : > { %v1668_v2 = vadd.f32 %v1667_v54, %v1666_v19  ;;  %v1689_v36 = vadd.f32 %v1688_v41, %v1687_v31  ;;  %v2718_v31 = vld [vmem:[%s4605_s4] ss:$0 sm:$0xff]  ;;  %v1766_v11 = vstv %s1765_s24 }
 0x1f6   : > { %v1705_v21 = vrot.slane %v1704_v22, 4  ;;  %v1727_v61 = vadd.f32 %v1726_v48, %v1725_v62  ;;  %v1741_v62 = vsel %vm1740_vm0, %v1605_v1, %v1584_v9  ;;  %v2719_v54 = vld [vmem:[%s4607_s6] ss:$0 sm:$0xff]  ;;  %v5127_v9 = vld [vmem:[#allocation8_spill] sm:$0xff] }
 0x1f7   : > { %v1743_v37 = vsel %vm1742_vm1, %v1626_v35, %v1741_v62  ;;  %v2720_v1 = vld [vmem:[%s4608_s7] ss:$0 sm:$0xff] }
 0x1f8   : > { %v1706_v0 = vadd.f32 %v1705_v21, %v1704_v22  ;;  %v1728_v63 = vrot.slane %v1727_v61, 2  ;;  %v1745_v38 = vsel %vm1744_vm2, %v1647_v23, %v1743_v37  ;;  %v5131_v37 = vld [vmem:[#allocation3_spill] sm:$0xff] }
 0x1f9   : > { %v1747_v60 = vsel %vm1746_vm3, %v1668_v2, %v1745_v38  ;;  %v5132_v38 = vld [vmem:[#allocation4_spill] sm:$0xff] }
 0x1fa   : > { %v1707_v17 = vrot.slane %v1706_v0, 2  ;;  %v1729_v56 = vadd.f32 %v1728_v63, %v1727_v61  ;;  %v1749_v18 = vsel %vm1748_vm4, %v1689_v36, %v1747_v60  ;;  %v5130_v36 = vld [vmem:[#allocation10_spill] sm:$0xff] }
 0x1fb   : > { %v5133_v60 = vld [vmem:[#allocation14_spill] sm:$0xff] }
 0x1fc   : > { %v1708_v49 = vadd.f32 %v1707_v17, %v1706_v0  ;;  %v1730_v4 = vrot.slane %v1729_v56, 1 }
 0x1fe   : > { %v1709_v21 = vrot.slane %v1708_v49, 1  ;;  %v1731_v15 = vadd.f32 %v1730_v4, %v1729_v56  ;;  %v5128_v56 = vld [vmem:[#allocation11_spill] sm:$0xff] }
 0x200   : > { %v1710_v25 = vadd.f32 %v1709_v21, %v1708_v49  ;;  %v5129_v49 = vld [vmem:[#allocation7_spill] sm:$0xff] }
 0x202   : > { %v1751_v19 = vsel %vm1750_vm5, %v1710_v25, %v1749_v18  ;;  %v2725_v18 = vld [vmem:[%s3103_s19] sm:$0xff] }
 0x203   : > { %v1753_v22 = vsel %vm1752_vm6, %v1731_v15, %v1751_v19  ;;  %v5134_v19 = vld [vmem:[#allocation13_spill] sm:$0xff] }
 0x204   : > { %v1755_v29 = vadd.f32 %v1753_v22, %v395_v51 }
 0x206   : > { %2721 = vtanh.f32 %v1755_v29  ;;  %v2726_v29 = vld [vmem:[%s3103_s19 + $0x8] sm:$0xff] }
 0x20c   : > { %v2722_v48 = vpop.eup %2721 }
 0x20d   : > { %1757 = vst [vmem:[%s387_s23] sm:$0xff] %v2722_v48  ;;  %v1762_v7 = vmul.f32 %v2722_v48, %v2718_v31 }
 0x20f   : > { %1763 = vadd.xlane.f32.xlu2 %v1762_v7 }
 0x282   : > { %v1764_v52 = vpop.xlane.xlu2 %1763 }
 0x283   : > { %v1767_v61 = vadd.f32 %v1766_v11, %v1764_v52  ;;  %v2728_v11 = vld [vmem:[%s3103_s19 + $0x18] sm:$0xff] }
 0x285   : > { %2723 = vtanh.f32 %v1767_v61 }
 0x28b   : > { %v2724_v0 = vpop.eup %2723 }
 0x28c   : > { %v1773_v41 = vmul.f32 %v2724_v0, %v2719_v54  ;;  %v5135_v54 = vld [vmem:[#allocation5_spill] sm:$0xff] }
 0x28e   : > { %v1778_v63 = vadd.f32 %v2720_v1, %v1773_v41  ;;  %v2729_v1 = vld [vmem:[%s3103_s19 + $0x20] sm:$0xff] }
 0x290   : > { %v4072_v35 = vmul.f32 %v2722_v48, %v1778_v63  ;;  %v2727_v48 = vld [vmem:[%s3103_s19 + $0x10] sm:$0xff] }
 0x291   : > { %v5136_v63 = vld [vmem:[#allocation17_spill] sm:$0xff] }
 0x292   : > { %v1788_v17 = vperm.slane %v4072_v35, 0  ;;  %v1781_v61 = vrot.slane %v4072_v35, 1 }
 0x294   : > { %v1804_v23 = vmul.f32 %v1788_v17, %v5127_v9  ;;  %v1805_v2 = vmul.f32 %v1788_v17, %v5128_v56  ;;  %v1806_v62 = vmul.f32 %v1788_v17, %v5129_v49  ;;  %v1807_v4 = vmul.f32 %v1788_v17, %v5130_v36 }
 0x295   : > { %v1808_v21 = vmul.f32 %v1788_v17, %v5131_v37  ;;  %v1809_v15 = vmul.f32 %v1788_v17, %v5132_v38  ;;  %v1810_v25 = vmul.f32 %v1788_v17, %v5133_v60  ;;  %v1811_v22 = vmul.f32 %v1788_v17, %v5134_v19 }
 0x296   : > { %v1932_v51 = vadd.f32 %v2725_v18, %v1804_v23  ;;  %v1933_v31 = vadd.f32 %v2726_v29, %v1805_v2  ;;  %v1934_v7 = vadd.f32 %v2727_v48, %v1806_v62  ;;  %v1935_v52 = vadd.f32 %v2728_v11, %v1807_v4  ;;  %v2730_v23 = vld [vmem:[%s3103_s19 + $0x28] sm:$0xff]  ;;  %v5138_v62 = vld [vmem:[#allocation6_spill] sm:$0xff]  ;;  %v2731_v4 = vld [vmem:[%s3103_s19 + $0x30] sm:$0xff] }
 0x297   : > { %v1812_v0 = vmul.f32 %v1788_v17, %v5135_v54  ;;  %v1936_v41 = vadd.f32 %v2729_v1, %v1808_v21  ;;  %v1813_v9 = vmul.f32 %v1788_v17, %v5136_v63  ;;  %v1937_v56 = vadd.f32 %v2730_v23, %v1809_v15  ;;  %v5137_v2 = vld [vmem:[#allocation16_spill] sm:$0xff]  ;;  %v2732_v21 = vld [vmem:[%s3103_s19 + $0x38] sm:$0xff]  ;;  %v2733_v15 = vld [vmem:[%s3103_s19 + $0x40] sm:$0xff] }
 0x298   : > { %v1814_v49 = vmul.f32 %v1788_v17, %v5137_v2  ;;  %v1815_v36 = vmul.f32 %v1788_v17, %v5138_v62  ;;  %v1938_v37 = vadd.f32 %v2731_v4, %v1810_v25  ;;  %v2573_v38 = vclamps-f32 %v1932_v51, 2.0  ;;  %v5139_v11 = vld [vmem:[#allocation20_spill] sm:$0xff]  ;;  %v5140_v23 = vld [vmem:[#allocation19_spill] sm:$0xff]  ;;  %v5141_v2 = vld [vmem:[#allocation101_spill] sm:$0xff] }
 0x299   : > { %v1939_v60 = vadd.f32 %v2732_v21, %v1811_v22  ;;  %v2574_v18 = vclamps-f32 %v1933_v31, 2.0  ;;  %v2575_v19 = vclamps-f32 %v1934_v7, 2.0  ;;  %v2576_v29 = vclamps-f32 %v1935_v52, 2.0  ;;  %v5142_v22 = vld [vmem:[#allocation9_spill] sm:$0xff]  ;;  %v5143_v7 = vld [vmem:[#allocation108_spill] sm:$0xff]  ;;  %v5144_v4 = vld [vmem:[#allocation23_spill] sm:$0xff] }
 0x29a   : > { %v4102_v48 = vperm.slane %v1781_v61, 0  ;;  %v1816_v54 = vmul.f32 %v1788_v17, %v5139_v11  ;;  %v1940_v1 = vadd.f32 %v2733_v15, %v1812_v0  ;;  %v2577_v63 = vclamps-f32 %v1936_v41, 2.0  ;;  %2316 = vst [vmem:[%s4094_s10] sm:$0xff] %v2573_v38  ;;  %v5145_v0 = vld [vmem:[#allocation111_spill] sm:$0xff]  ;;  %v5146_v11 = vld [vmem:[#allocation22_spill] sm:$0xff] }
 0x29b   : > { %v1817_v25 = vmul.f32 %v1788_v17, %v5140_v23  ;;  %v1941_v51 = vadd.f32 %v1813_v9, %v5141_v2  ;;  %v2578_v62 = vclamps-f32 %v1937_v56, 2.0  ;;  %2317 = vst [vmem:[%s4094_s10 + $0x8] sm:$0xff] %v2574_v18  ;;  %v1818_v31 = vmul.f32 %v1788_v17, %v5142_v22  ;;  %v5147_v56 = vld [vmem:[#allocation113_spill] sm:$0xff]  ;;  %v5148_v23 = vld [vmem:[#allocation12_spill] sm:$0xff] }
 0x29c   : > { %v1942_v52 = vadd.f32 %v1814_v49, %v5143_v7  ;;  %v2579_v61 = vclamps-f32 %v1938_v37, 2.0  ;;  %2318 = vst [vmem:[%s4094_s10 + $0x10] sm:$0xff] %v2575_v19  ;;  %v1819_v21 = vmul.f32 %v1788_v17, %v5144_v4  ;;  %v1943_v41 = vadd.f32 %v1815_v36, %v5145_v0  ;;  %v5149_v37 = vld [vmem:[#allocation121_spill] sm:$0xff]  ;;  %v5150_v17 = vld [vmem:[#allocation26_spill] sm:$0xff]  ;;  %v5154_v0 = vld [vmem:[#allocation15_spill] sm:$0xff] }
 0x29d   : > { %v2580_v38 = vclamps-f32 %v1939_v60, 2.0  ;;  %2319 = vst [vmem:[%s4094_s10 + $0x18] sm:$0xff] %v2576_v29  ;;  %v1820_v9 = vmul.f32 %v4102_v48, %v5146_v11  ;;  %v1944_v18 = vadd.f32 %v1816_v54, %v5147_v56  ;;  %v2581_v15 = vclamps-f32 %v1940_v1, 2.0  ;;  %v5151_v60 = vld [vmem:[#allocation129_spill] sm:$0xff]  ;;  %v5153_v1 = vld [vmem:[#allocation131_spill] sm:$0xff] }
 0x29e   : > { %2320 = vst [vmem:[%s4094_s10 + $0x20] sm:$0xff] %v2577_v63  ;;  %v1821_v49 = vmul.f32 %v4102_v48, %v5148_v23  ;;  %v1945_v19 = vadd.f32 %v1817_v25, %v5149_v37  ;;  %v2582_v2 = vclamps-f32 %v1941_v51, 2.0  ;;  %v1822_v36 = vmul.f32 %v4102_v48, %v5150_v17  ;;  %v5152_v7 = vld [vmem:[#allocation25_spill] sm:$0xff]  ;;  %v5158_v37 = vld [vmem:[#allocation28_spill] sm:$0xff] }
 0x29f   : > { %2321 = vst [vmem:[%s4094_s10 + $0x28] sm:$0xff] %v2578_v62  ;;  %v1946_v29 = vadd.f32 %v1818_v31, %v5151_v60  ;;  %v2583_v22 = vclamps-f32 %v1942_v52, 2.0  ;;  %v1823_v54 = vmul.f32 %v4102_v48, %v5152_v7  ;;  %v1947_v63 = vadd.f32 %v1819_v21, %v5153_v1  ;;  %v5155_v51 = vld [vmem:[#allocation89_spill] sm:$0xff]  ;;  %v5157_v52 = vld [vmem:[#allocation91_spill] sm:$0xff]  ;;  %v5160_v60 = vld [vmem:[#allocation18_spill] sm:$0xff] }
 0x2a0   : > { %2322 = vst [vmem:[%s4094_s10 + $0x30] sm:$0xff] %v2579_v61  ;;  %v2584_v4 = vclamps-f32 %v1943_v41, 2.0  ;;  %v1824_v25 = vmul.f32 %v4102_v48, %v5154_v0  ;;  %v1948_v62 = vadd.f32 %v1820_v9, %v5155_v51  ;;  %v2585_v11 = vclamps-f32 %v1944_v18, 2.0  ;;  %v5156_v56 = vld [vmem:[#allocation29_spill] sm:$0xff]  ;;  %v5159_v41 = vld [vmem:[#allocation92_spill] sm:$0xff]  ;;  %v5161_v18 = vld [vmem:[#allocation95_spill] sm:$0xff] }
 0x2a1   : > { %2323 = vst [vmem:[%s4094_s10 + $0x38] sm:$0xff] %v2580_v38  ;;  %v1825_v31 = vmul.f32 %v4102_v48, %v5156_v56  ;;  %v1949_v61 = vadd.f32 %v1821_v49, %v5157_v52  ;;  %v2586_v23 = vclamps-f32 %v1945_v19, 2.0  ;;  %v1826_v21 = vmul.f32 %v4102_v48, %v5158_v37  ;;  %v5162_v19 = vld [vmem:[#allocation32_spill] sm:$0xff]  ;;  %v5163_v1 = vld [vmem:[#allocation99_spill] sm:$0xff] }
 0x2a2   : > { %2324 = vst [vmem:[%s4094_s10 + $0x40] sm:$0xff] %v2581_v15  ;;  %v1950_v38 = vadd.f32 %v1822_v36, %v5159_v41  ;;  %v2587_v17 = vclamps-f32 %v1946_v29, 2.0  ;;  %v1827_v9 = vmul.f32 %v4102_v48, %v5160_v60  ;;  %v1951_v15 = vadd.f32 %v1823_v54, %v5161_v18  ;;  %v5164_v36 = vld [vmem:[#allocation31_spill] sm:$0xff]  ;;  %v5166_v54 = vld [vmem:[#allocation21_spill] sm:$0xff] }
 0x2a3   : > { %2325 = vst [vmem:[%s4094_s10 + $0x48] sm:$0xff] %v2582_v2  ;;  %v2588_v7 = vclamps-f32 %v1947_v63, 2.0  ;;  %v1782_v49 = vrot.slane %v4072_v35, 2  ;;  %v1828_v2 = vmul.f32 %v4102_v48, %v5162_v19  ;;  %v1952_v0 = vadd.f32 %v1824_v25, %v5163_v1  ;;  %v5168_v60 = vld [vmem:[#allocation35_spill] sm:$0xff] }
 0x2a4   : > { %2326 = vst [vmem:[%s4094_s10 + $0x50] sm:$0xff] %v2583_v22  ;;  %v2589_v51 = vclamps-f32 %v1948_v62, 2.0  ;;  %v1829_v29 = vmul.f32 %v4102_v48, %v5164_v36  ;;  %v5165_v22 = vld [vmem:[#allocation100_spill] sm:$0xff]  ;;  %v2590_v52 = vclamps-f32 %v1949_v61, 2.0  ;;  %v1830_v63 = vmul.f32 %v4102_v48, %v5166_v54  ;;  %v5169_v62 = vld [vmem:[#allocation109_spill] sm:$0xff] }
 0x2a5   : > { %2327 = vst [vmem:[%s4094_s10 + $0x58] sm:$0xff] %v2584_v4  ;;  %v1953_v56 = vadd.f32 %v1825_v31, %v5165_v22  ;;  %v5167_v4 = vld [vmem:[#allocation102_spill] sm:$0xff]  ;;  %v2591_v41 = vclamps-f32 %v1950_v38, 2.0  ;;  %v1831_v25 = vmul.f32 %v4102_v48, %v5168_v60  ;;  %v2592_v18 = vclamps-f32 %v1951_v15, 2.0  ;;  %v5176_v60 = vld [vmem:[#allocation37_spill] sm:$0xff] }
 0x2a6   : > { %2328 = vst [vmem:[%s4094_s10 + $0x60] sm:$0xff] %v2585_v11  ;;  %v1954_v37 = vadd.f32 %v1826_v21, %v5167_v4  ;;  %v1955_v11 = vadd.f32 %v1827_v9, %v5169_v62  ;;  %v4165_v19 = vperm.slane %v1782_v49, 0  ;;  %v5170_v31 = vld [vmem:[#allocation34_spill] sm:$0xff]  ;;  %v2593_v36 = vclamps-f32 %v1952_v0, 2.0  ;;  %v5172_v21 = vld [vmem:[#allocation24_spill] sm:$0xff] }
 0x2a7   : > { %2329 = vst [vmem:[%s4094_s10 + $0x68] sm:$0xff] %v2586_v23  ;;  %v1832_v61 = vmul.f32 %v4102_v48, %v5170_v31  ;;  %v5171_v23 = vld [vmem:[#allocation110_spill] sm:$0xff]  ;;  %v1833_v38 = vmul.f32 %v4102_v48, %v5172_v21  ;;  %v2594_v54 = vclamps-f32 %v1953_v56, 2.0  ;;  %v5177_v0 = vld [vmem:[#allocation124_spill] sm:$0xff]  ;;  %v5178_v31 = vld [vmem:[#allocation27_spill] sm:$0xff] }
 0x2a8   : > { %2330 = vst [vmem:[%s4094_s10 + $0x70] sm:$0xff] %v2587_v17  ;;  %v1956_v1 = vadd.f32 %v1828_v2, %v5171_v23  ;;  %v5173_v17 = vld [vmem:[#allocation119_spill] sm:$0xff]  ;;  %v5174_v9 = vld [vmem:[#allocation38_spill] sm:$0xff]  ;;  %v2595_v4 = vclamps-f32 %v1954_v37, 2.0  ;;  %v1835_v2 = vmul.f32 %v4102_v48, %v5176_v60  ;;  %v2596_v62 = vclamps-f32 %v1955_v11, 2.0  ;;  %v5179_v56 = vld [vmem:[#allocation133_spill] sm:$0xff] }
 0x2a9   : > { %2331 = vst [vmem:[%s4094_s10 + $0x78] sm:$0xff] %v2588_v7  ;;  %v1957_v22 = vadd.f32 %v1829_v29, %v5173_v17  ;;  %v1834_v15 = vmul.f32 %v4102_v48, %v5174_v9  ;;  %v5175_v7 = vld [vmem:[#allocation123_spill] sm:$0xff]  ;;  %v1836_v29 = vmul.f32 %v4165_v19, %v5178_v31  ;;  %v5180_v21 = vld [vmem:[#allocation41_spill] sm:$0xff]  ;;  %v5181_v37 = vld [vmem:[#allocation136_spill] sm:$0xff] }
 0x2aa   : > { %2332 = vst [vmem:[%s4094_s10 + $0x80] sm:$0xff] %v2589_v51  ;;  %v1958_v49 = vadd.f32 %v1830_v63, %v5175_v7  ;;  %v1959_v51 = vadd.f32 %v1831_v25, %v5177_v0  ;;  %v2597_v23 = vclamps-f32 %v1956_v1, 2.0  ;;  %v1837_v63 = vmul.f32 %v4165_v19, %v5180_v21  ;;  %v5182_v48 = vld [vmem:[#allocation40_spill] sm:$0xff]  ;;  %v5183_v11 = vld [vmem:[#allocation149_spill] sm:$0xff]  ;;  %v5184_v7 = vld [vmem:[#allocation30_spill] sm:$0xff] }
 0x2ab   : > { %2333 = vst [vmem:[%s4094_s10 + $0x88] sm:$0xff] %v2590_v52  ;;  %v1960_v52 = vadd.f32 %v1832_v61, %v5179_v56  ;;  %v2598_v17 = vclamps-f32 %v1957_v22, 2.0  ;;  %v1838_v25 = vmul.f32 %v4165_v19, %v5182_v48  ;;  %v1839_v61 = vmul.f32 %v4165_v19, %v5184_v7  ;;  %v5185_v1 = vld [vmem:[#allocation148_spill] sm:$0xff]  ;;  %v5187_v22 = vld [vmem:[#allocation106_spill] sm:$0xff]  ;;  %v5188_v56 = vld [vmem:[#allocation43_spill] sm:$0xff] }
 0x2ac   : > { %2334 = vst [vmem:[%s4094_s10 + $0x90] sm:$0xff] %v2591_v41  ;;  %v1961_v41 = vadd.f32 %v1833_v38, %v5181_v37  ;;  %v2599_v9 = vclamps-f32 %v1958_v49, 2.0  ;;  %v2600_v60 = vclamps-f32 %v1959_v51, 2.0  ;;  %v5186_v0 = vld [vmem:[#allocation44_spill] sm:$0xff]  ;;  %v5189_v49 = vld [vmem:[#allocation103_spill] sm:$0xff]  ;;  %v5190_v37 = vld [vmem:[#allocation33_spill] sm:$0xff] }
 0x2ad   : > { %2335 = vst [vmem:[%s4094_s10 + $0x98] sm:$0xff] %v2592_v18  ;;  %v1962_v18 = vadd.f32 %v1834_v15, %v5183_v11  ;;  %v1840_v38 = vmul.f32 %v4165_v19, %v5186_v0  ;;  %v2601_v31 = vclamps-f32 %v1960_v52, 2.0  ;;  %v1841_v15 = vmul.f32 %v4165_v19, %v5188_v56  ;;  %v5191_v51 = vld [vmem:[#allocation112_spill] sm:$0xff]  ;;  %v5192_v11 = vld [vmem:[#allocation47_spill] sm:$0xff] }
 0x2ae   : > { %2336 = vst [vmem:[%s4094_s10 + $0xa0] sm:$0xff] %v2593_v36  ;;  %v1963_v36 = vadd.f32 %v1835_v2, %v5185_v1  ;;  %v2602_v21 = vclamps-f32 %v1961_v41, 2.0  ;;  %v1842_v2 = vmul.f32 %v4165_v19, %v5190_v37  ;;  %v5193_v52 = vld [vmem:[#allocation115_spill] sm:$0xff]  ;;  %v5194_v41 = vld [vmem:[#allocation46_spill] sm:$0xff]  ;;  %v5195_v1 = vld [vmem:[#allocation120_spill] sm:$0xff] }
 0x2af   : > { %2337 = vst [vmem:[%s4094_s10 + $0xa8] sm:$0xff] %v2594_v54  ;;  %v1964_v54 = vadd.f32 %v1836_v29, %v5187_v22  ;;  %v2603_v48 = vclamps-f32 %v1962_v18, 2.0  ;;  %v1843_v29 = vmul.f32 %v4165_v19, %v5192_v11  ;;  %v1968_v0 = vadd.f32 %v1840_v38, %v5195_v1  ;;  %v5200_v11 = vld [vmem:[#allocation49_spill] sm:$0xff] }
 0x2b0   : > { %2338 = vst [vmem:[%s4094_s10 + $0xb0] sm:$0xff] %v2595_v4  ;;  %v1965_v4 = vadd.f32 %v1837_v63, %v5189_v49  ;;  %v2604_v7 = vclamps-f32 %v1963_v36, 2.0  ;;  %v1783_v63 = vrot.slane %v4072_v35, 3  ;;  %v1847_v38 = vmul.f32 %v4165_v19, %v5200_v11 }
 0x2b1   : > { %2339 = vst [vmem:[%s4094_s10 + $0xb8] sm:$0xff] %v2596_v62  ;;  %v1966_v62 = vadd.f32 %v1838_v25, %v5191_v51  ;;  %v2605_v22 = vclamps-f32 %v1964_v54, 2.0  ;;  %v5196_v25 = vld [vmem:[#allocation36_spill] sm:$0xff]  ;;  %v5201_v54 = vld [vmem:[#allocation134_spill] sm:$0xff] }
 0x2b2   : > { %2340 = vst [vmem:[%s4094_s10 + $0xc0] sm:$0xff] %v2597_v23  ;;  %v1967_v23 = vadd.f32 %v1839_v61, %v5193_v52  ;;  %v1845_v18 = vmul.f32 %v4165_v19, %v5196_v25  ;;  %v2606_v49 = vclamps-f32 %v1965_v4, 2.0  ;;  %v5198_v61 = vld [vmem:[#allocation50_spill] sm:$0xff]  ;;  %v2609_v25 = vclamps-f32 %v1968_v0, 2.0 }
 0x2b3   : > { %2341 = vst [vmem:[%s4094_s10 + $0xc8] sm:$0xff] %v2598_v17  ;;  %v1844_v17 = vmul.f32 %v4165_v19, %v5194_v41  ;;  %v1846_v36 = vmul.f32 %v4165_v19, %v5198_v61  ;;  %v2607_v51 = vclamps-f32 %v1966_v62, 2.0  ;;  %v4232_v41 = vperm.slane %v1783_v63, 0  ;;  %v5208_v0 = vld [vmem:[#allocation154_spill] sm:$0xff] }
 0x2b4   : > { %2342 = vst [vmem:[%s4094_s10 + $0xd0] sm:$0xff] %v2599_v9  ;;  %v5197_v9 = vld [vmem:[#allocation127_spill] sm:$0xff]  ;;  %v2608_v52 = vclamps-f32 %v1967_v23, 2.0 }
 0x2b5   : > { %2343 = vst [vmem:[%s4094_s10 + $0xd8] sm:$0xff] %v2600_v60  ;;  %v1969_v56 = vadd.f32 %v1841_v15, %v5197_v9  ;;  %v5199_v60 = vld [vmem:[#allocation132_spill] sm:$0xff]  ;;  %v5202_v15 = vld [vmem:[#allocation39_spill] sm:$0xff] }
 0x2b6   : > { %2344 = vst [vmem:[%s4094_s10 + $0xe0] sm:$0xff] %v2601_v31  ;;  %v1970_v37 = vadd.f32 %v1842_v2, %v5199_v60  ;;  %v1971_v31 = vadd.f32 %v1843_v29, %v5201_v54  ;;  %v1848_v4 = vmul.f32 %v4165_v19, %v5202_v15  ;;  %v5204_v2 = vld [vmem:[#allocation53_spill] sm:$0xff]  ;;  %v1850_v29 = vmul.f32 %v4165_v19, %v5076_v16  ;;  %v5206_v23 = vld [vmem:[#allocation151_spill] sm:$0xff]  ;;  %v5207_v60 = vld [vmem:[#allocation42_spill] sm:$0xff] }
 0x2b7   : > { %2345 = vst [vmem:[%s4094_s10 + $0xe8] sm:$0xff] %v2602_v21  ;;  %v5203_v21 = vld [vmem:[#allocation145_spill] sm:$0xff]  ;;  %v1849_v62 = vmul.f32 %v4165_v19, %v5204_v2  ;;  %v2610_v61 = vclamps-f32 %v1969_v56, 2.0  ;;  %v5209_v54 = vld [vmem:[#allocation56_spill] sm:$0xff]  ;;  %v5211_v16 = vld [vmem:[#allocation55_spill] sm:$0xff] }
 0x2b8   : > { %2346 = vst [vmem:[%s4094_s10 + $0xf0] sm:$0xff] %v2603_v48  ;;  %v1972_v1 = vadd.f32 %v1844_v17, %v5203_v21  ;;  %v5205_v48 = vld [vmem:[#allocation147_spill] sm:$0xff]  ;;  %v2611_v63 = vclamps-f32 %v1970_v37, 2.0  ;;  %v1851_v17 = vmul.f32 %v4165_v19, %v5207_v60  ;;  %v2612_v11 = vclamps-f32 %v1971_v31, 2.0  ;;  %v5210_v56 = vld [vmem:[#allocation164_spill] sm:$0xff]  ;;  %v5212_v37 = vld [vmem:[#allocation174_spill] sm:$0xff] }
 0x2b9   : > { %2347 = vst [vmem:[%s4094_s10 + $0xf8] sm:$0xff] %v2604_v7  ;;  %v1973_v9 = vadd.f32 %v1845_v18, %v5205_v48  ;;  %v1974_v7 = vadd.f32 %v1846_v36, %v5206_v23  ;;  %v1852_v18 = vmul.f32 %v4232_v41, %v5209_v54  ;;  %v1853_v36 = vmul.f32 %v4232_v41, %v5211_v16  ;;  %v5213_v19 = vld [vmem:[#allocation45_spill] sm:$0xff]  ;;  %v5214_v31 = vld [vmem:[#allocation171_spill] sm:$0xff]  ;;  %v5217_v60 = vld [vmem:[#allocation58_spill] sm:$0xff] }
 0x2ba   : > { %2348 = vst [vmem:[%s4094_s10 + $0x100] sm:$0xff] %v2605_v22  ;;  %v1975_v22 = vadd.f32 %v1847_v38, %v5208_v0  ;;  %v2613_v15 = vclamps-f32 %v1972_v1, 2.0  ;;  %v1854_v38 = vmul.f32 %v4232_v41, %v5213_v19  ;;  %v5215_v48 = vld [vmem:[#allocation59_spill] sm:$0xff]  ;;  %v5216_v1 = vld [vmem:[#allocation165_spill] sm:$0xff]  ;;  %v5219_v54 = vld [vmem:[#allocation48_spill] sm:$0xff] }
 0x2bb   : > { %2349 = vst [vmem:[%s4094_s10 + $0x108] sm:$0xff] %v2606_v49  ;;  %v1976_v49 = vadd.f32 %v1848_v4, %v5210_v56  ;;  %v2614_v21 = vclamps-f32 %v1973_v9, 2.0  ;;  %v2615_v2 = vclamps-f32 %v1974_v7, 2.0  ;;  %v1855_v4 = vmul.f32 %v4232_v41, %v5215_v48  ;;  %v5218_v9 = vld [vmem:[#allocation117_spill] sm:$0xff]  ;;  %v5220_v7 = vld [vmem:[#allocation116_spill] sm:$0xff]  ;;  %v5221_v16 = vld [vmem:[#allocation62_spill] sm:$0xff] }
 0x2bc   : > { %2350 = vst [vmem:[%s4094_s10 + $0x110] sm:$0xff] %v2607_v51  ;;  %v1977_v51 = vadd.f32 %v1849_v62, %v5212_v37  ;;  %v2616_v23 = vclamps-f32 %v1975_v22, 2.0  ;;  %v1856_v62 = vmul.f32 %v4232_v41, %v5217_v60  ;;  %v5222_v22 = vld [vmem:[#allocation125_spill] sm:$0xff]  ;;  %v5226_v48 = vld [vmem:[#allocation135_spill] sm:$0xff] }
 0x2bd   : > { %2351 = vst [vmem:[%s4094_s10 + $0x118] sm:$0xff] %v2608_v52  ;;  %v1978_v52 = vadd.f32 %v1850_v29, %v5214_v31  ;;  %v2617_v0 = vclamps-f32 %v1976_v49, 2.0  ;;  %v1857_v29 = vmul.f32 %v4232_v41, %v5219_v54  ;;  %v5223_v19 = vld [vmem:[#allocation61_spill] sm:$0xff]  ;;  %v5224_v49 = vld [vmem:[#allocation126_spill] sm:$0xff] }
 0x2be   : > { %2352 = vst [vmem:[%s4094_s10 + $0x120] sm:$0xff] %v2609_v25  ;;  %v1979_v25 = vadd.f32 %v1851_v17, %v5216_v1  ;;  %v2618_v56 = vclamps-f32 %v1977_v51, 2.0  ;;  %v1858_v17 = vmul.f32 %v4232_v41, %v5221_v16  ;;  %v5225_v51 = vld [vmem:[#allocation51_spill] sm:$0xff]  ;;  %v1984_v1 = vadd.f32 %v1856_v62, %v5226_v48 }
 0x2bf   : > { %2353 = vst [vmem:[%s4094_s10 + $0x128] sm:$0xff] %v2610_v61  ;;  %v1980_v61 = vadd.f32 %v1852_v18, %v5218_v9  ;;  %v2619_v37 = vclamps-f32 %v1978_v52, 2.0  ;;  %v1859_v18 = vmul.f32 %v4232_v41, %v5223_v19 }
 0x2c0   : > { %2354 = vst [vmem:[%s4094_s10 + $0x130] sm:$0xff] %v2611_v63  ;;  %v1981_v63 = vadd.f32 %v1853_v36, %v5220_v7  ;;  %v2620_v31 = vclamps-f32 %v1979_v25, 2.0  ;;  %v1784_v36 = vrot.slane %v4072_v35, 4  ;;  %v2625_v48 = vclamps-f32 %v1984_v1, 2.0  ;;  %v5237_v1 = vld [vmem:[#allocation175_spill] sm:$0xff] }
 0x2c1   : > { %2355 = vst [vmem:[%s4094_s10 + $0x138] sm:$0xff] %v2612_v11  ;;  %v1982_v11 = vadd.f32 %v1854_v38, %v5222_v22  ;;  %v2621_v60 = vclamps-f32 %v1980_v61, 2.0  ;;  %v5227_v38 = vld [vmem:[#allocation65_spill] sm:$0xff]  ;;  %v5231_v22 = vld [vmem:[#allocation54_spill] sm:$0xff]  ;;  %v5232_v61 = vld [vmem:[#allocation152_spill] sm:$0xff] }
 0x2c2   : > { %2356 = vst [vmem:[%s4094_s10 + $0x140] sm:$0xff] %v2613_v15  ;;  %v1983_v15 = vadd.f32 %v1855_v4, %v5224_v49  ;;  %v1861_v52 = vmul.f32 %v4232_v41, %v5227_v38  ;;  %v2622_v54 = vclamps-f32 %v1981_v63, 2.0  ;;  %v5229_v4 = vld [vmem:[#allocation64_spill] sm:$0xff]  ;;  %v1863_v62 = vmul.f32 %v4232_v41, %v5231_v22  ;;  %v5243_v22 = vld [vmem:[#allocation182_spill] sm:$0xff] }
 0x2c3   : > { %2357 = vst [vmem:[%s4094_s10 + $0x148] sm:$0xff] %v2614_v21  ;;  %v1860_v21 = vmul.f32 %v4232_v41, %v5225_v51  ;;  %v1862_v25 = vmul.f32 %v4232_v41, %v5229_v4  ;;  %v2623_v16 = vclamps-f32 %v1982_v11, 2.0  ;;  %v4299_v49 = vperm.slane %v1784_v36, 0  ;;  %v5235_v11 = vld [vmem:[#allocation160_spill] sm:$0xff] }
 0x2c4   : > { %2358 = vst [vmem:[%s4094_s10 + $0x150] sm:$0xff] %v2615_v2  ;;  %v5228_v2 = vld [vmem:[#allocation139_spill] sm:$0xff]  ;;  %v2624_v19 = vclamps-f32 %v1983_v15, 2.0  ;;  %v5236_v15 = vld [vmem:[#allocation168_spill] sm:$0xff] }
 0x2c5   : > { %2359 = vst [vmem:[%s4094_s10 + $0x158] sm:$0xff] %v2616_v23  ;;  %v1985_v9 = vadd.f32 %v1857_v29, %v5228_v2  ;;  %v5230_v23 = vld [vmem:[#allocation142_spill] sm:$0xff]  ;;  %v5233_v29 = vld [vmem:[#allocation68_spill] sm:$0xff] }
 0x2c6   : > { %2360 = vst [vmem:[%s4094_s10 + $0x160] sm:$0xff] %v2617_v0  ;;  %v1986_v7 = vadd.f32 %v1858_v17, %v5230_v23  ;;  %v1987_v0 = vadd.f32 %v1859_v18, %v5232_v61  ;;  %v1864_v63 = vmul.f32 %v4232_v41, %v5233_v29  ;;  %v1865_v17 = vmul.f32 %v4232_v41, %v5085_v34  ;;  %v5238_v34 = vld [vmem:[#allocation70_spill] sm:$0xff]  ;;  %v5241_v23 = vld [vmem:[#allocation201_spill] sm:$0xff] }
 0x2c7   : > { %2361 = vst [vmem:[%s4094_s10 + $0x168] sm:$0xff] %v2618_v56  ;;  %v5234_v56 = vld [vmem:[#allocation158_spill] sm:$0xff]  ;;  %v2626_v38 = vclamps-f32 %v1985_v9, 2.0  ;;  %v1866_v18 = vmul.f32 %v4232_v41, %v5091_v24  ;;  %v5239_v9 = vld [vmem:[#allocation183_spill] sm:$0xff]  ;;  %v5240_v24 = vld [vmem:[#allocation60_spill] sm:$0xff] }
 0x2c8   : > { %2362 = vst [vmem:[%s4094_s10 + $0x170] sm:$0xff] %v2619_v37  ;;  %v1988_v51 = vadd.f32 %v1860_v21, %v5234_v56  ;;  %v1989_v37 = vadd.f32 %v1861_v52, %v5235_v11  ;;  %v2627_v36 = vclamps-f32 %v1986_v7, 2.0  ;;  %v1867_v21 = vmul.f32 %v4232_v41, %v5109_v8  ;;  %v5242_v8 = vld [vmem:[#allocation74_spill] sm:$0xff]  ;;  %v5245_v56 = vld [vmem:[#allocation63_spill] sm:$0xff] }
 0x2c9   : > { %2363 = vst [vmem:[%s4094_s10 + $0x178] sm:$0xff] %v2620_v31  ;;  %v1990_v31 = vadd.f32 %v1862_v25, %v5236_v15  ;;  %v2628_v2 = vclamps-f32 %v1987_v0, 2.0  ;;  %v1868_v52 = vmul.f32 %v4299_v49, %v5238_v34  ;;  %v1869_v25 = vmul.f32 %v4299_v49, %v5240_v24  ;;  %v5244_v0 = vld [vmem:[#allocation73_spill] sm:$0xff]  ;;  %v5253_v24 = vld [vmem:[#allocation80_spill] sm:$0xff] }
 0x2ca   : > { %2364 = vst [vmem:[%s4094_s10 + $0x180] sm:$0xff] %v2621_v60  ;;  %v1991_v60 = vadd.f32 %v1863_v62, %v5237_v1  ;;  %v2629_v4 = vclamps-f32 %v1988_v51, 2.0  ;;  %v1993_v7 = vadd.f32 %v1865_v17, %v5241_v23  ;;  %v1870_v41 = vmul.f32 %v4299_v49, %v5242_v8  ;;  %v5254_v23 = vld [vmem:[#allocation159_spill] sm:$0xff] }
 0x2cb   : > { %2365 = vst [vmem:[%s4094_s10 + $0x188] sm:$0xff] %v2622_v54  ;;  %v1992_v54 = vadd.f32 %v1864_v63, %v5239_v9  ;;  %v1994_v62 = vadd.f32 %v1866_v18, %v5243_v22  ;;  %v2631_v61 = vclamps-f32 %v1990_v31, 2.0  ;;  %v1995_v29 = vadd.f32 %v1867_v21, %v3866_v53  ;;  %v5248_v18 = vld [vmem:[#allocation141_spill] sm:$0xff]  ;;  %v5250_v21 = vld [vmem:[#allocation143_spill] sm:$0xff] }
 0x2cc   : > { %2366 = vst [vmem:[%s4094_s10 + $0x190] sm:$0xff] %v2623_v16  ;;  %v2630_v16 = vclamps-f32 %v1989_v37, 2.0  ;;  %v2632_v63 = vclamps-f32 %v1991_v60, 2.0  ;;  %v1872_v51 = vmul.f32 %v4299_v49, %v5245_v56  ;;  %v5247_v37 = vld [vmem:[#allocation77_spill] sm:$0xff]  ;;  %v1997_v15 = vadd.f32 %v1869_v25, %v5248_v18  ;;  %v5255_v8 = vld [vmem:[#allocation79_spill] sm:$0xff] }
 0x2cd   : > { %2367 = vst [vmem:[%s4094_s10 + $0x198] sm:$0xff] %v2624_v19  ;;  %v1871_v19 = vmul.f32 %v4299_v49, %v5244_v0  ;;  %v2633_v11 = vclamps-f32 %v1992_v54, 2.0  ;;  %v2634_v31 = vclamps-f32 %v1993_v7, 2.0  ;;  %v1998_v1 = vadd.f32 %v1870_v41, %v5250_v21  ;;  %v5256_v22 = vld [vmem:[#allocation161_spill] sm:$0xff] }
 0x2ce   : > { %2368 = vst [vmem:[%s4094_s10 + $0x1a0] sm:$0xff] %v2625_v48  ;;  %v5246_v48 = vld [vmem:[#allocation138_spill] sm:$0xff]  ;;  %v2635_v60 = vclamps-f32 %v1994_v62, 2.0  ;;  %v2636_v54 = vclamps-f32 %v1995_v29, 2.0  ;;  %v1876_v25 = vmul.f32 %v4299_v49, %v5253_v24  ;;  %v2000_v7 = vadd.f32 %v1872_v51, %v5254_v23  ;;  %v5258_v51 = vld [vmem:[#allocation177_spill] sm:$0xff] }
 0x2cf   : > { %2369 = vst [vmem:[%s4094_s10 + $0x1a8] sm:$0xff] %v2626_v38  ;;  %v1996_v17 = vadd.f32 %v1868_v52, %v5246_v48  ;;  %v1873_v38 = vmul.f32 %v4299_v49, %v5247_v37  ;;  %v5252_v52 = vld [vmem:[#allocation153_spill] sm:$0xff]  ;;  %v1877_v41 = vmul.f32 %v4299_v49, %v5255_v8  ;;  %v1878_v0 = vmul.f32 %v4299_v49, %v5078_v6  ;;  %v5259_v6 = vld [vmem:[#allocation178_spill] sm:$0xff] }
 0x2d0   : > { %2370 = vst [vmem:[%s4094_s10 + $0x1b0] sm:$0xff] %v2627_v36  ;;  %v5249_v36 = vld [vmem:[#allocation76_spill] sm:$0xff]  ;;  %v1999_v9 = vadd.f32 %v1871_v19, %v5252_v52  ;;  %v5257_v19 = vld [vmem:[#allocation169_spill] sm:$0xff]  ;;  %v1879_v56 = vmul.f32 %v4299_v49, %v5079_v3  ;;  %v1880_v37 = vmul.f32 %v4299_v49, %v5095_v46  ;;  %v2641_v18 = vclamps-f32 %v2000_v7, 2.0  ;;  %v5260_v3 = vld [vmem:[#allocation190_spill] sm:$0xff] }
 0x2d1   : > { %2371 = vst [vmem:[%s4094_s10 + $0x1b8] sm:$0xff] %v2628_v2  ;;  %v1874_v53 = vmul.f32 %v4299_v49, %v5249_v36  ;;  %v5251_v2 = vld [vmem:[#allocation66_spill] sm:$0xff]  ;;  %v2001_v62 = vadd.f32 %v1873_v38, %v5256_v22  ;;  %v2004_v38 = vadd.f32 %v1876_v25, %v5259_v6  ;;  %v5261_v21 = vld [vmem:[#allocation189_spill] sm:$0xff]  ;;  %v1883_v46 = vmul.f32 %v4299_v49, %v5117_v55  ;;  %v5265_v55 = vld [vmem:[#allocation87_spill] sm:$0xff] }
 0x2d2   : > { %2372 = vst [vmem:[%s4094_s10 + $0x1c0] sm:$0xff] %v2629_v4  ;;  %v1875_v34 = vmul.f32 %v4299_v49, %v5251_v2  ;;  %v1785_v4 = vrot.slane %v4072_v35, 5  ;;  %v5262_v2 = vld [vmem:[#allocation194_spill] sm:$0xff] }
 0x2d3   : > { %2373 = vst [vmem:[%s4094_s10 + $0x1c8] sm:$0xff] %v2630_v16  ;;  %v2637_v16 = vclamps-f32 %v1996_v17, 2.0  ;;  %v2002_v29 = vadd.f32 %v1874_v53, %v5257_v19  ;;  %v2640_v17 = vclamps-f32 %v1999_v9, 2.0  ;;  %v2642_v36 = vclamps-f32 %v2001_v62, 2.0  ;;  %v5266_v8 = vld [vmem:[#allocation78_spill] sm:$0xff] }
 0x2d4   : > { %2374 = vst [vmem:[%s4094_s10 + $0x1d0] sm:$0xff] %v2631_v61  ;;  %v2638_v61 = vclamps-f32 %v1997_v15, 2.0  ;;  %v2003_v48 = vadd.f32 %v1875_v34, %v5258_v51  ;;  %v1881_v15 = vmul.f32 %v4299_v49, %v5107_v47  ;;  %v1882_v53 = vmul.f32 %v4299_v49, %v5108_v20  ;;  %v5263_v47 = vld [vmem:[#allocation75_spill] sm:$0xff]  ;;  %v5264_v20 = vld [vmem:[#allocation88_spill] sm:$0xff]  ;;  %v5267_v62 = vld [vmem:[#allocation94_spill] sm:$0xff] }
 0x2d5   : > { %2375 = vst [vmem:[%s4094_s10 + $0x1d8] sm:$0xff] %v2632_v63  ;;  %v2639_v63 = vclamps-f32 %v1998_v1, 2.0  ;;  %v2006_v1 = vadd.f32 %v1878_v0, %v5261_v21  ;;  %v2007_v34 = vadd.f32 %v1879_v56, %v5262_v2 }
 0x2d6   : > { %2376 = vst [vmem:[%s4094_s10 + $0x1e0] sm:$0xff] %v2633_v11  ;;  %v4366_v11 = vperm.slane %v1785_v4, 0  ;;  %v2644_v52 = vclamps-f32 %v2003_v48, 2.0  ;;  %v2645_v4 = vclamps-f32 %v2004_v38, 2.0  ;;  %v2009_v25 = vadd.f32 %v1881_v15, %v3871_v59  ;;  %v5271_v48 = vld [vmem:[#allocation83_spill] sm:$0xff]  ;;  %v5273_v38 = vld [vmem:[#allocation98_spill] sm:$0xff] }
 0x2d7   : > { %2377 = vst [vmem:[%s4094_s10 + $0x1e8] sm:$0xff] %v2634_v31  ;;  %v2005_v31 = vadd.f32 %v1877_v41, %v5260_v3  ;;  %v2010_v7 = vadd.f32 %v1882_v53, %v3881_v10  ;;  %v2011_v41 = vadd.f32 %v1883_v46, %v3936_v58  ;;  %v2648_v22 = vclamps-f32 %v2007_v34, 2.0  ;;  %v5274_v15 = vld [vmem:[#allocation162_spill] sm:$0xff]  ;;  %v5275_v53 = vld [vmem:[#allocation97_spill] sm:$0xff]  ;;  %v5277_v34 = vld [vmem:[#allocation172_spill] sm:$0xff] }
 0x2d8   : > { %2378 = vst [vmem:[%s4094_s10 + $0x1f0] sm:$0xff] %v2635_v60  ;;  %v2643_v60 = vclamps-f32 %v2002_v29, 2.0  ;;  %v1884_v9 = vmul.f32 %v4366_v11, %v5263_v47  ;;  %v1885_v24 = vmul.f32 %v4366_v11, %v5264_v20  ;;  %v1886_v49 = vmul.f32 %v4366_v11, %v5265_v55  ;;  %v5269_v29 = vld [vmem:[#allocation93_spill] sm:$0xff] }
 0x2d9   : > { %2379 = vst [vmem:[%s4094_s10 + $0x1f8] sm:$0xff] %v2636_v54  ;;  %v2008_v54 = vadd.f32 %v1880_v37, %v3826_v45  ;;  %v2646_v23 = vclamps-f32 %v2005_v31, 2.0  ;;  %v1887_v45 = vmul.f32 %v4366_v11, %v5266_v8  ;;  %v1888_v59 = vmul.f32 %v4366_v11, %v5267_v62  ;;  %v5284_v62 = vld [vmem:[#allocation195_spill] sm:$0xff] }
 0x2da   : > { %2380 = vst [vmem:[%s4094_s10 + $0x200] sm:$0xff] %v2637_v16  ;;  %v2647_v16 = vclamps-f32 %v2006_v1, 2.0  ;;  %v1889_v10 = vmul.f32 %v4366_v11, %v5269_v29  ;;  %v2650_v51 = vclamps-f32 %v2009_v25, 2.0  ;;  %v1890_v58 = vmul.f32 %v4366_v11, %v5271_v48  ;;  %v5276_v1 = vld [vmem:[#allocation163_spill] sm:$0xff] }
 0x2db   : > { %2381 = vst [vmem:[%s4094_s10 + $0x208] sm:$0xff] %v2638_v61  ;;  %v5268_v61 = vld [vmem:[#allocation150_spill] sm:$0xff]  ;;  %v2649_v19 = vclamps-f32 %v2008_v54, 2.0  ;;  %v2651_v6 = vclamps-f32 %v2010_v7, 2.0  ;;  %v2015_v3 = vadd.f32 %v1887_v45, %v5274_v15  ;;  %v2652_v31 = vclamps-f32 %v2011_v41, 2.0  ;;  %v5278_v54 = vld [vmem:[#allocation179_spill] sm:$0xff] }
 0x2dc   : > { %2382 = vst [vmem:[%s4094_s10 + $0x210] sm:$0xff] %v2639_v63  ;;  %v2012_v0 = vadd.f32 %v1884_v9, %v5268_v61  ;;  %v5270_v63 = vld [vmem:[#allocation146_spill] sm:$0xff]  ;;  %v1892_v21 = vmul.f32 %v4366_v11, %v5275_v53  ;;  %v1893_v2 = vmul.f32 %v4366_v11, %v5083_v12  ;;  %v1894_v9 = vmul.f32 %v4366_v11, %v5084_v40  ;;  %v5282_v40 = vld [vmem:[#allocation191_spill] sm:$0xff] }
 0x2dd   : > { %2383 = vst [vmem:[%s4094_s10 + $0x218] sm:$0xff] %v2640_v17  ;;  %v2013_v56 = vadd.f32 %v1885_v24, %v5270_v63  ;;  %v5272_v17 = vld [vmem:[#allocation155_spill] sm:$0xff]  ;;  %v5279_v24 = vld [vmem:[#allocation104_spill] sm:$0xff]  ;;  %v2656_v12 = vclamps-f32 %v2015_v3, 2.0  ;;  %v5281_v7 = vld [vmem:[#allocation90_spill] sm:$0xff]  ;;  %v1899_v63 = vmul.f32 %v4366_v11, %v5118_v57 }
 0x2de   : > { %2384 = vst [vmem:[%s4094_s10 + $0x220] sm:$0xff] %v2641_v18  ;;  %v2014_v37 = vadd.f32 %v1886_v49, %v5272_v17  ;;  %v1891_v18 = vmul.f32 %v4366_v11, %v5273_v38  ;;  %v2653_v46 = vclamps-f32 %v2012_v0, 2.0  ;;  %v1895_v25 = vmul.f32 %v4366_v11, %v5279_v24  ;;  %v5283_v41 = vld [vmem:[#allocation118_spill] sm:$0xff]  ;;  %v5290_v15 = vld [vmem:[#allocation203_spill] sm:$0xff] }
 0x2df   : > { %2385 = vst [vmem:[%s4094_s10 + $0x228] sm:$0xff] %v2642_v36  ;;  %v1786_v36 = vrot.slane %v4072_v35, 6  ;;  %v2654_v47 = vclamps-f32 %v2013_v56, 2.0  ;;  %v2020_v8 = vadd.f32 %v1892_v21, %v5282_v40  ;;  %v1898_v0 = vmul.f32 %v4366_v11, %v5110_v43  ;;  %v5286_v56 = vld [vmem:[#allocation69_spill] sm:$0xff]  ;;  %v5289_v43 = vld [vmem:[#allocation128_spill] sm:$0xff]  ;;  %v5291_v57 = vld [vmem:[#allocation107_spill] sm:$0xff] }
 0x2e0   : > { %2386 = vst [vmem:[%s4094_s10 + $0x230] sm:$0xff] %v2643_v60  ;;  %v2016_v60 = vadd.f32 %v1888_v59, %v5276_v1  ;;  %v2655_v20 = vclamps-f32 %v2014_v37, 2.0  ;;  %v2021_v59 = vadd.f32 %v1893_v2, %v5284_v62  ;;  %v5288_v37 = vld [vmem:[#allocation86_spill] sm:$0xff]  ;;  %v5293_v1 = vld [vmem:[#allocation144_spill] sm:$0xff] }
 0x2e1   : > { %2387 = vst [vmem:[%s4094_s10 + $0x238] sm:$0xff] %v2644_v52  ;;  %v2017_v52 = vadd.f32 %v1889_v10, %v5277_v34  ;;  %v4433_v49 = vperm.slane %v1786_v36, 0  ;;  %v2661_v38 = vclamps-f32 %v2020_v8, 2.0  ;;  %v5292_v36 = vld [vmem:[#allocation81_spill] sm:$0xff]  ;;  %v5294_v34 = vld [vmem:[#allocation140_spill] sm:$0xff]  ;;  %v5297_v24 = vld [vmem:[#allocation186_spill] sm:$0xff] }
 0x2e2   : > { %2388 = vst [vmem:[%s4094_s10 + $0x240] sm:$0xff] %v2645_v4  ;;  %v2018_v4 = vadd.f32 %v1890_v58, %v5278_v54  ;;  %v2657_v45 = vclamps-f32 %v2016_v60, 2.0  ;;  %v5287_v58 = vld [vmem:[#allocation130_spill] sm:$0xff]  ;;  %v2026_v53 = vadd.f32 %v1898_v0, %v5292_v36  ;;  %v5308_v36 = vld [vmem:[#allocation85_spill] sm:$0xff] }
 0x2e3   : > { %2389 = vst [vmem:[%s4094_s10 + $0x248] sm:$0xff] %v2646_v23  ;;  %v5280_v23 = vld [vmem:[#allocation180_spill] sm:$0xff]  ;;  %v2658_v61 = vclamps-f32 %v2017_v52, 2.0  ;;  %v1900_v17 = vmul.f32 %v4433_v49, %v5287_v58  ;;  %v1903_v60 = vmul.f32 %v4433_v49, %v5293_v1  ;;  %v1904_v52 = vmul.f32 %v4433_v49, %v5294_v34  ;;  %v5300_v8 = vld [vmem:[#allocation198_spill] sm:$0xff] }
 0x2e4   : > { %2390 = vst [vmem:[%s4094_s10 + $0x250] sm:$0xff] %v2647_v16  ;;  %v2019_v55 = vadd.f32 %v1891_v18, %v5280_v23  ;;  %v1896_v16 = vmul.f32 %v4366_v11, %v5281_v7  ;;  %v2659_v10 = vclamps-f32 %v2018_v4, 2.0  ;;  %v1901_v18 = vmul.f32 %v4433_v49, %v5289_v43  ;;  %v5296_v4 = vld [vmem:[#allocation122_spill] sm:$0xff] }
 0x2e5   : > { %2391 = vst [vmem:[%s4094_s10 + $0x258] sm:$0xff] %v2648_v22  ;;  %v1897_v22 = vmul.f32 %v4366_v11, %v5283_v41  ;;  %v1902_v11 = vmul.f32 %v4433_v49, %v5291_v57  ;;  %v1907_v40 = vmul.f32 %v4433_v49, %v3549_v42  ;;  %v1908_v62 = vmul.f32 %v4433_v49, %v3782_v33 }
 0x2e6   : > { %2392 = vst [vmem:[%s4094_s10 + $0x260] sm:$0xff] %v2649_v19  ;;  %v5285_v19 = vld [vmem:[#allocation197_spill] sm:$0xff]  ;;  %v2660_v48 = vclamps-f32 %v2019_v55, 2.0  ;;  %v1911_v33 = vmul.f32 %v4433_v49, %v3915_v44  ;;  %v1913_v43 = vmul.f32 %v4433_v49, %v3986_v13  ;;  %v5306_v44 = vld [vmem:[#allocation211_spill] sm:$0xff] }
 0x2e7   : > { %2393 = vst [vmem:[%s4094_s10 + $0x268] sm:$0xff] %v2650_v51  ;;  %v2022_v29 = vadd.f32 %v1894_v9, %v5285_v19  ;;  %v2023_v51 = vadd.f32 %v1895_v25, %v5286_v56  ;;  %v2025_v3 = vadd.f32 %v1897_v22, %v5290_v15  ;;  %v2029_v25 = vadd.f32 %v1901_v18, %v5297_v24  ;;  %v5298_v55 = vld [vmem:[#allocation157_spill] sm:$0xff]  ;;  %v5314_v24 = vld [vmem:[#allocation216_spill] sm:$0xff] }
 0x2e8   : > { %2394 = vst [vmem:[%s4094_s10 + $0x270] sm:$0xff] %v2651_v6  ;;  %v2024_v6 = vadd.f32 %v1896_v16, %v5288_v37  ;;  %v2667_v16 = vclamps-f32 %v2026_v53, 2.0  ;;  %v1787_v22 = vrot.slane %v4072_v35, 7  ;;  %v1909_v19 = vmul.f32 %v4433_v49, %v3853_v14  ;;  %v5303_v35 = vld [vmem:[#allocation204_spill] sm:$0xff]  ;;  %v5309_v13 = vld [vmem:[#allocation137_spill] sm:$0xff] }
 0x2e9   : > { %2395 = vst [vmem:[%s4094_s10 + $0x278] sm:$0xff] %v2652_v31  ;;  %v2662_v31 = vclamps-f32 %v2021_v59, 2.0  ;;  %v2663_v21 = vclamps-f32 %v2022_v29, 2.0  ;;  %v2664_v2 = vclamps-f32 %v2023_v51, 2.0  ;;  %v2666_v23 = vclamps-f32 %v2025_v3, 2.0  ;;  %v5301_v59 = vld [vmem:[#allocation52_spill] sm:$0xff] }
 0x2ea   : > { %2396 = vst [vmem:[%s4094_s10 + $0x280] sm:$0xff] %v2653_v46  ;;  %v2027_v46 = vadd.f32 %v1899_v63, %v3945_v27  ;;  %v2665_v54 = vclamps-f32 %v2024_v6, 2.0  ;;  %v1906_v27 = vmul.f32 %v4433_v49, %v5298_v55  ;;  %v5302_v29 = vld [vmem:[#allocation67_spill] sm:$0xff]  ;;  %v1910_v63 = vmul.f32 %v4433_v49, %v3820_v39  ;;  %v5315_v55 = vld [vmem:[#allocation188_spill] sm:$0xff] }
 0x2eb   : > { %2397 = vst [vmem:[%s4094_s10 + $0x288] sm:$0xff] %v2654_v47  ;;  %v5295_v47 = vld [vmem:[#allocation187_spill] sm:$0xff]  ;;  %v1912_v37 = vmul.f32 %v4433_v49, %v3981_v28  ;;  %v2037_v18 = vadd.f32 %v1909_v19, %v5306_v44  ;;  %v1914_v3 = vmul.f32 %v4433_v49, %v4018_v32  ;;  %v1915_v28 = vmul.f32 %v4433_v49, %v4049_v50  ;;  %v5311_v32 = vld [vmem:[#allocation170_spill] sm:$0xff] }
 0x2ec   : > { %2398 = vst [vmem:[%s4094_s10 + $0x290] sm:$0xff] %v2655_v20  ;;  %v2028_v9 = vadd.f32 %v1900_v17, %v5295_v47  ;;  %v1905_v20 = vmul.f32 %v4433_v49, %v5296_v4  ;;  %v2668_v41 = vclamps-f32 %v2027_v46, 2.0  ;;  %v2034_v56 = vadd.f32 %v1906_v27, %v5303_v35  ;;  %v5305_v39 = vld [vmem:[#allocation207_spill] sm:$0xff]  ;;  %v5313_v4 = vld [vmem:[#allocation156_spill] sm:$0xff] }
 0x2ed   : > { %2399 = vst [vmem:[%s4094_s10 + $0x298] sm:$0xff] %v2656_v12  ;;  %v5299_v12 = vld [vmem:[#allocation196_spill] sm:$0xff]  ;;  %v4500_v17 = vperm.slane %v1787_v22, 0  ;;  %v2036_v6 = vadd.f32 %v1908_v62, %v5305_v39  ;;  %v2039_v53 = vadd.f32 %v1911_v33, %v5308_v36  ;;  %v2678_v47 = vclamps-f32 %v2037_v18, 2.0  ;;  %v5312_v50 = vld [vmem:[#allocation167_spill] sm:$0xff]  ;;  %v5320_v62 = vld [vmem:[#allocation193_spill] sm:$0xff] }
 0x2ee   : > { %2400 = vst [vmem:[%s4094_s10 + $0x2a0] sm:$0xff] %v2657_v45  ;;  %v2030_v7 = vadd.f32 %v1902_v11, %v5299_v12  ;;  %v2031_v45 = vadd.f32 %v1903_v60, %v5300_v8  ;;  %v2669_v0 = vclamps-f32 %v2028_v9, 2.0  ;;  %v2033_v42 = vadd.f32 %v1905_v20, %v5302_v29  ;;  %v5310_v60 = vld [vmem:[#allocation215_spill] sm:$0xff]  ;;  %v5316_v27 = vld [vmem:[#allocation184_spill] sm:$0xff] }
 0x2ef   : > { %2401 = vst [vmem:[%s4094_s10 + $0x2a8] sm:$0xff] %v2658_v61  ;;  %v2032_v61 = vadd.f32 %v1904_v52, %v5301_v59  ;;  %v2675_v11 = vclamps-f32 %v2034_v56, 2.0  ;;  %v1916_v1 = vmul.f32 %v4500_v17, %v5309_v13  ;;  %v2040_v46 = vadd.f32 %v1912_v37, %v5310_v60  ;;  %v5322_v29 = vld [vmem:[#allocation199_spill] sm:$0xff]  ;;  %v5324_v56 = vld [vmem:[#allocation200_spill] sm:$0xff] }
 0x2f0   : > { %2402 = vst [vmem:[%s4094_s10 + $0x2b0] sm:$0xff] %v2659_v10  ;;  %v2670_v10 = vclamps-f32 %v2029_v25, 2.0  ;;  %v2671_v51 = vclamps-f32 %v2030_v7, 2.0  ;;  %v2672_v14 = vclamps-f32 %v2031_v45, 2.0  ;;  %v2674_v15 = vclamps-f32 %v2033_v42, 2.0 }
 0x2f1   : > { %2403 = vst [vmem:[%s4094_s10 + $0x2b8] sm:$0xff] %v2660_v48  ;;  %v5304_v48 = vld [vmem:[#allocation206_spill] sm:$0xff]  ;;  %v1917_v34 = vmul.f32 %v4500_v17, %v5311_v32  ;;  %v2041_v52 = vadd.f32 %v1913_v43, %v4008_v5  ;;  %v1918_v49 = vmul.f32 %v4500_v17, %v5312_v50  ;;  %v2042_v9 = vadd.f32 %v1914_v3, %v4012_v26  ;;  %v5328_v43 = vld [vmem:[#allocation57_spill] sm:$0xff] }
 0x2f2   : > { %2404 = vst [vmem:[%s4094_s10 + $0x2c0] sm:$0xff] %v2661_v38  ;;  %v2035_v58 = vadd.f32 %v1907_v40, %v5304_v48  ;;  %v2673_v38 = vclamps-f32 %v2032_v61, 2.0  ;;  %v1919_v20 = vmul.f32 %v4500_v17, %v5313_v4  ;;  %v2043_v25 = vadd.f32 %v1915_v28, %v5314_v24  ;;  %v5318_v40 = vld [vmem:[#allocation181_spill] sm:$0xff]  ;;  %v5331_v28 = vld [vmem:[#allocation214_spill] sm:$0xff] }
 0x2f3   : > { %2405 = vst [vmem:[%s4094_s10 + $0x2c8] sm:$0xff] %v2662_v31  ;;  %v5307_v31 = vld [vmem:[#allocation72_spill] sm:$0xff]  ;;  %v1920_v5 = vmul.f32 %v4500_v17, %v5315_v55  ;;  %v2044_v12 = vadd.f32 %v1916_v1, %v5316_v27  ;;  %v2681_v7 = vclamps-f32 %v2040_v46, 2.0  ;;  %v2045_v8 = vadd.f32 %v1917_v34, %v5318_v40  ;;  %v5325_v48 = vld [vmem:[#allocation105_spill] sm:$0xff]  ;;  %v5334_v46 = vld [vmem:[#allocation210_spill] sm:$0xff] }
 0x2f4   : > { %2406 = vst [vmem:[%s4094_s10 + $0x2d0] sm:$0xff] %v2663_v21  ;;  %v2038_v57 = vadd.f32 %v1910_v63, %v5307_v31  ;;  %v2676_v21 = vclamps-f32 %v2035_v58, 2.0  ;;  %v2682_v45 = vclamps-f32 %v2041_v52, 2.0  ;;  %v2046_v59 = vadd.f32 %v1918_v49, %v5320_v62  ;;  %v5323_v63 = vld [vmem:[#allocation192_spill] sm:$0xff]  ;;  %v5330_v31 = vld [vmem:[#allocation205_spill] sm:$0xff]  ;;  %v5338_v24 = vld [vmem:[#allocation114_spill] sm:$0xff] }
 0x2f5   : > { %2407 = vst [vmem:[%s4094_s10 + $0x2d8] sm:$0xff] %v2664_v2  ;;  %v2677_v2 = vclamps-f32 %v2036_v6, 2.0  ;;  %v2683_v61 = vclamps-f32 %v2042_v9, 2.0  ;;  %v2047_v42 = vadd.f32 %v1919_v20, %v5322_v29  ;;  %v1924_v35 = vmul.f32 %v4500_v17, %v5323_v63  ;;  %v5327_v6 = vld [vmem:[#allocation212_spill] sm:$0xff]  ;;  %v5335_v34 = vld [vmem:[#allocation217_spill] sm:$0xff] }
 0x2f6   : > { %2408 = vst [vmem:[%s4094_s10 + $0x2e0] sm:$0xff] %v2665_v54  ;;  %v2679_v54 = vclamps-f32 %v2038_v57, 2.0  ;;  %v2685_v33 = vclamps-f32 %v2044_v12, 2.0  ;;  %v1925_v58 = vmul.f32 %v4500_v17, %v5325_v48  ;;  %v2686_v39 = vclamps-f32 %v2045_v8, 2.0  ;;  %v5333_v1 = vld [vmem:[#allocation176_spill] sm:$0xff] }
 0x2f7   : > { %2409 = vst [vmem:[%s4094_s10 + $0x2e8] sm:$0xff] %v2666_v23  ;;  %v2680_v23 = vclamps-f32 %v2039_v53, 2.0  ;;  %v2687_v18 = vclamps-f32 %v2046_v59, 2.0  ;;  %v1928_v36 = vmul.f32 %v4500_v17, %v5331_v28  ;;  %v5332_v53 = vld [vmem:[#allocation208_spill] sm:$0xff]  ;;  %v1929_v60 = vmul.f32 %v4500_v17, %v5333_v1 }
 0x2f8   : > { %2410 = vst [vmem:[%s4094_s10 + $0x2f0] sm:$0xff] %v2667_v16  ;;  %v5317_v16 = vld [vmem:[#allocation185_spill] sm:$0xff]  ;;  %v1930_v52 = vmul.f32 %v4500_v17, %v5335_v34  ;;  %v1931_v9 = vmul.f32 %v4500_v17, %v4046_v30  ;;  %v5339_v55 = vld [vmem:[#allocation84_spill] sm:$0xff] }
 0x2f9   : > { %2411 = vst [vmem:[%s4094_s10 + $0x2f8] sm:$0xff] %v2668_v41  ;;  %v1921_v26 = vmul.f32 %v4500_v17, %v5317_v16  ;;  %v5319_v41 = vld [vmem:[#allocation173_spill] sm:$0xff]  ;;  %v5340_v12 = vld [vmem:[#allocation96_spill] sm:$0xff] }
 0x2fa   : > { %2412 = vst [vmem:[%s4094_s10 + $0x300] sm:$0xff] %v2669_v0  ;;  %v1922_v22 = vmul.f32 %v4500_v17, %v5319_v41  ;;  %v5321_v0 = vld [vmem:[#allocation202_spill] sm:$0xff]  ;;  %v2058_v30 = vadd.f32 %v1930_v52, %v5340_v12 }
 0x2fb   : > { %2413 = vst [vmem:[%s4094_s10 + $0x308] sm:$0xff] %v2670_v10  ;;  %v1923_v19 = vmul.f32 %v4500_v17, %v5321_v0  ;;  %v2684_v10 = vclamps-f32 %v2043_v25, 2.0  ;;  %v2056_v25 = vadd.f32 %v1928_v36, %v5338_v24 }
 0x2fc   : > { %2414 = vst [vmem:[%s4094_s10 + $0x310] sm:$0xff] %v2671_v51  ;;  %v2048_v51 = vadd.f32 %v1920_v5, %v5324_v56  ;;  %v2050_v44 = vadd.f32 %v1922_v22, %v5328_v43  ;;  %v2057_v5 = vadd.f32 %v1929_v60, %v5339_v55 }
 0x2fd   : > { %2415 = vst [vmem:[%s4094_s10 + $0x318] sm:$0xff] %v2672_v14  ;;  %v5326_v14 = vld [vmem:[#allocation82_spill] sm:$0xff]  ;;  %v2051_v57 = vadd.f32 %v1923_v19, %v5330_v31  ;;  %v2697_v40 = vclamps-f32 %v2056_v25, 2.0 }
 0x2fe   : > { %2416 = vst [vmem:[%s4094_s10 + $0x320] sm:$0xff] %v2673_v38  ;;  %v2049_v37 = vadd.f32 %v1921_v26, %v5326_v14  ;;  %v1926_v38 = vmul.f32 %v4500_v17, %v5327_v6  ;;  %v2689_v13 = vclamps-f32 %v2048_v51, 2.0  ;;  %v2691_v49 = vclamps-f32 %v2050_v44, 2.0 }
 0x2ff   : > { %2417 = vst [vmem:[%s4094_s10 + $0x328] sm:$0xff] %v2674_v15  ;;  %v5329_v15 = vld [vmem:[#allocation209_spill] sm:$0xff]  ;;  %v2692_v20 = vclamps-f32 %v2051_v57, 2.0  ;;  %v2698_v8 = vclamps-f32 %v2057_v5, 2.0 }
 0x300   : > { %2418 = vst [vmem:[%s4094_s10 + $0x330] sm:$0xff] %v2675_v11  ;;  %v1927_v3 = vmul.f32 %v4500_v17, %v5329_v15  ;;  %v2688_v11 = vclamps-f32 %v2047_v42, 2.0  ;;  %v2690_v32 = vclamps-f32 %v2049_v37, 2.0 }
 0x301   : > { %2419 = vst [vmem:[%s4094_s10 + $0x338] sm:$0xff] %v2676_v21  ;;  %v2052_v21 = vadd.f32 %v1924_v35, %v5332_v53 }
 0x302   : > { %2420 = vst [vmem:[%s4094_s10 + $0x340] sm:$0xff] %v2677_v2  ;;  %v2053_v2 = vadd.f32 %v1925_v58, %v5334_v46 }
 0x303   : > { %2421 = vst [vmem:[%s4094_s10 + $0x348] sm:$0xff] %v2678_v47  ;;  %v5336_v47 = vld [vmem:[#allocation213_spill] sm:$0xff] }
 0x304   : > { %2422 = vst [vmem:[%s4094_s10 + $0x350] sm:$0xff] %v2679_v54  ;;  %v2054_v50 = vadd.f32 %v1926_v38, %v5336_v47  ;;  %v5337_v54 = vld [vmem:[#allocation71_spill] sm:$0xff]  ;;  %v2694_v27 = vclamps-f32 %v2053_v2, 2.0 }
 0x305   : > { %2423 = vst [vmem:[%s4094_s10 + $0x358] sm:$0xff] %v2680_v23  ;;  %v2055_v4 = vadd.f32 %v1927_v3, %v5337_v54  ;;  %v2693_v23 = vclamps-f32 %v2052_v21, 2.0 }
 0x306   : > { %2424 = vst [vmem:[%s4094_s10 + $0x360] sm:$0xff] %v2681_v7  ;;  %v2695_v17 = vclamps-f32 %v2054_v50, 2.0  ;;  %v5341_v7 = vld [vmem:[#allocation166_spill] sm:$0xff] }
 0x307   : > { %2425 = vst [vmem:[%s4094_s10 + $0x368] sm:$0xff] %v2682_v45  ;;  %v2059_v16 = vadd.f32 %v1931_v9, %v5341_v7  ;;  %v2696_v26 = vclamps-f32 %v2055_v4, 2.0  ;;  %v2699_v45 = vclamps-f32 %v2058_v30, 2.0 }
 0x308   : > { %2426 = vst [vmem:[%s4094_s10 + $0x370] sm:$0xff] %v2683_v61 }
 0x309   : > { %2427 = vst [vmem:[%s4094_s10 + $0x378] sm:$0xff] %v2684_v10  ;;  %v2700_v41 = vclamps-f32 %v2059_v16, 2.0 }
 0x30a   : > { %2428 = vst [vmem:[%s4094_s10 + $0x380] sm:$0xff] %v2685_v33 }
 0x30b   : > { %2429 = vst [vmem:[%s4094_s10 + $0x388] sm:$0xff] %v2686_v39 }
 0x30c   : > { %2430 = vst [vmem:[%s4094_s10 + $0x390] sm:$0xff] %v2687_v18 }
 0x30d   : > { %2431 = vst [vmem:[%s4094_s10 + $0x398] sm:$0xff] %v2688_v11 }
 0x30e   : > { %2432 = vst [vmem:[%s4094_s10 + $0x3a0] sm:$0xff] %v2689_v13 }
 0x30f   : > { %2433 = vst [vmem:[%s4094_s10 + $0x3a8] sm:$0xff] %v2690_v32 }
 0x310   : > { %2434 = vst [vmem:[%s4094_s10 + $0x3b0] sm:$0xff] %v2691_v49 }
 0x311   : > { %2435 = vst [vmem:[%s4094_s10 + $0x3b8] sm:$0xff] %v2692_v20 }
 0x312   : > { %2436 = vst [vmem:[%s4094_s10 + $0x3c0] sm:$0xff] %v2693_v23 }
 0x313   : > { %2437 = vst [vmem:[%s4094_s10 + $0x3c8] sm:$0xff] %v2694_v27 }
 0x314   : > { %2438 = vst [vmem:[%s4094_s10 + $0x3d0] sm:$0xff] %v2695_v17 }
 0x315   : > { %2439 = vst [vmem:[%s4094_s10 + $0x3d8] sm:$0xff] %v2696_v26 }
 0x316   : > { %2440 = vst [vmem:[%s4094_s10 + $0x3e0] sm:$0xff] %v2697_v40 }
 0x317   : > { %2441 = vst [vmem:[%s4094_s10 + $0x3e8] sm:$0xff] %v2698_v8 }
 0x318   : > { %2442 = vst [vmem:[%s4094_s10 + $0x3f0] sm:$0xff] %v2699_v45 }
 0x319   : > { %2443 = vst [vmem:[%s4094_s10 + $0x3f8] sm:$0xff] %v2700_v41 }
 0x31a PF: > { %s21_s11 = sadd.s32 1, %s2740_s11  }
 0x31b   : > { %p18_p5 = scmp.ge.s32.totalorder %s21_s11, 6  }
 0x31d   :  { %20 = sbr.rel (!%p18_p5) target bundleno = 2 (0x2), region = 100 }

</bundles_post_ra>
